<compile_context>
chip_gen: v7x
topology: tpu7x:2x2x1
jax: 0.10.0
libtpu: 0.0.40
codegen_flags: <defaults>
</compile_context>

<pallas_src>
import functools

import jax
import jax.numpy as jnp
from jax import lax
from jax.experimental import pallas as pl
from jax.experimental.pallas import tpu as pltpu

_VMEM = functools.partial(pl.BlockSpec, memory_space=pltpu.MemorySpace.VMEM)


def _lane_tile(x, reps):
    """concatenate([x]*reps, axis=-1) via log2 doubling (in-register lane replication)."""
    if reps == 1:
        return x
    half = reps // 2
    out = _lane_tile(jnp.concatenate([x, x], axis=-1), half)
    if reps % 2:
        out = jnp.concatenate([out, x], axis=-1)
    return out


def _mpnn_fused_kernel(
    # graph / feature inputs
    node_input_ref, edge_feat_ref,
    node_in_ref, node_out_ref, edge_w_ref, n2g_col_ref, n2g_row_ref,
    # parameters
    lin_w_ref, lin_b_ref,
    mlp_w1_ref, mlp_b1_ref, mlp_w2_ref, mlp_b2_ref,
    gru_wih_ref, gru_whh_ref, gru_bih_ref, gru_bhh_ref,
    s2s_wq_ref, s2s_wo_ref, s2s_whh_ref, s2s_b_ref,
    # outputs
    node_feat_ref, graph_feat_ref,
    *, num_layer, num_s2s_step, hidden_dim, num_node, num_edge, num_graph,
    short_cut, concat_hidden, use_bf16_mxu):
    f32 = jnp.float32
    mxu = jnp.bfloat16 if use_bf16_mxu else jnp.float32
    H, N, E, B = hidden_dim, num_node, num_edge, num_graph

    # ---- gather / scatter one-hots built in-register from indices (exact 0/1 in bf16) ----
    node_ids_en = lax.broadcasted_iota(jnp.int32, (E, N), 1)                    # (E, N)
    s_in = (node_ids_en == node_in_ref[...]).astype(f32).astype(mxu)            # edge <- node_in gather
    node_ids_ne = lax.broadcasted_iota(jnp.int32, (N, E), 0)                    # (N, E)
    s_out = (node_ids_ne == node_out_ref[...]).astype(f32).astype(mxu)          # scatter-add over node_out
    edge_w = edge_w_ref[...]                                                    # (E, 1) f32, applied on VPU

    # ---- in-kernel reduction matrix: red_mat[h*H + d, h'] = (h == h'), exact 0/1 ----
    k_ids = lax.broadcasted_iota(jnp.int32, (H * H, H), 0)
    h_ids = lax.broadcasted_iota(jnp.int32, (H * H, H), 1)
    red_mat = ((k_ids >= h_ids * H) & (k_ids < (h_ids + 1) * H)).astype(f32).astype(mxu)

    # ---- input linear: layer_input = node_input @ W^T + b ----
    layer_input = (jnp.dot(node_input_ref[...], lin_w_ref[...],
                           preferred_element_type=f32) + lin_b_ref[...])        # (N, H)

    # ---- edge-network MLP (edge_input_dim -> H (ReLU) -> H*H), loop invariant ----
    e1 = (jnp.dot(edge_feat_ref[...], mlp_w1_ref[...], preferred_element_type=f32)
          + mlp_b1_ref[...])
    e1 = jnp.maximum(e1, 0.0)
    t_flat = (jnp.dot(e1.astype(mxu), mlp_w2_ref[...].astype(mxu),
                      preferred_element_type=f32) + mlp_b2_ref[...])            # (E, H*H): T[e, h*H + d]

    # hoist loop-invariant parameter loads
    gru_wih = gru_wih_ref[...]
    gru_whh = gru_whh_ref[...]
    gru_bih = gru_bih_ref[...]
    gru_bhh = gru_bhh_ref[...]

    def layer_step(hx, layer_input):
        # message[e, h] = sum_d T[e, h*H + d] * layer_input[node_in[e], d]  (einsum "bed,bd->be")
        h_in = jnp.dot(s_in, layer_input.astype(mxu), preferred_element_type=f32)   # (E, H) gather
        h_tiled = _lane_tile(h_in, H)                                               # (E, H*H) lane copies
        prod = (t_flat * h_tiled).astype(mxu)                                       # VPU mult in f32
        msg = jnp.dot(prod, red_mat, preferred_element_type=f32)                    # (E, H) MXU K=H*H reduce
        msg = msg * edge_w                                                          # per-edge weight (f32)
        update = jnp.dot(s_out, msg.astype(mxu), preferred_element_type=f32)        # (N, H) scatter-add
        x = jnp.maximum(update, 0.0)                                                # combine(): relu
        # GRU cell (PyTorch gate order r | z | n), exact gate math, no concat scratch
        gi = jnp.dot(x, gru_wih, preferred_element_type=f32) + gru_bih              # (N, 3H)
        gh = jnp.dot(hx, gru_whh, preferred_element_type=f32) + gru_bhh             # (N, 3H)
        r = jax.nn.sigmoid(gi[:, 0:H] + gh[:, 0:H])
        z = jax.nn.sigmoid(gi[:, H:2 * H] + gh[:, H:2 * H])
        n = jnp.tanh(gi[:, 2 * H:3 * H] + r * gh[:, 2 * H:3 * H])
        hidden = (1.0 - z) * n + z * hx
        hx_new = hidden
        if short_cut:                        # shapes are always (N, H) == (N, H) here
            hidden = hidden + layer_input
        return hx_new, hidden

    hx = layer_input                         # GRU state init: layer_input.repeat(num_layers,1,1)
    if concat_hidden or num_layer == 1:
        hiddens = []
        for _ in range(num_layer):
            hx, hidden = layer_step(hx, layer_input)
            hiddens.append(hidden)
            layer_input = hidden
        node_feature = jnp.concatenate(hiddens, axis=-1) if concat_hidden else hiddens[-1]
    else:
        # fori_loop bounds vreg live ranges so pressure doesn't grow with num_layer
        def body(_, carry):
            return layer_step(*carry)
        hx, node_feature = lax.fori_loop(0, num_layer, body, (hx, layer_input))

    node_feat_ref[...] = node_feature
    feat = node_feature.shape[-1]

    # ---- Set2Set readout (LSTM on query_star + per-graph softmax attention) ----
    g = (lax.broadcasted_iota(jnp.int32, (N, B), 1) == n2g_col_ref[...]).astype(f32)   # (N, B)
    gt = (lax.broadcasted_iota(jnp.int32, (B, N), 0) == n2g_row_ref[...]).astype(f32)  # (B, N)
    in_graph = g > 0.0
    s2s_wq = s2s_wq_ref[...]
    s2s_wo = s2s_wo_ref[...]
    s2s_whh = s2s_whh_ref[...]
    s2s_b = s2s_b_ref[...]

    h = jnp.zeros((B, feat), f32)
    c = jnp.zeros((B, feat), f32)
    q = jnp.zeros((B, feat), f32)
    og = jnp.zeros((B, feat), f32)
    for _ in range(num_s2s_step):
        # LSTM cell on query_star = [q | og]; gate order i | f | g | o; no concat scratch
        gates = (jnp.dot(q, s2s_wq, preferred_element_type=f32)
                 + jnp.dot(og, s2s_wo, preferred_element_type=f32)
                 + jnp.dot(h, s2s_whh, preferred_element_type=f32) + s2s_b)            # (B, 4F)
        i_g = jax.nn.sigmoid(gates[:, 0:feat])
        f_g = jax.nn.sigmoid(gates[:, feat:2 * feat])
        g_g = jnp.tanh(gates[:, 2 * feat:3 * feat])
        o_g = jax.nn.sigmoid(gates[:, 3 * feat:4 * feat])
        c = f_g * c + i_g * g_g
        h = o_g * jnp.tanh(c)
        q = h                                                                   # query (B, F)
        # attention: product[v] = <query[graph(v)], node_feature[v]>, per-graph softmax
        q_nodes = jnp.dot(g, q, preferred_element_type=f32)                     # (N, F)
        prod = jnp.sum(q_nodes * node_feature, axis=-1, keepdims=True)          # (N, 1)
        masked = jnp.where(in_graph, prod, -1e30)                               # (N, B)
        gmax = jnp.max(masked, axis=0, keepdims=True)                           # (1, B)
        nmax = jnp.sum(g * gmax, axis=1, keepdims=True)                         # (N, 1)
        ex = jnp.exp(prod - nmax)
        gsum = jnp.sum(g * ex, axis=0, keepdims=True)                           # (1, B)
        nden = jnp.sum(g * gsum, axis=1, keepdims=True)                         # (N, 1)
        attn = ex * pl.reciprocal(nden, approx=True)                            # EUP vrcp (free slot)
        og = jnp.dot(gt, attn * node_feature, preferred_element_type=f32)       # (B, F)

    graph_feat_ref[:, 0:feat] = q
    graph_feat_ref[:, feat:2 * feat] = og


# ---------------- parameter init (deterministic, synthetic, PyTorch-like layout) ----------------
def init_params(key, input_dim, hidden_dim, edge_input_dim, num_layer=1, concat_hidden=False):
    ks = jax.random.split(key, 14)
    s = 0.1
    H = hidden_dim
    feat = H * num_layer if concat_hidden else H          # Set2Set feature_dim (matches nn module)
    p = {}
    p["lin_w_t"] = s * jax.random.normal(ks[0], (input_dim, H), jnp.float32)
    p["lin_b"] = s * jax.random.normal(ks[1], (1, H), jnp.float32)
    # edge-network MLP: edge_input_dim -> H (ReLU) -> H*H   (num_mlp_layer = 2)
    p["mlp_w1_t"] = s * jax.random.normal(ks[2], (edge_input_dim, H), jnp.float32)
    p["mlp_b1"] = s * jax.random.normal(ks[3], (1, H), jnp.float32)
    p["mlp_w2_t"] = s * jax.random.normal(ks[4], (H, H * H), jnp.float32)
    p["mlp_b2"] = s * jax.random.normal(ks[5], (1, H * H), jnp.float32)
    # GRU (num_gru_layer = 1), PyTorch gate order r | z | n
    p["gru_wih_t"] = s * jax.random.normal(ks[6], (H, 3 * H), jnp.float32)
    p["gru_whh_t"] = s * jax.random.normal(ks[7], (H, 3 * H), jnp.float32)
    p["gru_bih"] = s * jax.random.normal(ks[8], (1, 3 * H), jnp.float32)
    p["gru_bhh"] = s * jax.random.normal(ks[9], (1, 3 * H), jnp.float32)
    # Set2Set LSTM: input 2*feat -> hidden feat, gate order i | f | g | o
    p["s2s_wih_t"] = s * jax.random.normal(ks[10], (2 * feat, 4 * feat), jnp.float32)
    p["s2s_whh_t"] = s * jax.random.normal(ks[11], (feat, 4 * feat), jnp.float32)
    p["s2s_bih"] = s * jax.random.normal(ks[12], (1, 4 * feat), jnp.float32)
    p["s2s_bhh"] = s * jax.random.normal(ks[13], (1, 4 * feat), jnp.float32)
    return p


# ---------------- MPNN forward (defaults: num_layer=1, short_cut/concat_hidden False) ----------------
def mpnn_forward(params, node_input, edge_feat, node_in, node_out, edge_weight,
                 node2graph, num_graph, num_layer=1, num_s2s_step=3,
                 short_cut=False, concat_hidden=False, use_bf16_mxu=True):
    N, input_dim = node_input.shape
    E, edge_dim = edge_feat.shape
    H = params["lin_w_t"].shape[1]
    feat = H * num_layer if concat_hidden else H
    assert params["s2s_whh_t"].shape == (feat, 4 * feat), (
        "Set2Set parameters must be sized for feature_dim; "
        "build them with init_params(..., num_layer=, concat_hidden=)")

    # tiny int32/f32 index vectors (no O(E*N) one-hot ever materialized in HBM)
    node_in_col = node_in.astype(jnp.int32).reshape(E, 1)
    node_out_row = node_out.astype(jnp.int32).reshape(1, E)
    edge_w_col = edge_weight.astype(jnp.float32).reshape(E, 1)
    n2g_col = node2graph.astype(jnp.int32).reshape(N, 1)
    n2g_row = node2graph.astype(jnp.int32).reshape(1, N)

    # Set2Set LSTM weight split (input = [q | og]) and merged bias
    s2s_wq = params["s2s_wih_t"][0:feat, :]
    s2s_wo = params["s2s_wih_t"][feat:2 * feat, :]
    s2s_whh = params["s2s_whh_t"]
    s2s_b = params["s2s_bih"] + params["s2s_bhh"]

    # advisory cost estimate for XLA scheduling around the custom call
    HH = H * H
    msg_flops = 2 * (E * N * H + E * HH * H + N * E * H) + 2 * E * HH
    gru_flops = 2 * (2 * N * H * 3 * H)
    s2s_flops = 2 * (3 * num_graph * feat * 4 * feat + 2 * N * num_graph * feat + N * feat)
    flops = (2 * N * input_dim * H + 2 * (E * edge_dim * H + E * H * HH)
             + num_layer * (msg_flops + gru_flops) + num_s2s_step * s2s_flops)
    transcendentals = num_layer * 3 * N * H + num_s2s_step * (5 * num_graph * feat + 2 * N)
    param_elems = sum(int(v.size) for v in params.values())
    bytes_accessed = 4 * (node_input.size + edge_feat.size + 3 * E + 2 * N
                          + param_elems + N * feat + num_graph * 2 * feat)

    # explicit scoped-VMEM limit sized from the actual footprint (with headroom),
    # capped at 64 MiB so the same sizing works on v7x (64 MiB physical VMEM)
    itm_bytes = 4 * (4 * E * HH + 2 * E * N + 3 * E * H + 8 * N * H
                     + N * feat + 12 * num_graph * feat + HH * H)
    footprint = int(bytes_accessed + itm_bytes)
    vmem_limit_bytes = int(min(max(2 * footprint, 16 * 1024 * 1024), 64 * 1024 * 1024))

    kernel = functools.partial(
        _mpnn_fused_kernel, num_layer=num_layer, num_s2s_step=num_s2s_step,
        hidden_dim=H, num_node=N, num_edge=E, num_graph=num_graph,
        short_cut=short_cut, concat_hidden=concat_hidden, use_bf16_mxu=use_bf16_mxu)

    node_feature, graph_feature = pl.pallas_call(
        kernel,
        out_shape=(jax.ShapeDtypeStruct((N, feat), jnp.float32),
                   jax.ShapeDtypeStruct((num_graph, 2 * feat), jnp.float32)),
        in_specs=[_VMEM() for _ in range(21)],
        out_specs=(_VMEM(), _VMEM()),
        compiler_params=pltpu.CompilerParams(vmem_limit_bytes=vmem_limit_bytes),
        cost_estimate=pl.CostEstimate(flops=int(flops),
                                      transcendentals=int(transcendentals),
                                      bytes_accessed=int(bytes_accessed)),
    )(node_input, edge_feat, node_in_col, node_out_row, edge_w_col, n2g_col, n2g_row,
      params["lin_w_t"], params["lin_b"],
      params["mlp_w1_t"], params["mlp_b1"], params["mlp_w2_t"], params["mlp_b2"],
      params["gru_wih_t"], params["gru_whh_t"], params["gru_bih"], params["gru_bhh"],
      s2s_wq, s2s_wo, s2s_whh, s2s_b)

    return {"graph_feature": graph_feature, "node_feature": node_feature}


if __name__ == "__main__":
    key = jax.random.PRNGKey(0)
    k_in, k_edge, k_par = jax.random.split(key, 3)

    N, E, B = 8, 16, 2
    input_dim, hidden_dim, edge_input_dim = 16, 32, 8

    node_input = jax.random.normal(k_in, (N, input_dim), jnp.float32)
    edge_feat = jax.random.normal(k_edge, (E, edge_input_dim), jnp.float32)
    # two graphs of 4 nodes each; edges stay within their graph
    node_in = jnp.array([0, 1, 2, 3, 0, 2, 1, 3, 4, 5, 6, 7, 4, 6, 5, 7], jnp.int32)
    node_out = jnp.array([1, 2, 3, 0, 2, 0, 3, 1, 5, 6, 7, 4, 6, 4, 7, 5], jnp.int32)
    edge_weight = jnp.ones((E,), jnp.float32)
    node2graph = jnp.array([0, 0, 0, 0, 1, 1, 1, 1], jnp.int32)

    params = init_params(k_par, input_dim, hidden_dim, edge_input_dim,
                         num_layer=1, concat_hidden=False)

    out = mpnn_forward(params, node_input, edge_feat, node_in, node_out, edge_weight,
                       node2graph, B, num_layer=1, num_s2s_step=3,
                       short_cut=False, concat_hidden=False, use_bf16_mxu=True)
    jax.block_until_ready(out["node_feature"])
    jax.block_until_ready(out["graph_feature"])

    assert out["node_feature"].shape == (N, hidden_dim)
    assert out["graph_feature"].shape == (B, 2 * hidden_dim)
    assert bool(jnp.all(jnp.isfinite(out["node_feature"])))
    assert bool(jnp.all(jnp.isfinite(out["graph_feature"])))
    print("KERNEL_OK")
</pallas_src>

<mosaic_0001>
module attributes {stable_mosaic.version = 11 : i64} {
  func.func @_mpnn_fused_kernel(%arg0: memref<8x16xf32, #tpu.memory_space<vmem>>, %arg1: memref<16x8xf32, #tpu.memory_space<vmem>>, %arg2: memref<16x1xi32, #tpu.memory_space<vmem>>, %arg3: memref<1x16xi32, #tpu.memory_space<vmem>>, %arg4: memref<16x1xf32, #tpu.memory_space<vmem>>, %arg5: memref<8x1xi32, #tpu.memory_space<vmem>>, %arg6: memref<1x8xi32, #tpu.memory_space<vmem>>, %arg7: memref<16x32xf32, #tpu.memory_space<vmem>>, %arg8: memref<1x32xf32, #tpu.memory_space<vmem>>, %arg9: memref<8x32xf32, #tpu.memory_space<vmem>>, %arg10: memref<1x32xf32, #tpu.memory_space<vmem>>, %arg11: memref<32x1024xf32, #tpu.memory_space<vmem>>, %arg12: memref<1x1024xf32, #tpu.memory_space<vmem>>, %arg13: memref<32x96xf32, #tpu.memory_space<vmem>>, %arg14: memref<32x96xf32, #tpu.memory_space<vmem>>, %arg15: memref<1x96xf32, #tpu.memory_space<vmem>>, %arg16: memref<1x96xf32, #tpu.memory_space<vmem>>, %arg17: memref<32x128xf32, #tpu.memory_space<vmem>>, %arg18: memref<32x128xf32, #tpu.memory_space<vmem>>, %arg19: memref<32x128xf32, #tpu.memory_space<vmem>>, %arg20: memref<1x128xf32, #tpu.memory_space<vmem>>, %arg21: memref<8x32xf32, #tpu.memory_space<vmem>>, %arg22: memref<2x64xf32, #tpu.memory_space<vmem>>) attributes {dimension_semantics = [], scalar_prefetch = 0 : i64, scratch_operands = 0 : i64, tpu.core_type = #tpu.core_type<tc>} {
    %0 = tpu.iota {dimensions = array<i32: 1>} : vector<16x8xi32>
    %c0 = arith.constant 0 : index
    %c0_0 = arith.constant 0 : index
    %1 = vector.load %arg2[%c0, %c0_0] : memref<16x1xi32, #tpu.memory_space<vmem>>, vector<16x1xi32>
    %2 = vector.broadcast %1 : vector<16x1xi32> to vector<16x8xi32>
    %3 = arith.cmpi eq, %0, %2 : vector<16x8xi32>
    %4 = arith.extui %3 : vector<16x8xi1> to vector<16x8xi32>
    %5 = arith.sitofp %4 : vector<16x8xi32> to vector<16x8xf32>
    %6 = arith.truncf %5 : vector<16x8xf32> to vector<16x8xbf16>
    %7 = tpu.iota {dimensions = array<i32: 0>} : vector<8x16xi32>
    %c0_1 = arith.constant 0 : index
    %c0_2 = arith.constant 0 : index
    %8 = vector.load %arg3[%c0_1, %c0_2] : memref<1x16xi32, #tpu.memory_space<vmem>>, vector<1x16xi32>
    %9 = vector.broadcast %8 : vector<1x16xi32> to vector<8x16xi32>
    %10 = arith.cmpi eq, %7, %9 : vector<8x16xi32>
    %11 = arith.extui %10 : vector<8x16xi1> to vector<8x16xi32>
    %12 = arith.sitofp %11 : vector<8x16xi32> to vector<8x16xf32>
    %13 = arith.truncf %12 : vector<8x16xf32> to vector<8x16xbf16>
    %c0_3 = arith.constant 0 : index
    %c0_4 = arith.constant 0 : index
    %14 = vector.load %arg4[%c0_3, %c0_4] : memref<16x1xf32, #tpu.memory_space<vmem>>, vector<16x1xf32>
    %15 = tpu.iota {dimensions = array<i32: 0>} : vector<1024x32xi32>
    %16 = tpu.iota {dimensions = array<i32: 1>} : vector<1024x32xi32>
    %c32_i32 = arith.constant 32 : i32
    %17 = vector.broadcast %c32_i32 : i32 to vector<1024x32xi32>
    %18 = arith.muli %16, %17 : vector<1024x32xi32>
    %19 = arith.cmpi sge, %15, %18 : vector<1024x32xi32>
    %c1_i32 = arith.constant 1 : i32
    %20 = vector.broadcast %c1_i32 : i32 to vector<1024x32xi32>
    %21 = arith.addi %16, %20 : vector<1024x32xi32>
    %c32_i32_5 = arith.constant 32 : i32
    %22 = vector.broadcast %c32_i32_5 : i32 to vector<1024x32xi32>
    %23 = arith.muli %21, %22 : vector<1024x32xi32>
    %24 = arith.cmpi slt, %15, %23 : vector<1024x32xi32>
    %25 = arith.andi %19, %24 : vector<1024x32xi1>
    %26 = arith.extui %25 : vector<1024x32xi1> to vector<1024x32xi32>
    %27 = arith.sitofp %26 : vector<1024x32xi32> to vector<1024x32xf32>
    %28 = arith.truncf %27 : vector<1024x32xf32> to vector<1024x32xbf16>
    %c0_6 = arith.constant 0 : index
    %c0_7 = arith.constant 0 : index
    %29 = vector.load %arg0[%c0_6, %c0_7] : memref<8x16xf32, #tpu.memory_space<vmem>>, vector<8x16xf32>
    %c0_8 = arith.constant 0 : index
    %c0_9 = arith.constant 0 : index
    %30 = vector.load %arg7[%c0_8, %c0_9] : memref<16x32xf32, #tpu.memory_space<vmem>>, vector<16x32xf32>
    %cst = arith.constant dense<0.000000e+00> : vector<8x32xf32>
    %31 = tpu.matmul %29, %30, %cst {dimension_numbers = #tpu.dot_dimension_numbers<[1], [0], [0], [1], [0, 0, 1, 1], [], []>} : vector<8x16xf32>, vector<16x32xf32>, vector<8x32xf32> -> vector<8x32xf32>
    %c0_10 = arith.constant 0 : index
    %c0_11 = arith.constant 0 : index
    %32 = vector.load %arg8[%c0_10, %c0_11] : memref<1x32xf32, #tpu.memory_space<vmem>>, vector<1x32xf32>
    %33 = vector.broadcast %32 : vector<1x32xf32> to vector<8x32xf32>
    %34 = arith.addf %31, %33 : vector<8x32xf32>
    %c0_12 = arith.constant 0 : index
    %c0_13 = arith.constant 0 : index
    %35 = vector.load %arg1[%c0_12, %c0_13] : memref<16x8xf32, #tpu.memory_space<vmem>>, vector<16x8xf32>
    %c0_14 = arith.constant 0 : index
    %c0_15 = arith.constant 0 : index
    %36 = vector.load %arg9[%c0_14, %c0_15] : memref<8x32xf32, #tpu.memory_space<vmem>>, vector<8x32xf32>
    %cst_16 = arith.constant dense<0.000000e+00> : vector<16x32xf32>
    %37 = tpu.matmul %35, %36, %cst_16 {dimension_numbers = #tpu.dot_dimension_numbers<[1], [0], [0], [1], [0, 0, 1, 1], [], []>} : vector<16x8xf32>, vector<8x32xf32>, vector<16x32xf32> -> vector<16x32xf32>
    %c0_17 = arith.constant 0 : index
    %c0_18 = arith.constant 0 : index
    %38 = vector.load %arg10[%c0_17, %c0_18] : memref<1x32xf32, #tpu.memory_space<vmem>>, vector<1x32xf32>
    %39 = vector.broadcast %38 : vector<1x32xf32> to vector<16x32xf32>
    %40 = arith.addf %37, %39 : vector<16x32xf32>
    %cst_19 = arith.constant 0.000000e+00 : f32
    %41 = vector.broadcast %cst_19 : f32 to vector<16x32xf32>
    %42 = arith.maximumf %40, %41 : vector<16x32xf32>
    %43 = arith.truncf %42 : vector<16x32xf32> to vector<16x32xbf16>
    %c0_20 = arith.constant 0 : index
    %c0_21 = arith.constant 0 : index
    %44 = vector.load %arg11[%c0_20, %c0_21] : memref<32x1024xf32, #tpu.memory_space<vmem>>, vector<32x1024xf32>
    %45 = arith.truncf %44 : vector<32x1024xf32> to vector<32x1024xbf16>
    %cst_22 = arith.constant dense<0.000000e+00> : vector<16x1024xf32>
    %46 = tpu.matmul %43, %45, %cst_22 {dimension_numbers = #tpu.dot_dimension_numbers<[1], [0], [0], [1], [0, 0, 1, 1], [], []>} : vector<16x32xbf16>, vector<32x1024xbf16>, vector<16x1024xf32> -> vector<16x1024xf32>
    %c0_23 = arith.constant 0 : index
    %c0_24 = arith.constant 0 : index
    %47 = vector.load %arg12[%c0_23, %c0_24] : memref<1x1024xf32, #tpu.memory_space<vmem>>, vector<1x1024xf32>
    %48 = vector.broadcast %47 : vector<1x1024xf32> to vector<16x1024xf32>
    %49 = arith.addf %46, %48 : vector<16x1024xf32>
    %c0_25 = arith.constant 0 : index
    %c0_26 = arith.constant 0 : index
    %50 = vector.load %arg13[%c0_25, %c0_26] : memref<32x96xf32, #tpu.memory_space<vmem>>, vector<32x96xf32>
    %c0_27 = arith.constant 0 : index
    %c0_28 = arith.constant 0 : index
    %51 = vector.load %arg14[%c0_27, %c0_28] : memref<32x96xf32, #tpu.memory_space<vmem>>, vector<32x96xf32>
    %c0_29 = arith.constant 0 : index
    %c0_30 = arith.constant 0 : index
    %52 = vector.load %arg15[%c0_29, %c0_30] : memref<1x96xf32, #tpu.memory_space<vmem>>, vector<1x96xf32>
    %c0_31 = arith.constant 0 : index
    %c0_32 = arith.constant 0 : index
    %53 = vector.load %arg16[%c0_31, %c0_32] : memref<1x96xf32, #tpu.memory_space<vmem>>, vector<1x96xf32>
    %54 = arith.truncf %34 : vector<8x32xf32> to vector<8x32xbf16>
    %cst_33 = arith.constant dense<0.000000e+00> : vector<16x32xf32>
    %55 = tpu.matmul %6, %54, %cst_33 {dimension_numbers = #tpu.dot_dimension_numbers<[1], [0], [0], [1], [0, 0, 1, 1], [], []>} : vector<16x8xbf16>, vector<8x32xbf16>, vector<16x32xf32> -> vector<16x32xf32>
    %56 = tpu.concatenate %55, %55 in 1 : vector<16x32xf32>, vector<16x32xf32> -> vector<16x64xf32>
    %57 = tpu.concatenate %56, %56 in 1 : vector<16x64xf32>, vector<16x64xf32> -> vector<16x128xf32>
    %58 = tpu.concatenate %57, %57 in 1 : vector<16x128xf32>, vector<16x128xf32> -> vector<16x256xf32>
    %59 = tpu.concatenate %58, %58 in 1 : vector<16x256xf32>, vector<16x256xf32> -> vector<16x512xf32>
    %60 = tpu.concatenate %59, %59 in 1 : vector<16x512xf32>, vector<16x512xf32> -> vector<16x1024xf32>
    %61 = arith.mulf %49, %60 : vector<16x1024xf32>
    %62 = arith.truncf %61 : vector<16x1024xf32> to vector<16x1024xbf16>
    %cst_34 = arith.constant dense<0.000000e+00> : vector<16x32xf32>
    %63 = tpu.matmul %62, %28, %cst_34 {dimension_numbers = #tpu.dot_dimension_numbers<[1], [0], [0], [1], [0, 0, 1, 1], [], []>} : vector<16x1024xbf16>, vector<1024x32xbf16>, vector<16x32xf32> -> vector<16x32xf32>
    %64 = vector.broadcast %14 : vector<16x1xf32> to vector<16x32xf32>
    %65 = arith.mulf %63, %64 : vector<16x32xf32>
    %66 = arith.truncf %65 : vector<16x32xf32> to vector<16x32xbf16>
    %cst_35 = arith.constant dense<0.000000e+00> : vector<8x32xf32>
    %67 = tpu.matmul %13, %66, %cst_35 {dimension_numbers = #tpu.dot_dimension_numbers<[1], [0], [0], [1], [0, 0, 1, 1], [], []>} : vector<8x16xbf16>, vector<16x32xbf16>, vector<8x32xf32> -> vector<8x32xf32>
    %cst_36 = arith.constant 0.000000e+00 : f32
    %68 = vector.broadcast %cst_36 : f32 to vector<8x32xf32>
    %69 = arith.maximumf %67, %68 : vector<8x32xf32>
    %cst_37 = arith.constant dense<0.000000e+00> : vector<8x96xf32>
    %70 = tpu.matmul %69, %50, %cst_37 {dimension_numbers = #tpu.dot_dimension_numbers<[1], [0], [0], [1], [0, 0, 1, 1], [], []>} : vector<8x32xf32>, vector<32x96xf32>, vector<8x96xf32> -> vector<8x96xf32>
    %71 = vector.broadcast %52 : vector<1x96xf32> to vector<8x96xf32>
    %72 = arith.addf %70, %71 : vector<8x96xf32>
    %cst_38 = arith.constant dense<0.000000e+00> : vector<8x96xf32>
    %73 = tpu.matmul %34, %51, %cst_38 {dimension_numbers = #tpu.dot_dimension_numbers<[1], [0], [0], [1], [0, 0, 1, 1], [], []>} : vector<8x32xf32>, vector<32x96xf32>, vector<8x96xf32> -> vector<8x96xf32>
    %74 = vector.broadcast %53 : vector<1x96xf32> to vector<8x96xf32>
    %75 = arith.addf %73, %74 : vector<8x96xf32>
    %76 = vector.extract_strided_slice %72 {offsets = [0, 0], sizes = [8, 32], strides = [1, 1]} : vector<8x96xf32> to vector<8x32xf32>
    %77 = vector.extract_strided_slice %75 {offsets = [0, 0], sizes = [8, 32], strides = [1, 1]} : vector<8x96xf32> to vector<8x32xf32>
    %78 = arith.addf %76, %77 : vector<8x32xf32>
    %79 = arith.negf %78 : vector<8x32xf32>
    %80 = math.exp %79 : vector<8x32xf32>
    %cst_39 = arith.constant 1.000000e+00 : f32
    %81 = vector.broadcast %cst_39 : f32 to vector<8x32xf32>
    %82 = arith.addf %81, %80 : vector<8x32xf32>
    %83 = arith.divf %81, %82 : vector<8x32xf32>
    %84 = vector.extract_strided_slice %72 {offsets = [0, 32], sizes = [8, 32], strides = [1, 1]} : vector<8x96xf32> to vector<8x32xf32>
    %85 = vector.extract_strided_slice %75 {offsets = [0, 32], sizes = [8, 32], strides = [1, 1]} : vector<8x96xf32> to vector<8x32xf32>
    %86 = arith.addf %84, %85 : vector<8x32xf32>
    %87 = arith.negf %86 : vector<8x32xf32>
    %88 = math.exp %87 : vector<8x32xf32>
    %cst_40 = arith.constant 1.000000e+00 : f32
    %89 = vector.broadcast %cst_40 : f32 to vector<8x32xf32>
    %90 = arith.addf %89, %88 : vector<8x32xf32>
    %91 = arith.divf %89, %90 : vector<8x32xf32>
    %92 = vector.extract_strided_slice %72 {offsets = [0, 64], sizes = [8, 32], strides = [1, 1]} : vector<8x96xf32> to vector<8x32xf32>
    %93 = vector.extract_strided_slice %75 {offsets = [0, 64], sizes = [8, 32], strides = [1, 1]} : vector<8x96xf32> to vector<8x32xf32>
    %94 = arith.mulf %83, %93 : vector<8x32xf32>
    %95 = arith.addf %92, %94 : vector<8x32xf32>
    %96 = math.tanh %95 : vector<8x32xf32>
    %cst_41 = arith.constant 1.000000e+00 : f32
    %97 = vector.broadcast %cst_41 : f32 to vector<8x32xf32>
    %98 = arith.subf %97, %91 : vector<8x32xf32>
    %99 = arith.mulf %98, %96 : vector<8x32xf32>
    %100 = arith.mulf %91, %34 : vector<8x32xf32>
    %101 = arith.addf %99, %100 : vector<8x32xf32>
    %c0_42 = arith.constant 0 : index
    %c0_43 = arith.constant 0 : index
    %102 = vector.load %arg21[%c0_42, %c0_43] : memref<8x32xf32, #tpu.memory_space<vmem>>, vector<8x32xf32>
    tpu.vector_store %arg21[%c0_42, %c0_43], %101 {strides = array<i32>} : memref<8x32xf32, #tpu.memory_space<vmem>>, vector<8x32xf32>,
    %103 = tpu.iota {dimensions = array<i32: 1>} : vector<8x2xi32>
    %c0_44 = arith.constant 0 : index
    %c0_45 = arith.constant 0 : index
    %104 = vector.load %arg5[%c0_44, %c0_45] : memref<8x1xi32, #tpu.memory_space<vmem>>, vector<8x1xi32>
    %105 = vector.broadcast %104 : vector<8x1xi32> to vector<8x2xi32>
    %106 = arith.cmpi eq, %103, %105 : vector<8x2xi32>
    %107 = arith.extui %106 : vector<8x2xi1> to vector<8x2xi32>
    %108 = arith.sitofp %107 : vector<8x2xi32> to vector<8x2xf32>
    %109 = tpu.iota {dimensions = array<i32: 0>} : vector<2x8xi32>
    %c0_46 = arith.constant 0 : index
    %c0_47 = arith.constant 0 : index
    %110 = vector.load %arg6[%c0_46, %c0_47] : memref<1x8xi32, #tpu.memory_space<vmem>>, vector<1x8xi32>
    %111 = vector.broadcast %110 : vector<1x8xi32> to vector<2x8xi32>
    %112 = arith.cmpi eq, %109, %111 : vector<2x8xi32>
    %113 = arith.extui %112 : vector<2x8xi1> to vector<2x8xi32>
    %114 = arith.sitofp %113 : vector<2x8xi32> to vector<2x8xf32>
    %cst_48 = arith.constant 0.000000e+00 : f32
    %115 = vector.broadcast %cst_48 : f32 to vector<8x2xf32>
    %116 = arith.cmpf ogt, %108, %115 : vector<8x2xf32>
    %c0_49 = arith.constant 0 : index
    %c0_50 = arith.constant 0 : index
    %117 = vector.load %arg17[%c0_49, %c0_50] : memref<32x128xf32, #tpu.memory_space<vmem>>, vector<32x128xf32>
    %c0_51 = arith.constant 0 : index
    %c0_52 = arith.constant 0 : index
    %118 = vector.load %arg18[%c0_51, %c0_52] : memref<32x128xf32, #tpu.memory_space<vmem>>, vector<32x128xf32>
    %c0_53 = arith.constant 0 : index
    %c0_54 = arith.constant 0 : index
    %119 = vector.load %arg19[%c0_53, %c0_54] : memref<32x128xf32, #tpu.memory_space<vmem>>, vector<32x128xf32>
    %c0_55 = arith.constant 0 : index
    %c0_56 = arith.constant 0 : index
    %120 = vector.load %arg20[%c0_55, %c0_56] : memref<1x128xf32, #tpu.memory_space<vmem>>, vector<1x128xf32>
    %cst_57 = arith.constant 0.000000e+00 : f32
    %121 = vector.broadcast %cst_57 : f32 to vector<2x32xf32>
    %cst_58 = arith.constant 0.000000e+00 : f32
    %122 = vector.broadcast %cst_58 : f32 to vector<2x32xf32>
    %cst_59 = arith.constant 0.000000e+00 : f32
    %123 = vector.broadcast %cst_59 : f32 to vector<2x32xf32>
    %cst_60 = arith.constant 0.000000e+00 : f32
    %124 = vector.broadcast %cst_60 : f32 to vector<2x32xf32>
    %cst_61 = arith.constant dense<0.000000e+00> : vector<2x128xf32>
    %125 = tpu.matmul %123, %117, %cst_61 {dimension_numbers = #tpu.dot_dimension_numbers<[1], [0], [0], [1], [0, 0, 1, 1], [], []>} : vector<2x32xf32>, vector<32x128xf32>, vector<2x128xf32> -> vector<2x128xf32>
    %cst_62 = arith.constant dense<0.000000e+00> : vector<2x128xf32>
    %126 = tpu.matmul %124, %118, %cst_62 {dimension_numbers = #tpu.dot_dimension_numbers<[1], [0], [0], [1], [0, 0, 1, 1], [], []>} : vector<2x32xf32>, vector<32x128xf32>, vector<2x128xf32> -> vector<2x128xf32>
    %127 = arith.addf %125, %126 : vector<2x128xf32>
    %cst_63 = arith.constant dense<0.000000e+00> : vector<2x128xf32>
    %128 = tpu.matmul %121, %119, %cst_63 {dimension_numbers = #tpu.dot_dimension_numbers<[1], [0], [0], [1], [0, 0, 1, 1], [], []>} : vector<2x32xf32>, vector<32x128xf32>, vector<2x128xf32> -> vector<2x128xf32>
    %129 = arith.addf %127, %128 : vector<2x128xf32>
    %130 = vector.broadcast %120 : vector<1x128xf32> to vector<2x128xf32>
    %131 = arith.addf %129, %130 : vector<2x128xf32>
    %132 = vector.extract_strided_slice %131 {offsets = [0, 0], sizes = [2, 32], strides = [1, 1]} : vector<2x128xf32> to vector<2x32xf32>
    %133 = arith.negf %132 : vector<2x32xf32>
    %134 = math.exp %133 : vector<2x32xf32>
    %cst_64 = arith.constant 1.000000e+00 : f32
    %135 = vector.broadcast %cst_64 : f32 to vector<2x32xf32>
    %136 = arith.addf %135, %134 : vector<2x32xf32>
    %137 = arith.divf %135, %136 : vector<2x32xf32>
    %138 = vector.extract_strided_slice %131 {offsets = [0, 32], sizes = [2, 32], strides = [1, 1]} : vector<2x128xf32> to vector<2x32xf32>
    %139 = arith.negf %138 : vector<2x32xf32>
    %140 = math.exp %139 : vector<2x32xf32>
    %cst_65 = arith.constant 1.000000e+00 : f32
    %141 = vector.broadcast %cst_65 : f32 to vector<2x32xf32>
    %142 = arith.addf %141, %140 : vector<2x32xf32>
    %143 = arith.divf %141, %142 : vector<2x32xf32>
    %144 = vector.extract_strided_slice %131 {offsets = [0, 64], sizes = [2, 32], strides = [1, 1]} : vector<2x128xf32> to vector<2x32xf32>
    %145 = math.tanh %144 : vector<2x32xf32>
    %146 = vector.extract_strided_slice %131 {offsets = [0, 96], sizes = [2, 32], strides = [1, 1]} : vector<2x128xf32> to vector<2x32xf32>
    %147 = arith.negf %146 : vector<2x32xf32>
    %148 = math.exp %147 : vector<2x32xf32>
    %cst_66 = arith.constant 1.000000e+00 : f32
    %149 = vector.broadcast %cst_66 : f32 to vector<2x32xf32>
    %150 = arith.addf %149, %148 : vector<2x32xf32>
    %151 = arith.divf %149, %150 : vector<2x32xf32>
    %152 = arith.mulf %143, %122 : vector<2x32xf32>
    %153 = arith.mulf %137, %145 : vector<2x32xf32>
    %154 = arith.addf %152, %153 : vector<2x32xf32>
    %155 = math.tanh %154 : vector<2x32xf32>
    %156 = arith.mulf %151, %155 : vector<2x32xf32>
    %cst_67 = arith.constant dense<0.000000e+00> : vector<8x32xf32>
    %157 = tpu.matmul %108, %156, %cst_67 {dimension_numbers = #tpu.dot_dimension_numbers<[1], [0], [0], [1], [0, 0, 1, 1], [], []>} : vector<8x2xf32>, vector<2x32xf32>, vector<8x32xf32> -> vector<8x32xf32>
    %158 = arith.mulf %157, %101 : vector<8x32xf32>
    %cst_68 = arith.constant dense<0.000000e+00> : vector<8xf32>
    %159 = vector.multi_reduction <add>, %158, %cst_68 [1] : vector<8x32xf32> to vector<8xf32>
    %160 = vector.shape_cast %159 : vector<8xf32> to vector<8x1xf32>
    %cst_69 = arith.constant -1.000000e+30 : f32
    %161 = vector.shape_cast %160 : vector<8x1xf32> to vector<8x1xf32>
    %162 = vector.broadcast %161 : vector<8x1xf32> to vector<8x2xf32>
    %163 = vector.broadcast %cst_69 : f32 to vector<8x2xf32>
    %164 = arith.select %116, %162, %163 : vector<8x2xi1>, vector<8x2xf32>
    %cst_70 = arith.constant dense<0xFF800000> : vector<2xf32>
    %165 = vector.multi_reduction <maximumf>, %164, %cst_70 [0] : vector<8x2xf32> to vector<2xf32>
    %166 = vector.shape_cast %165 : vector<2xf32> to vector<1x2xf32>
    %167 = vector.broadcast %166 : vector<1x2xf32> to vector<8x2xf32>
    %168 = arith.mulf %108, %167 : vector<8x2xf32>
    %cst_71 = arith.constant dense<0.000000e+00> : vector<8xf32>
    %169 = vector.multi_reduction <add>, %168, %cst_71 [1] : vector<8x2xf32> to vector<8xf32>
    %170 = vector.shape_cast %169 : vector<8xf32> to vector<8x1xf32>
    %171 = arith.subf %160, %170 : vector<8x1xf32>
    %172 = math.exp %171 : vector<8x1xf32>
    %173 = vector.broadcast %172 : vector<8x1xf32> to vector<8x2xf32>
    %174 = arith.mulf %108, %173 : vector<8x2xf32>
    %cst_72 = arith.constant dense<0.000000e+00> : vector<2xf32>
    %175 = vector.multi_reduction <add>, %174, %cst_72 [0] : vector<8x2xf32> to vector<2xf32>
    %176 = vector.shape_cast %175 : vector<2xf32> to vector<1x2xf32>
    %177 = vector.broadcast %176 : vector<1x2xf32> to vector<8x2xf32>
    %178 = arith.mulf %108, %177 : vector<8x2xf32>
    %cst_73 = arith.constant dense<0.000000e+00> : vector<8xf32>
    %179 = vector.multi_reduction <add>, %178, %cst_73 [1] : vector<8x2xf32> to vector<8xf32>
    %180 = vector.shape_cast %179 : vector<8xf32> to vector<8x1xf32>
    %181 = tpu.reciprocal %180 {approx = true} : vector<8x1xf32> -> vector<8x1xf32>
    %182 = arith.mulf %172, %181 : vector<8x1xf32>
    %183 = vector.broadcast %182 : vector<8x1xf32> to vector<8x32xf32>
    %184 = arith.mulf %183, %101 : vector<8x32xf32>
    %cst_74 = arith.constant dense<0.000000e+00> : vector<2x32xf32>
    %185 = tpu.matmul %114, %184, %cst_74 {dimension_numbers = #tpu.dot_dimension_numbers<[1], [0], [0], [1], [0, 0, 1, 1], [], []>} : vector<2x8xf32>, vector<8x32xf32>, vector<2x32xf32> -> vector<2x32xf32>
    %cst_75 = arith.constant dense<0.000000e+00> : vector<2x128xf32>
    %186 = tpu.matmul %156, %117, %cst_75 {dimension_numbers = #tpu.dot_dimension_numbers<[1], [0], [0], [1], [0, 0, 1, 1], [], []>} : vector<2x32xf32>, vector<32x128xf32>, vector<2x128xf32> -> vector<2x128xf32>
    %cst_76 = arith.constant dense<0.000000e+00> : vector<2x128xf32>
    %187 = tpu.matmul %185, %118, %cst_76 {dimension_numbers = #tpu.dot_dimension_numbers<[1], [0], [0], [1], [0, 0, 1, 1], [], []>} : vector<2x32xf32>, vector<32x128xf32>, vector<2x128xf32> -> vector<2x128xf32>
    %188 = arith.addf %186, %187 : vector<2x128xf32>
    %cst_77 = arith.constant dense<0.000000e+00> : vector<2x128xf32>
    %189 = tpu.matmul %156, %119, %cst_77 {dimension_numbers = #tpu.dot_dimension_numbers<[1], [0], [0], [1], [0, 0, 1, 1], [], []>} : vector<2x32xf32>, vector<32x128xf32>, vector<2x128xf32> -> vector<2x128xf32>
    %190 = arith.addf %188, %189 : vector<2x128xf32>
    %191 = vector.broadcast %120 : vector<1x128xf32> to vector<2x128xf32>
    %192 = arith.addf %190, %191 : vector<2x128xf32>
    %193 = vector.extract_strided_slice %192 {offsets = [0, 0], sizes = [2, 32], strides = [1, 1]} : vector<2x128xf32> to vector<2x32xf32>
    %194 = arith.negf %193 : vector<2x32xf32>
    %195 = math.exp %194 : vector<2x32xf32>
    %cst_78 = arith.constant 1.000000e+00 : f32
    %196 = vector.broadcast %cst_78 : f32 to vector<2x32xf32>
    %197 = arith.addf %196, %195 : vector<2x32xf32>
    %198 = arith.divf %196, %197 : vector<2x32xf32>
    %199 = vector.extract_strided_slice %192 {offsets = [0, 32], sizes = [2, 32], strides = [1, 1]} : vector<2x128xf32> to vector<2x32xf32>
    %200 = arith.negf %199 : vector<2x32xf32>
    %201 = math.exp %200 : vector<2x32xf32>
    %cst_79 = arith.constant 1.000000e+00 : f32
    %202 = vector.broadcast %cst_79 : f32 to vector<2x32xf32>
    %203 = arith.addf %202, %201 : vector<2x32xf32>
    %204 = arith.divf %202, %203 : vector<2x32xf32>
    %205 = vector.extract_strided_slice %192 {offsets = [0, 64], sizes = [2, 32], strides = [1, 1]} : vector<2x128xf32> to vector<2x32xf32>
    %206 = math.tanh %205 : vector<2x32xf32>
    %207 = vector.extract_strided_slice %192 {offsets = [0, 96], sizes = [2, 32], strides = [1, 1]} : vector<2x128xf32> to vector<2x32xf32>
    %208 = arith.negf %207 : vector<2x32xf32>
    %209 = math.exp %208 : vector<2x32xf32>
    %cst_80 = arith.constant 1.000000e+00 : f32
    %210 = vector.broadcast %cst_80 : f32 to vector<2x32xf32>
    %211 = arith.addf %210, %209 : vector<2x32xf32>
    %212 = arith.divf %210, %211 : vector<2x32xf32>
    %213 = arith.mulf %204, %154 : vector<2x32xf32>
    %214 = arith.mulf %198, %206 : vector<2x32xf32>
    %215 = arith.addf %213, %214 : vector<2x32xf32>
    %216 = math.tanh %215 : vector<2x32xf32>
    %217 = arith.mulf %212, %216 : vector<2x32xf32>
    %cst_81 = arith.constant dense<0.000000e+00> : vector<8x32xf32>
    %218 = tpu.matmul %108, %217, %cst_81 {dimension_numbers = #tpu.dot_dimension_numbers<[1], [0], [0], [1], [0, 0, 1, 1], [], []>} : vector<8x2xf32>, vector<2x32xf32>, vector<8x32xf32> -> vector<8x32xf32>
    %219 = arith.mulf %218, %101 : vector<8x32xf32>
    %cst_82 = arith.constant dense<0.000000e+00> : vector<8xf32>
    %220 = vector.multi_reduction <add>, %219, %cst_82 [1] : vector<8x32xf32> to vector<8xf32>
    %221 = vector.shape_cast %220 : vector<8xf32> to vector<8x1xf32>
    %cst_83 = arith.constant -1.000000e+30 : f32
    %222 = vector.shape_cast %221 : vector<8x1xf32> to vector<8x1xf32>
    %223 = vector.broadcast %222 : vector<8x1xf32> to vector<8x2xf32>
    %224 = vector.broadcast %cst_83 : f32 to vector<8x2xf32>
    %225 = arith.select %116, %223, %224 : vector<8x2xi1>, vector<8x2xf32>
    %cst_84 = arith.constant dense<0xFF800000> : vector<2xf32>
    %226 = vector.multi_reduction <maximumf>, %225, %cst_84 [0] : vector<8x2xf32> to vector<2xf32>
    %227 = vector.shape_cast %226 : vector<2xf32> to vector<1x2xf32>
    %228 = vector.broadcast %227 : vector<1x2xf32> to vector<8x2xf32>
    %229 = arith.mulf %108, %228 : vector<8x2xf32>
    %cst_85 = arith.constant dense<0.000000e+00> : vector<8xf32>
    %230 = vector.multi_reduction <add>, %229, %cst_85 [1] : vector<8x2xf32> to vector<8xf32>
    %231 = vector.shape_cast %230 : vector<8xf32> to vector<8x1xf32>
    %232 = arith.subf %221, %231 : vector<8x1xf32>
    %233 = math.exp %232 : vector<8x1xf32>
    %234 = vector.broadcast %233 : vector<8x1xf32> to vector<8x2xf32>
    %235 = arith.mulf %108, %234 : vector<8x2xf32>
    %cst_86 = arith.constant dense<0.000000e+00> : vector<2xf32>
    %236 = vector.multi_reduction <add>, %235, %cst_86 [0] : vector<8x2xf32> to vector<2xf32>
    %237 = vector.shape_cast %236 : vector<2xf32> to vector<1x2xf32>
    %238 = vector.broadcast %237 : vector<1x2xf32> to vector<8x2xf32>
    %239 = arith.mulf %108, %238 : vector<8x2xf32>
    %cst_87 = arith.constant dense<0.000000e+00> : vector<8xf32>
    %240 = vector.multi_reduction <add>, %239, %cst_87 [1] : vector<8x2xf32> to vector<8xf32>
    %241 = vector.shape_cast %240 : vector<8xf32> to vector<8x1xf32>
    %242 = tpu.reciprocal %241 {approx = true} : vector<8x1xf32> -> vector<8x1xf32>
    %243 = arith.mulf %233, %242 : vector<8x1xf32>
    %244 = vector.broadcast %243 : vector<8x1xf32> to vector<8x32xf32>
    %245 = arith.mulf %244, %101 : vector<8x32xf32>
    %cst_88 = arith.constant dense<0.000000e+00> : vector<2x32xf32>
    %246 = tpu.matmul %114, %245, %cst_88 {dimension_numbers = #tpu.dot_dimension_numbers<[1], [0], [0], [1], [0, 0, 1, 1], [], []>} : vector<2x8xf32>, vector<8x32xf32>, vector<2x32xf32> -> vector<2x32xf32>
    %cst_89 = arith.constant dense<0.000000e+00> : vector<2x128xf32>
    %247 = tpu.matmul %217, %117, %cst_89 {dimension_numbers = #tpu.dot_dimension_numbers<[1], [0], [0], [1], [0, 0, 1, 1], [], []>} : vector<2x32xf32>, vector<32x128xf32>, vector<2x128xf32> -> vector<2x128xf32>
    %cst_90 = arith.constant dense<0.000000e+00> : vector<2x128xf32>
    %248 = tpu.matmul %246, %118, %cst_90 {dimension_numbers = #tpu.dot_dimension_numbers<[1], [0], [0], [1], [0, 0, 1, 1], [], []>} : vector<2x32xf32>, vector<32x128xf32>, vector<2x128xf32> -> vector<2x128xf32>
    %249 = arith.addf %247, %248 : vector<2x128xf32>
    %cst_91 = arith.constant dense<0.000000e+00> : vector<2x128xf32>
    %250 = tpu.matmul %217, %119, %cst_91 {dimension_numbers = #tpu.dot_dimension_numbers<[1], [0], [0], [1], [0, 0, 1, 1], [], []>} : vector<2x32xf32>, vector<32x128xf32>, vector<2x128xf32> -> vector<2x128xf32>
    %251 = arith.addf %249, %250 : vector<2x128xf32>
    %252 = vector.broadcast %120 : vector<1x128xf32> to vector<2x128xf32>
    %253 = arith.addf %251, %252 : vector<2x128xf32>
    %254 = vector.extract_strided_slice %253 {offsets = [0, 0], sizes = [2, 32], strides = [1, 1]} : vector<2x128xf32> to vector<2x32xf32>
    %255 = arith.negf %254 : vector<2x32xf32>
    %256 = math.exp %255 : vector<2x32xf32>
    %cst_92 = arith.constant 1.000000e+00 : f32
    %257 = vector.broadcast %cst_92 : f32 to vector<2x32xf32>
    %258 = arith.addf %257, %256 : vector<2x32xf32>
    %259 = arith.divf %257, %258 : vector<2x32xf32>
    %260 = vector.extract_strided_slice %253 {offsets = [0, 32], sizes = [2, 32], strides = [1, 1]} : vector<2x128xf32> to vector<2x32xf32>
    %261 = arith.negf %260 : vector<2x32xf32>
    %262 = math.exp %261 : vector<2x32xf32>
    %cst_93 = arith.constant 1.000000e+00 : f32
    %263 = vector.broadcast %cst_93 : f32 to vector<2x32xf32>
    %264 = arith.addf %263, %262 : vector<2x32xf32>
    %265 = arith.divf %263, %264 : vector<2x32xf32>
    %266 = vector.extract_strided_slice %253 {offsets = [0, 64], sizes = [2, 32], strides = [1, 1]} : vector<2x128xf32> to vector<2x32xf32>
    %267 = math.tanh %266 : vector<2x32xf32>
    %268 = vector.extract_strided_slice %253 {offsets = [0, 96], sizes = [2, 32], strides = [1, 1]} : vector<2x128xf32> to vector<2x32xf32>
    %269 = arith.negf %268 : vector<2x32xf32>
    %270 = math.exp %269 : vector<2x32xf32>
    %cst_94 = arith.constant 1.000000e+00 : f32
    %271 = vector.broadcast %cst_94 : f32 to vector<2x32xf32>
    %272 = arith.addf %271, %270 : vector<2x32xf32>
    %273 = arith.divf %271, %272 : vector<2x32xf32>
    %274 = arith.mulf %265, %215 : vector<2x32xf32>
    %275 = arith.mulf %259, %267 : vector<2x32xf32>
    %276 = arith.addf %274, %275 : vector<2x32xf32>
    %277 = math.tanh %276 : vector<2x32xf32>
    %278 = arith.mulf %273, %277 : vector<2x32xf32>
    %cst_95 = arith.constant dense<0.000000e+00> : vector<8x32xf32>
    %279 = tpu.matmul %108, %278, %cst_95 {dimension_numbers = #tpu.dot_dimension_numbers<[1], [0], [0], [1], [0, 0, 1, 1], [], []>} : vector<8x2xf32>, vector<2x32xf32>, vector<8x32xf32> -> vector<8x32xf32>
    %280 = arith.mulf %279, %101 : vector<8x32xf32>
    %cst_96 = arith.constant dense<0.000000e+00> : vector<8xf32>
    %281 = vector.multi_reduction <add>, %280, %cst_96 [1] : vector<8x32xf32> to vector<8xf32>
    %282 = vector.shape_cast %281 : vector<8xf32> to vector<8x1xf32>
    %cst_97 = arith.constant -1.000000e+30 : f32
    %283 = vector.shape_cast %282 : vector<8x1xf32> to vector<8x1xf32>
    %284 = vector.broadcast %283 : vector<8x1xf32> to vector<8x2xf32>
    %285 = vector.broadcast %cst_97 : f32 to vector<8x2xf32>
    %286 = arith.select %116, %284, %285 : vector<8x2xi1>, vector<8x2xf32>
    %cst_98 = arith.constant dense<0xFF800000> : vector<2xf32>
    %287 = vector.multi_reduction <maximumf>, %286, %cst_98 [0] : vector<8x2xf32> to vector<2xf32>
    %288 = vector.shape_cast %287 : vector<2xf32> to vector<1x2xf32>
    %289 = vector.broadcast %288 : vector<1x2xf32> to vector<8x2xf32>
    %290 = arith.mulf %108, %289 : vector<8x2xf32>
    %cst_99 = arith.constant dense<0.000000e+00> : vector<8xf32>
    %291 = vector.multi_reduction <add>, %290, %cst_99 [1] : vector<8x2xf32> to vector<8xf32>
    %292 = vector.shape_cast %291 : vector<8xf32> to vector<8x1xf32>
    %293 = arith.subf %282, %292 : vector<8x1xf32>
    %294 = math.exp %293 : vector<8x1xf32>
    %295 = vector.broadcast %294 : vector<8x1xf32> to vector<8x2xf32>
    %296 = arith.mulf %108, %295 : vector<8x2xf32>
    %cst_100 = arith.constant dense<0.000000e+00> : vector<2xf32>
    %297 = vector.multi_reduction <add>, %296, %cst_100 [0] : vector<8x2xf32> to vector<2xf32>
    %298 = vector.shape_cast %297 : vector<2xf32> to vector<1x2xf32>
    %299 = vector.broadcast %298 : vector<1x2xf32> to vector<8x2xf32>
    %300 = arith.mulf %108, %299 : vector<8x2xf32>
    %cst_101 = arith.constant dense<0.000000e+00> : vector<8xf32>
    %301 = vector.multi_reduction <add>, %300, %cst_101 [1] : vector<8x2xf32> to vector<8xf32>
    %302 = vector.shape_cast %301 : vector<8xf32> to vector<8x1xf32>
    %303 = tpu.reciprocal %302 {approx = true} : vector<8x1xf32> -> vector<8x1xf32>
    %304 = arith.mulf %294, %303 : vector<8x1xf32>
    %305 = vector.broadcast %304 : vector<8x1xf32> to vector<8x32xf32>
    %306 = arith.mulf %305, %101 : vector<8x32xf32>
    %cst_102 = arith.constant dense<0.000000e+00> : vector<2x32xf32>
    %307 = tpu.matmul %114, %306, %cst_102 {dimension_numbers = #tpu.dot_dimension_numbers<[1], [0], [0], [1], [0, 0, 1, 1], [], []>} : vector<2x8xf32>, vector<8x32xf32>, vector<2x32xf32> -> vector<2x32xf32>
    %c0_103 = arith.constant 0 : index
    %c0_104 = arith.constant 0 : index
    %308 = vector.load %arg22[%c0_103, %c0_104] : memref<2x64xf32, #tpu.memory_space<vmem>>, vector<2x32xf32>
    tpu.vector_store %arg22[%c0_103, %c0_104], %278 {strides = array<i32>} : memref<2x64xf32, #tpu.memory_space<vmem>>, vector<2x32xf32>,
    %c0_105 = arith.constant 0 : index
    %c32 = arith.constant 32 : index
    %309 = vector.load %arg22[%c0_105, %c32] : memref<2x64xf32, #tpu.memory_space<vmem>>, vector<2x32xf32>
    tpu.vector_store %arg22[%c0_105, %c32], %307 {strides = array<i32>} : memref<2x64xf32, #tpu.memory_space<vmem>>, vector<2x32xf32>,
    return
  }
}

</mosaic_0001>

<bundles_post_ra>
// kernel: tpu_custom_call.1
= control target key start
LH: loop header
LB: loop body
LE: loop exit
PB: predicated region body
PF: predicated region fallthrough
CT: control target
= control target key end

     0   :  { %s6567_s0 = inlined_call_operand.hbm [shape: f32[8,16], index: 0, kind: input, shape index: {}]   ;;  %s6568_s1 = inlined_call_operand.vmem [shape: f32[16,8], index: 1, kind: input, shape index: {}]   ;;  %s6569_s2 = inlined_call_operand.vmem [shape: s32[16,1], index: 2, kind: input, shape index: {}]   ;;  %s6570_s3 = inlined_call_operand.vmem [shape: s32[1,16], index: 3, kind: input, shape index: {}]   ;;  %s6571_s4 = inlined_call_operand.vmem [shape: f32[16,1], index: 4, kind: input, shape index: {}]   ;;  %s6572_s5 = inlined_call_operand.vmem [shape: s32[8,1], index: 5, kind: input, shape index: {}]   ;;  %s6573_s6 = inlined_call_operand.hbm [shape: s32[1,8], index: 6, kind: input, shape index: {}]   ;;  %s6574_s7 = inlined_call_operand.hbm [shape: f32[16,32], index: 7, kind: input, shape index: {}]   ;;  %s6575_s8 = inlined_call_operand.hbm [shape: f32[1,32], index: 8, kind: input, shape index: {}]   ;;  %s6576_s9 = inlined_call_operand.hbm [shape: f32[8,32], index: 9, kind: input, shape index: {}]   ;;  %s6577_s10 = inlined_call_operand.vmem [shape: f32[1,32], index: 10, kind: input, shape index: {}]   ;;  %s6578_s11 = inlined_call_operand.hbm [shape: f32[32,1024], index: 11, kind: input, shape index: {}]   ;;  %s6579_s12 = inlined_call_operand.hbm [shape: f32[1,1024], index: 12, kind: input, shape index: {}]   ;;  %s6580_s13 = inlined_call_operand.vmem [shape: f32[32,96], index: 13, kind: input, shape index: {}]   ;;  %s6581_s14 = inlined_call_operand.vmem [shape: f32[32,96], index: 14, kind: input, shape index: {}]   ;;  %s6582_s15 = inlined_call_operand.vmem [shape: f32[1,96], index: 15, kind: input, shape index: {}]   ;;  %s6583_s16 = inlined_call_operand.hbm [shape: f32[1,96], index: 16, kind: input, shape index: {}]   ;;  %s6584_s17 = inlined_call_operand.vmem [shape: f32[32,128], index: 17, kind: input, shape index: {}]   ;;  %s6585_s18 = inlined_call_operand.vmem [shape: f32[32,128], index: 18, kind: input, shape index: {}]   ;;  %s6586_s19 = inlined_call_operand.hbm [shape: f32[32,128], index: 19, kind: input, shape index: {}]   ;;  %s6587_s20 = inlined_call_operand.vmem [shape: f32[1,128], index: 20, kind: input, shape index: {}]   ;;  %s6588_s21 = inlined_call_operand.hbm [shape: f32[8,32], index: 21, kind: output, shape index: {0}]   ;;  %s6589_s22 = inlined_call_operand.hbm [shape: f32[2,64], index: 22, kind: output, shape index: {1}]  }
   0x1   :  { %6675 = sst [smem:[#allocation38_spill]] %s6567_s0 }
   0x2   :  { %6676 = sst [smem:[#allocation39_spill]] %s6568_s1 }
   0x3   :  { %6677 = sst [smem:[#allocation40_spill]] %s6569_s2 }
   0x4   :  { %6678 = sst [smem:[#allocation41_spill]] %s6570_s3 }
   0x5   :  { %6679 = sst [smem:[#allocation42_spill]] %s6571_s4 }
   0x6   :  { %6680 = sst [smem:[#allocation43_spill]] %s6572_s5 }
   0x7   :  { %6681 = sst [smem:[#allocation44_spill]] %s6573_s6 }
   0x8   :  { %28 = vsyncpa [#allocation3], 0 }
   0x9   :  { %29 = vsyncpa [#allocation6], 0 }
   0xa   :  { %30 = vsyncpa [#allocation9], 0 }
   0xb   :  { %31 = vsyncpa [#allocation12], 0 }
   0xc   :  { %32 = vsyncpa [#allocation15], 0 }
   0xd   :  { %33 = vsyncpa [#allocation4], 0 }
   0xe   :  { %34 = vsyncpa [#allocation19], 0  ;;  %s4393_s3 = smov [#allocation5]   ;;  %s4394_s29 = smov [#allocation8]  }
   0xf   :  { %s61_s28 = sshll.u32 %s4393_s3, 4  ;;  %s83_s30 = sshll.u32 %s4394_s29, 4  ;;  %s62_s28 = int_to_ptr.vmem [resolvable:$true] %s61_s28  ;;  %s84_s30 = int_to_ptr.vmem [resolvable:$true] %s83_s30 }
  0x10   :  { %s6682_s23 = sld [smem:[#allocation44_spill]] }
  0x16   :  { %s4137_s1 = scalar_lea.hbm %s6682_s23, 16 }
  0x17   :  { %p4138_p0 = scmp.ne.s32.totalorder %s6682_s23, %s4137_s1  ;;  %p4141_p1 = scmp.lt.u32.totalorder %s4137_s1, %s6682_s23 }
  0x19   :  { %p4143_p2 = pnand %p4141_p1, %p4138_p0 }
  0x1b   :  { %4146 = shalt.err (!%p4143_p2)
}
  0x1c   :  { %s4147_s26 = scalar_lea.vmem %s62_s28, 16  ;;  %s4151_s2 = scalar_lea.vmem %s62_s28, 32 }
  0x1d   :  { %p4148_p3 = scmp.ne.s32.totalorder %s62_s28, %s4147_s26  ;;  %p4152_p4 = scmp.lt.s32.totalorder %s62_s28, %s62_s28 }
  0x1e   :  { %p4153_p5 = scmp.lt.s32.totalorder %s4151_s2, %s4147_s26 }
  0x20   :  { %p4154_p6 = por %p4153_p5, %p4152_p4 }
  0x22   :  { %p4155_p7 = pnand %p4154_p6, %p4148_p3 }
  0x24   :  { %4158 = shalt.err (!%p4155_p7)
}
  0x25   :  { %64 = dma.hbm_to_vmem [thread:$0]  %s6682_s23, 16, %s62_s28, [#allocation6]  }
  0x26   :  { %s4159_s0 = scalar_lea.hbm %s6575_s8, 16 }
  0x27   :  { %p4160_p8 = scmp.ne.s32.totalorder %s6575_s8, %s4159_s0  ;;  %p4163_p9 = scmp.lt.u32.totalorder %s4159_s0, %s6575_s8 }
  0x29   :  { %p4165_p10 = pnand %p4163_p9, %p4160_p8 }
  0x2b   :  { %4168 = shalt.err (!%p4165_p10)
}
  0x2c   :  { %s4169_s25 = scalar_lea.vmem %s84_s30, 16  ;;  %s4173_s26 = scalar_lea.vmem %s84_s30, 32 }
  0x2d   :  { %p4170_p11 = scmp.ne.s32.totalorder %s84_s30, %s4169_s25  ;;  %p4174_p12 = scmp.lt.s32.totalorder %s84_s30, %s84_s30 }
  0x2e   :  { %p4175_p13 = scmp.lt.s32.totalorder %s4173_s26, %s4169_s25 }
  0x30   :  { %p4176_p0 = por %p4175_p13, %p4174_p12 }
  0x32   :  { %p4177_p1 = pnand %p4176_p0, %p4170_p11 }
  0x34   :  { %4180 = shalt.err (!%p4177_p1)
}
  0x35   :  { %86 = dma.hbm_to_vmem [thread:$0]  %s6575_s8, 16, %s84_s30, [#allocation9]  }
  0x36   :  { %s4395_s2 = smov [#allocation11]   ;;  %s4181_s4 = scalar_lea.hbm %s6578_s11, 4096 }
  0x37   :  { %s104_s27 = sshll.u32 %s4395_s2, 4  ;;  %p4182_p2 = scmp.ne.s32.totalorder %s6578_s11, %s4181_s4  ;;  %s105_s27 = int_to_ptr.vmem [resolvable:$true] %s104_s27 }
  0x38   :  { %p4185_p3 = scmp.lt.u32.totalorder %s4181_s4, %s6578_s11 }
  0x3a   :  { %p4187_p4 = pnand %p4185_p3, %p4182_p2 }
  0x3c   :  { %4190 = shalt.err (!%p4187_p4)
}
  0x3d   :  { %s4191_s6 = scalar_lea.vmem %s105_s27, 4096  ;;  %p4196_p6 = scmp.lt.s32.totalorder %s105_s27, %s105_s27 }
  0x3e   :  { %p4192_p5 = scmp.ne.s32.totalorder %s105_s27, %s4191_s6  ;;  %p4197_p7 = scmp.lt.s32.totalorder %s4191_s6, %s4191_s6 }
  0x40   :  { %p4198_p8 = por %p4197_p7, %p4196_p6 }
  0x42   :  { %p4199_p9 = pnand %p4198_p8, %p4192_p5 }
  0x44   :  { %4202 = shalt.err (!%p4199_p9)
}
  0x45   :  { %s4396_s8 = smov 1024   ;;  %s4397_s30 = smov 64  }
  0x46   :  { %110 = dma.hbm_to_vmem [thread:$0]  %s6578_s11, 4096, %s105_s27, [#allocation12], %s4396_s8, %s4396_s8, %s4397_s30  }
  0x47   :  { %s4398_s28 = smov [#allocation14]   ;;  %s4399_s2 = smov [#allocation2]  }
  0x48   :  { %s133_s23 = sshll.u32 %s4398_s28, 4  ;;  %s41_s3 = sshll.u32 %s4399_s2, 4  ;;  %s134_s23 = int_to_ptr.vmem [resolvable:$true] %s133_s23  ;;  %s42_s3 = int_to_ptr.vmem [resolvable:$true] %s41_s3 }
  0x49   :  { %s4203_s0 = scalar_lea.hbm %s6583_s16, 16 }
  0x4a   :  { %p4204_p10 = scmp.ne.s32.totalorder %s6583_s16, %s4203_s0  ;;  %p4207_p11 = scmp.lt.u32.totalorder %s4203_s0, %s6583_s16 }
  0x4c   :  { %p4209_p12 = pnand %p4207_p11, %p4204_p10 }
  0x4e   :  { %4212 = shalt.err (!%p4209_p12)
}
  0x4f   :  { %s4213_s11 = scalar_lea.vmem %s134_s23, 16  ;;  %s4217_s27 = scalar_lea.vmem %s134_s23, 32 }
  0x50   :  { %p4214_p13 = scmp.ne.s32.totalorder %s134_s23, %s4213_s11  ;;  %p4218_p0 = scmp.lt.s32.totalorder %s134_s23, %s134_s23 }
  0x51   :  { %p4219_p1 = scmp.lt.s32.totalorder %s4217_s27, %s4213_s11 }
  0x53   :  { %p4220_p2 = por %p4219_p1, %p4218_p0 }
  0x55   :  { %p4221_p3 = pnand %p4220_p2, %p4214_p13 }
  0x57   :  { %4224 = shalt.err (!%p4221_p3)
}
  0x58   :  { %136 = dma.hbm_to_vmem [thread:$0]  %s6583_s16, 16, %s134_s23, [#allocation15]  }
  0x59   :  { %s6683_s2 = sld [smem:[#allocation38_spill]] }
  0x5f   :  { %s4225_s29 = scalar_lea.hbm %s6683_s2, 128 }
  0x60   :  { %p4226_p4 = scmp.ne.s32.totalorder %s6683_s2, %s4225_s29  ;;  %p4229_p5 = scmp.lt.u32.totalorder %s4225_s29, %s6683_s2 }
  0x62   :  { %p4231_p6 = pnand %p4229_p5, %p4226_p4 }
  0x64   :  { %4234 = shalt.err (!%p4231_p6)
}
  0x65   :  { %s4235_s24 = scalar_lea.vmem %s42_s3, 128  ;;  %p4240_p8 = scmp.lt.s32.totalorder %s42_s3, %s42_s3 }
  0x66   :  { %p4236_p7 = scmp.ne.s32.totalorder %s42_s3, %s4235_s24  ;;  %p4241_p9 = scmp.lt.s32.totalorder %s4235_s24, %s4235_s24 }
  0x68   :  { %p4242_p10 = por %p4241_p9, %p4240_p8 }
  0x6a   :  { %p4243_p11 = pnand %p4242_p10, %p4236_p7 }
  0x6c   :  { %4246 = shalt.err (!%p4243_p11)
}
  0x6d   :  { %44 = dma.hbm_to_vmem [thread:$0]  %s6683_s2, 128, %s42_s3, [#allocation3]  }
  0x6e   :  { %s4400_s6 = smov [#allocation7]   ;;  %s4247_s25 = scalar_lea.hbm %s6574_s7, 256 }
  0x6f   :  { %s70_s11 = sshll.u32 %s4400_s6, 4  ;;  %p4248_p12 = scmp.ne.s32.totalorder %s6574_s7, %s4247_s25  ;;  %s71_s11 = int_to_ptr.vmem [resolvable:$true] %s70_s11 }
  0x70   :  { %p4251_p13 = scmp.lt.u32.totalorder %s4247_s25, %s6574_s7 }
  0x72   :  { %p4253_p0 = pnand %p4251_p13, %p4248_p12 }
  0x74   :  { %4256 = shalt.err (!%p4253_p0)
}
  0x75   :  { %s4257_s0 = scalar_lea.vmem %s71_s11, 256  ;;  %p4262_p2 = scmp.lt.s32.totalorder %s71_s11, %s71_s11 }
  0x76   :  { %p4258_p1 = scmp.ne.s32.totalorder %s71_s11, %s4257_s0  ;;  %p4263_p3 = scmp.lt.s32.totalorder %s4257_s0, %s4257_s0 }
  0x78   :  { %p4264_p4 = por %p4263_p3, %p4262_p2 }
  0x7a   :  { %p4265_p5 = pnand %p4264_p4, %p4258_p1 }
  0x7c   :  { %4268 = shalt.err (!%p4265_p5)
}
  0x7d   :  { %s4401_s3 = smov 128   ;;  %s4402_s2 = smov 8  }
  0x7e   :  { %76 = dma.hbm_to_vmem [thread:$0]  %s6574_s7, 256, %s71_s11, [#allocation6], %s4401_s3, %s4401_s3, %s4402_s2  }
  0x7f   :  { %s4403_s24 = smov [#allocation10]   ;;  %s4404_s23 = smov [#allocation13]  }
  0x80   :  { %s93_s16 = sshll.u32 %s4403_s24, 4  ;;  %s117_s6 = sshll.u32 %s4404_s23, 4  ;;  %s94_s16 = int_to_ptr.vmem [resolvable:$true] %s93_s16  ;;  %s118_s6 = int_to_ptr.vmem [resolvable:$true] %s117_s6 }
  0x81   :  { %s4269_s25 = scalar_lea.hbm %s6576_s9, 128 }
  0x82   :  { %p4270_p6 = scmp.ne.s32.totalorder %s6576_s9, %s4269_s25  ;;  %p4273_p7 = scmp.lt.u32.totalorder %s4269_s25, %s6576_s9 }
  0x84   :  { %p4275_p8 = pnand %p4273_p7, %p4270_p6 }
  0x86   :  { %4278 = shalt.err (!%p4275_p8)
}
  0x87   :  { %s4279_s7 = scalar_lea.vmem %s94_s16, 128  ;;  %p4284_p10 = scmp.lt.s32.totalorder %s94_s16, %s94_s16 }
  0x88   :  { %p4280_p9 = scmp.ne.s32.totalorder %s94_s16, %s4279_s7  ;;  %p4285_p11 = scmp.lt.s32.totalorder %s4279_s7, %s4279_s7 }
  0x8a   :  { %p4286_p12 = por %p4285_p11, %p4284_p10 }
  0x8c   :  { %p4287_p13 = pnand %p4286_p12, %p4280_p9 }
  0x8e   :  { %4290 = shalt.err (!%p4287_p13)
}
  0x8f   :  { %96 = dma.hbm_to_vmem [thread:$0]  %s6576_s9, 128, %s94_s16, [#allocation9]  }
  0x90   :  { %s4291_s24 = scalar_lea.hbm %s6579_s12, 128 }
  0x91   :  { %p4292_p0 = scmp.ne.s32.totalorder %s6579_s12, %s4291_s24  ;;  %p4295_p1 = scmp.lt.u32.totalorder %s4291_s24, %s6579_s12 }
  0x93   :  { %p4297_p2 = pnand %p4295_p1, %p4292_p0 }
  0x95   :  { %4300 = shalt.err (!%p4297_p2)
}
  0x96   :  { %s4301_s26 = scalar_lea.vmem %s118_s6, 128  ;;  %p4306_p4 = scmp.lt.s32.totalorder %s118_s6, %s118_s6 }
  0x97   :  { %p4302_p3 = scmp.ne.s32.totalorder %s118_s6, %s4301_s26  ;;  %p4307_p5 = scmp.lt.s32.totalorder %s4301_s26, %s4301_s26 }
  0x99   :  { %p4308_p6 = por %p4307_p5, %p4306_p4 }
  0x9b   :  { %p4309_p7 = pnand %p4308_p6, %p4302_p3 }
  0x9d   :  { %4312 = shalt.err (!%p4309_p7)
}
  0x9e   :  { %120 = dma.hbm_to_vmem [thread:$0]  %s6579_s12, 128, %s118_s6, [#allocation12]  }
  0x9f   :  { %s4405_s28 = smov [#allocation16]   ;;  %s4313_s11 = scalar_lea.hbm %s6586_s19, 512 }
  0xa0   :  { %s146_s29 = sshll.u32 %s4405_s28, 4  ;;  %p4314_p8 = scmp.ne.s32.totalorder %s6586_s19, %s4313_s11  ;;  %s147_s29 = int_to_ptr.vmem [resolvable:$true] %s146_s29 }
  0xa1   :  { %p4317_p9 = scmp.lt.u32.totalorder %s4313_s11, %s6586_s19 }
  0xa3   :  { %p4319_p10 = pnand %p4317_p9, %p4314_p8 }
  0xa5   :  { %4322 = shalt.err (!%p4319_p10)
}
  0xa6   :  { %s4323_s23 = scalar_lea.vmem %s147_s29, 512  ;;  %p4328_p12 = scmp.lt.s32.totalorder %s147_s29, %s147_s29 }
  0xa7   :  { %p4324_p11 = scmp.ne.s32.totalorder %s147_s29, %s4323_s23  ;;  %p4329_p13 = scmp.lt.s32.totalorder %s4323_s23, %s4323_s23 }
  0xa9   :  { %p4330_p0 = por %p4329_p13, %p4328_p12 }
  0xab   :  { %p4331_p1 = pnand %p4330_p0, %p4324_p11 }
  0xad   :  { %4334 = shalt.err (!%p4331_p1)
}
  0xae   :  { %152 = dma.hbm_to_vmem [thread:$0]  %s6586_s19, 512, %s147_s29, [#allocation15], %s4401_s3, %s4401_s3, %s4402_s2  }
  0xaf   :  { %4379 = dma.done.wait [#allocation3], 128  }
  0xb0   :  { %4380 = vsyncadd [#allocation3], 4294967168 }
  0xb1   :  { %4381 = dma.done.wait [#allocation6], 272  }
  0xb2   :  { %4382 = vsyncadd [#allocation6], 4294967024 }
  0xb3   :  { %4383 = dma.done.wait [#allocation9], 144  }
  0xb4   :  { %4384 = vsyncadd [#allocation9], 4294967152 }
  0xb5   :  { %4385 = dma.done.wait [#allocation12], 4224  }
  0xb6   :  { %4386 = vsyncadd [#allocation12], 4294963072 }
  0xb7   :  { %4387 = dma.done.wait [#allocation15], 528  }
  0xb8   :  { %4388 = vsyncadd [#allocation15], 4294966768  ;;  %v6604_v0 = vmov 0.0|0.0   ;;  %vm6597_vm0 = vmmov 0   ;;  %v6606_v1 = vmov 0.0   ;;  %v4409_v2 = vmov 0  }
  0xb9   :  { %4002 = vmatprep.subr.bf16.mxu0 %v6604_v0  ;;  %3831 = vmatprep.mubr.msk.f32.mxu0 %vm6597_vm0, %v6606_v1  ;;  %vm6595_vm1 = vcmask 64512   ;;  %v1133_v3 = vld [vmem:[#allocation10] sm:$0xff]  ;;  %s6684_s2 = sld [smem:[#allocation39_spill]]  ;;  %v1048_v6 = vld [vmem:[#allocation7] sm:$0xff]  ;;  %v1049_v7 = vld [vmem:[#allocation7 + $0x8] sm:$0xff]  ;;  %s6685_s9 = sld [smem:[#allocation40_spill]] }
  0xba   :  { %4093 = vset.pattern.permute.xlu0 %v4409_v2  ;;  %4094 = vset.pattern.permute.xlu1 %v4409_v2  ;;  %v4003_v8 = vpack.c.bf16 %v1049_v7, %v1048_v6  ;;  %v1047_v10 = vld [vmem:[#allocation2] sm:$0xff]  ;;  %vm6596_vm2 = vcmask 130048   ;;  %v1227_v12 = vld [vmem:[#allocation11 + $0x8] sm:$0xff]  ;;  %v1228_v21 = vld [vmem:[#allocation11 + $0x10] sm:$0xff]  ;;  %vm6599_vm3 = vcmask 261120   ;;  %vm1506_vm4 = vcmask 1043456  }
  0xbb   :  { %3834 = vmatprep.subr.mxu1 %v1133_v3  ;;  %v1235_v13 = vld [vmem:[#allocation11 + $0x48] sm:$0xff]  ;;  %v1229_v14 = vld [vmem:[#allocation11 + $0x18] sm:$0xff]  ;;  %v1226_v17 = vld [vmem:[#allocation11] sm:$0xff]  ;;  %s6689_s0 = sld [smem:[#allocation42_spill]]  ;;  %s7040_s25 = sld [smem:[#allocation41_spill]] }
  0xbc   :  { %3835 = vmatpush3.msra.mxu1 %v1133_v3  ;;  %4004 = vmatpush3.bf16.msra.mxu0 %v4003_v8  ;;  %v1259_v15 = vpack.c.bf16 %v1235_v13, %v1227_v12  ;;  %v1237_v16 = vld [vmem:[#allocation11 + $0x58] sm:$0xff]  ;;  %v1234_v18 = vld [vmem:[#allocation11 + $0x40] sm:$0xff]  ;;  %v1236_v22 = vld [vmem:[#allocation11 + $0x50] sm:$0xff]  ;;  %s7045_s16 = sld [smem:[#allocation43_spill]] }
  0xbd   :  { %v1261_v19 = vpack.c.bf16 %v1237_v16, %v1229_v14  ;;  %v1258_v20 = vpack.c.bf16 %v1234_v18, %v1226_v17  ;;  %v1260_v23 = vpack.c.bf16 %v1236_v22, %v1228_v21  ;;  %v1243_v24 = vld [vmem:[#allocation11 + $0x88] sm:$0xff]  ;;  %v1245_v26 = vld [vmem:[#allocation11 + $0x98] sm:$0xff]  ;;  %v1242_v29 = vld [vmem:[#allocation11 + $0x80] sm:$0xff] }
  0xbe   :  { %1320 = vmatprep.subr.bf16.mxu1 %v1259_v15  ;;  %v1251_v25 = vld [vmem:[#allocation11 + $0xc8] sm:$0xff]  ;;  %v1253_v28 = vld [vmem:[#allocation11 + $0xd8] sm:$0xff]  ;;  %v1250_v30 = vld [vmem:[#allocation11 + $0xc0] sm:$0xff] }
  0xbf   :  { %v1131_v4 = vld [vmem:[%s6684_s2] sm:$0xff]  ;;  %v1132_v5 = vld [vmem:[%s6684_s2 + $0x8] sm:$0xff]  ;;  %3832 = vmatmul.mubr.msk.f32.vlgmr.msra.gmra.mrb[0].mxu0 %vm6596_vm2, %v1047_v10  ;;  %1363 = vmatprep.subr.bf16.mxu0 %v1261_v19  ;;  %v1267_v27 = vpack.c.bf16 %v1251_v25, %v1243_v24  ;;  %v1269_v31 = vpack.c.bf16 %v1253_v28, %v1245_v26  ;;  %v1266_v32 = vpack.c.bf16 %v1250_v30, %v1242_v29  ;;  %v1244_v33 = vld [vmem:[#allocation11 + $0x90] sm:$0xff]  ;;  %v183_v10 = vlaneseq }
  0xc0   :  { %3836 = vmatprep.mubr.msk.f32.mxu1 %vm6595_vm1, %v1131_v4  ;;  %v185_v9 = vld [vmem:[%s6685_s9] sm:$0xff]  ;;  %v186_v11 = vld [vmem:[%s6685_s9 + $0x8] sm:$0xff]  ;;  %1395 = vmatprep.mubr.bf16.mxu0 %v4409_v2  ;;  %v1252_v34 = vld [vmem:[#allocation11 + $0xd0] sm:$0xff] }
  0xc1   :  { %3837 = vmatmul.mubr.msk.f32.vlgmr.msra.gmra.mrb[0].mxu1 %vm6595_vm1, %v1132_v5  ;;  %188 = vperm.xlu0 %4093, %v185_v9   ;;  %v1268_v35 = vpack.c.bf16 %v1252_v34, %v1244_v33  ;;  %v1231_v36 = vld [vmem:[#allocation11 + $0x28] sm:$0xff]  ;;  %v1233_v38 = vld [vmem:[#allocation11 + $0x38] sm:$0xff]  ;;  %v1230_v46 = vld [vmem:[#allocation11 + $0x20] sm:$0xff]  ;;  %v4678_v14 = vand.u32 127, %v183_v10  ;;  %v4707_v28 = vshrl.u32 %v183_v10, 7 }
  0xc2   :  { %1352 = vmatprep.mubr.bf16.mxu1 %v4409_v2  ;;  %1321 = vmatpush1.bf16.msra.mxu1 %v1258_v20  ;;  %v1239_v37 = vld [vmem:[#allocation11 + $0x68] sm:$0xff]  ;;  %v1241_v40 = vld [vmem:[#allocation11 + $0x78] sm:$0xff]  ;;  %v1238_v47 = vld [vmem:[#allocation11 + $0x60] sm:$0xff] }
  0xc3   :  { %1364 = vmatpush1.bf16.msra.mxu0 %v1260_v23  ;;  %1322 = vmatprep.subr.bf16.mxu1 %v1267_v27  ;;  %v1263_v39 = vpack.c.bf16 %v1239_v37, %v1231_v36  ;;  %v1265_v41 = vpack.c.bf16 %v1241_v40, %v1233_v38  ;;  %v3498_v42 = vld [vmem:[%s6577_s10] ss:$0 sm:$0xff]  ;;  %v1232_v48 = vld [vmem:[#allocation11 + $0x30] sm:$0xff]  ;;  %v1247_v51 = vld [vmem:[#allocation11 + $0xa8] sm:$0xff]  ;;  %v1262_v59 = vpack.c.bf16 %v1238_v47, %v1230_v46  ;;  %v469_v27 = vadd.s32 1, %v4678_v14  ;;  %s4411_s10 = smov 32  }
  0xc4   :  { %1365 = vmatprep.subr.bf16.mxu0 %v1269_v31  ;;  %v1240_v50 = vld [vmem:[#allocation11 + $0x70] sm:$0xff]  ;;  %v1255_v52 = vld [vmem:[#allocation11 + $0xe8] sm:$0xff]  ;;  %v1249_v54 = vld [vmem:[#allocation11 + $0xb8] sm:$0xff]  ;;  %6687 = vst [vmem:[#allocation28_spill] sm:$0xff] %v4678_v14  ;;  %v4710_v29 = vmul.u32 32, %v4678_v14  ;;  %v229_v36 = vadd.s32 136, %v4707_v28 }
  0xc5   :  { %191 = vperm.xlu0 %4093, %v186_v11   ;;  %v1257_v55 = vld [vmem:[#allocation11 + $0xf8] sm:$0xff]  ;;  %v3496_v56 = vld [vmem:[#allocation8] ss:$0 sm:$0xff]  ;;  %v1264_v60 = vpack.c.bf16 %v1240_v50, %v1232_v48  ;;  %v1246_v61 = vld [vmem:[#allocation11 + $0xa0] sm:$0xff]  ;;  %v1271_v3 = vpack.c.bf16 %v1255_v52, %v1247_v51  ;;  %v4712_v30 = vmul.u32 32, %v469_v27  ;;  %v245_v47 = vadd.s32 264, %v4707_v28 }
  0xc6   :  { %1323 = vmatpush1.bf16.msra.mxu1 %v1266_v32  ;;  %v1273_v4 = vpack.c.bf16 %v1257_v55, %v1249_v54  ;;  %v1254_v5 = vld [vmem:[#allocation11 + $0xe0] sm:$0xff]  ;;  %v1248_v6 = vld [vmem:[#allocation11 + $0xb0] sm:$0xff]  ;;  %vm358_vm8 = vcmp.ge.s32.totalorder %v229_v36, %v4710_v29  ;;  %v6608_v46 = vmov 1.0|1.0   ;;  %v230_v50 = vadd.s32 144, %v4707_v28 }
  0xc7   :  { %1366 = vmatpush1.bf16.msra.mxu0 %v1268_v35  ;;  %1406 = vmatprep.subr.bf16.mxu1 %v1263_v39  ;;  %v1256_v7 = vld [vmem:[#allocation11 + $0xf0] sm:$0xff]  ;;  %v1270_v11 = vpack.c.bf16 %v1254_v5, %v1246_v61  ;;  %v228_v35 = vadd.s32 128, %v4707_v28  ;;  %v260_v39 = vadd.s32 384, %v4707_v28  ;;  %vm488_vm10 = vcmp.lt.s32.totalorder %v229_v36, %v4712_v30 }
  0xc8   :  { %1449 = vmatprep.subr.bf16.mxu0 %v1265_v41  ;;  %v1272_v12 = vpack.c.bf16 %v1256_v7, %v1248_v6  ;;  %vm616_vm14 = vmand %vm358_vm8, %vm488_vm10  ;;  %v231_v52 = vadd.s32 152, %v4707_v28  ;;  %v263_v54 = vadd.s32 408, %v4707_v28  ;;  %v214_v55 = vadd.s32 16, %v4707_v28 }
  0xc9   :  { %vm357_vm7 = vcmp.ge.s32.totalorder %v228_v35, %v4710_v29  ;;  %vm487_vm9 = vcmp.lt.s32.totalorder %v228_v35, %v4712_v30  ;;  %vm389_vm12 = vcmp.ge.s32.totalorder %v260_v39, %v4710_v29  ;;  %vm519_vm13 = vcmp.lt.s32.totalorder %v260_v39, %v4712_v30 }
  0xca   :  { %vm615_vm11 = vmand %vm357_vm7, %vm487_vm9  ;;  %vm341_vm7 = vcmp.ge.s32.totalorder %v4707_v28, %v4710_v29  ;;  %vm471_vm9 = vcmp.lt.s32.totalorder %v4707_v28, %v4712_v30  ;;  %v264_v61 = vadd.s32 416, %v4707_v28  ;;  %v249_v5 = vadd.s32 296, %v4707_v28 }
  0xcb   :  { %vm3522_vm15 = vmpackc.low %vm616_vm14, %vm615_vm11  ;;  %v234_v6 = vadd.s32 176, %v4707_v28  ;;  %v235_v7 = vadd.s32 184, %v4707_v28  ;;  %v267_v10 = vadd.s32 440, %v4707_v28  ;;  %v220_v27 = vadd.s32 64, %v4707_v28 }
  0xcc   :  { %v221_v35 = vadd.s32 72, %v4707_v28  ;;  %v252_v36 = vadd.s32 320, %v4707_v28  ;;  %v253_v39 = vadd.s32 328, %v4707_v28  ;;  %v5445_v0 = vadd.s32 728, %v4707_v28 }
 0x140   :  { %v189_v9 = vpop.permute.xlu0 %188 }
 0x141   :  { %vm193_vm5 = vcmp.eq.s32.totalorder %v4678_v14, %v189_v9  ;;  %v266_v9 = vadd.s32 432, %v4707_v28 }
 0x144   :  { %v192_v15 = vpop.permute.xlu0 %191 }
 0x145   :  { %vm194_vm6 = vcmp.eq.s32.totalorder %v4678_v14, %v192_v15  ;;  %v251_v15 = vadd.s32 312, %v4707_v28  ;;  %v6758_v14 = vmov 0 }
 0x146   :  { %v3365_v17 = vsel %vm194_vm6, 1.0, %v6606_v1  ;;  %vm647_vm6 = vmand %vm389_vm12, %vm519_vm13 }
 0x147   :  { %vm599_vm13 = vmand %vm341_vm7, %vm471_vm9  ;;  %vm359_vm9 = vcmp.ge.s32.totalorder %v230_v50, %v4710_v29 }
 0x192   :  { %v1127_v58 = vpop.f32.mrb[0].mxu0 }
 0x193   :  { %v3833_v62 = vpop.f32.mrb[1].mxu0  ;;  %v4670_v8 = vadd.f32 %v3496_v56, %v1127_v58  ;;  %v215_v56 = vadd.s32 24, %v4707_v28  ;;  %v247_v58 = vadd.s32 280, %v4707_v28 }
 0x194   :  { %v3838_v43 = vpop.f32.mrb[0].mxu1  ;;  %v265_v62 = vadd.s32 424, %v4707_v28 }
 0x195   :  { %v1220_v44 = vadd.f32 %v3838_v43, %v3498_v42  ;;  %v1214_v45 = vpop.f32.mrb[1].mxu1  ;;  %6686 = vst [vmem:[#allocation27_spill] sm:$0xff] %v4670_v8  ;;  %v1502_v13 = vpack.c.bf16 %v4670_v8, %v4670_v8  ;;  %v213_v43 = vadd.s32 8, %v4707_v28  ;;  %v6775_v8 = vmov 0 }
 0x196   :  { %v1215_v49 = vadd.f32 %v3498_v42, %v1214_v45  ;;  %v261_v42 = vadd.s32 392, %v4707_v28 }
 0x197   :  { %v1224_v53 = vmax.f32 %v1220_v44, 0.0  ;;  %v1508_v16 = vsel %vm1506_vm4, %v1502_v13, 0  ;;  %v244_v44 = vadd.s32 256, %v4707_v28  ;;  %vm342_vm10 = vcmp.ge.s32.totalorder %v213_v43, %v4710_v29 }
 0x198   :  { %v1223_v57 = vmax.f32 %v1215_v49, 0.0  ;;  %vm390_vm4 = vcmp.ge.s32.totalorder %v261_v42, %v4710_v29  ;;  %vm472_vm11 = vcmp.lt.s32.totalorder %v213_v43, %v4712_v30  ;;  %v250_v13 = vadd.s32 304, %v4707_v28 }
 0x199   :  { %vm373_vm14 = vcmp.ge.s32.totalorder %v244_v44, %v4710_v29  ;;  %v239_v43 = vadd.s32 216, %v4707_v28 }
 0x19a   :  { %v1225_v63 = vpack.c.bf16 %v1224_v53, %v1223_v57  ;;  %v262_v53 = vadd.s32 400, %v4707_v28  ;;  %v246_v57 = vadd.s32 272, %v4707_v28 }
 0x19c   :  { %3501 = vmatmul.mubr.msk.bf16.vlgmr.msra.gmra.mrb[4].mxu1 %vm6599_vm3, %v1225_v63  ;;  %3502 = vmatmul.mubr.msk.bf16.vlgmr.msra.gmra.mrb[4].mxu0 %vm6599_vm3, %v1225_v63 }
 0x19d   :  { %1407 = vmatpush1.bf16.msra.mxu1 %v1262_v59  ;;  %1450 = vmatpush1.bf16.msra.mxu0 %v1264_v60  ;;  %v232_v59 = vadd.s32 160, %v4707_v28  ;;  %v233_v60 = vadd.s32 168, %v4707_v28 }
 0x19e   :  { %1408 = vmatprep.subr.bf16.mxu1 %v1271_v3  ;;  %1451 = vmatprep.subr.bf16.mxu0 %v1273_v4  ;;  %v217_v3 = vadd.s32 40, %v4707_v28  ;;  %v248_v4 = vadd.s32 288, %v4707_v28 }
 0x19f   :  { %1438 = vmatprep.mubr.bf16.mxu1 %v4409_v2  ;;  %1481 = vmatprep.mubr.bf16.mxu0 %v4409_v2  ;;  %v3364_v2 = vsel %vm193_vm5, 1.0, %v6606_v1  ;;  %vm520_vm5 = vcmp.lt.s32.totalorder %v261_v42, %v4712_v30  ;;  %v238_v42 = vadd.s32 208, %v4707_v28 }
 0x1a0   :  { %v199_v18 = vpack.c.bf16 %v3365_v17, %v3364_v2  ;;  %vm648_vm8 = vmand %vm390_vm4, %vm520_vm5  ;;  %vm374_vm5 = vcmp.ge.s32.totalorder %v245_v47, %v4710_v29  ;;  %v237_v2 = vadd.s32 200, %v4707_v28  ;;  %v268_v17 = vadd.s32 448, %v4707_v28 }
 0x1a1   :  { %1409 = vmatpush1.bf16.msra.mxu1 %v1270_v11  ;;  %1452 = vmatpush1.bf16.msra.mxu0 %v1272_v12  ;;  %vm3554_vm12 = vmpackc.low %vm648_vm8, %vm647_vm6  ;;  %vm489_vm8 = vcmp.lt.s32.totalorder %v230_v50, %v4712_v30  ;;  %v218_v11 = vadd.s32 48, %v4707_v28  ;;  %v219_v12 = vadd.s32 56, %v4707_v28  ;;  %v223_v50 = vadd.s32 88, %v4707_v28 }
 0x1a2   :  { %3839 = vmatprep.subr.bf16.mxu1 %v6606_v1  ;;  %3670 = vmatprep.subr.msk.bf16.mxu0 %vm3522_vm15, %v6608_v46  ;;  %vm503_vm15 = vcmp.lt.s32.totalorder %v244_v44, %v4712_v30  ;;  %vm600_vm4 = vmand %vm342_vm10, %vm472_vm11  ;;  %vm360_vm11 = vcmp.ge.s32.totalorder %v231_v52, %v4710_v29  ;;  %v270_v44 = vadd.s32 464, %v4707_v28 }
 0x1a3   :  { %vm3506_vm6 = vmpackc.low %vm600_vm4, %vm599_vm13  ;;  %vm391_vm4 = vcmp.ge.s32.totalorder %v262_v53, %v4710_v29 }
 0x1a4   :  { %3503 = vmatmul.mubr.msk.bf16.vlgmr.msra.gmra.mrb[8].mxu1 %vm6599_vm3, %v1225_v63  ;;  %3504 = vmatmul.mubr.msk.bf16.vlgmr.msra.gmra.mrb[8].mxu0 %vm6599_vm3, %v1225_v63  ;;  %vm631_vm7 = vmand %vm373_vm14, %vm503_vm15  ;;  %vm521_vm14 = vcmp.lt.s32.totalorder %v262_v53, %v4712_v30  ;;  %v216_v63 = vadd.s32 32, %v4707_v28  ;;  %v240_v53 = vadd.s32 224, %v4707_v28 }
 0x1a5   :  { %3840 = vmatpush3.bf16.msra.mxu1 %v1508_v16  ;;  %3841 = vmatprep.mubr.msk.bf16.mxu1 %vm6597_vm0, %v6606_v1  ;;  %vm617_vm13 = vmand %vm359_vm9, %vm489_vm8  ;;  %vm473_vm9 = vcmp.lt.s32.totalorder %v214_v55, %v4712_v30  ;;  %v236_v16 = vadd.s32 192, %v4707_v28  ;;  %v5462_v1 = vadd.s32 976, %v4707_v28 }
 0x1a6   :  { %3692 = vmatprep.subr.msk.bf16.mxu1 %vm3554_vm12, %v6608_v46  ;;  %3671 = vmatpush3.bf16.msk.msra.mxu0 %vm3506_vm6, %v6608_v46  ;;  %vm490_vm12 = vcmp.lt.s32.totalorder %v231_v52, %v4712_v30  ;;  %vm392_vm6 = vcmp.ge.s32.totalorder %v263_v54, %v4710_v29  ;;  %v255_v52 = vadd.s32 344, %v4707_v28 }
 0x1a7   :  { %vm618_vm15 = vmand %vm360_vm11, %vm490_vm12  ;;  %vm474_vm11 = vcmp.lt.s32.totalorder %v215_v56, %v4712_v30 }
 0x1a8   :  { %vm514_vm0 = vcmp.lt.s32.totalorder %v255_v52, %v4712_v30 }
 0x1ac   :  { %3842 = vmatmul.mubr.msk.bf16.vlgmr.msra.gmra.mrb[12].mxu1 %vm6595_vm1, %v199_v18  ;;  %vm504_vm1 = vcmp.lt.s32.totalorder %v245_v47, %v4712_v30  ;;  %v269_v18 = vadd.s32 456, %v4707_v28  ;;  %v271_v47 = vadd.s32 472, %v4707_v28 }
 0x1ad   :  { %vm632_vm10 = vmand %vm374_vm5, %vm504_vm1  ;;  %vm522_vm1 = vcmp.lt.s32.totalorder %v263_v54, %v4712_v30  ;;  %v241_v54 = vadd.s32 232, %v4707_v28 }
 0x1ae   :  { %vm3538_vm2 = vmpackc.low %vm632_vm10, %vm631_vm7  ;;  %vm344_vm10 = vcmp.ge.s32.totalorder %v215_v56, %v4710_v29  ;;  %v273_v56 = vadd.s32 488, %v4707_v28 }
 0x1af   :  { %3693 = vmatpush3.bf16.msk.msra.mxu1 %vm3538_vm2, %v6608_v46  ;;  %vm3524_vm5 = vmpackc.low %vm618_vm15, %vm617_vm13  ;;  %vm343_vm2 = vcmp.ge.s32.totalorder %v214_v55, %v4710_v29  ;;  %vm375_vm15 = vcmp.ge.s32.totalorder %v246_v57, %v4710_v29  ;;  %v272_v55 = vadd.s32 480, %v4707_v28 }
 0x1b0   :  { %3672 = vmatprep.subr.msk.bf16.mxu0 %vm3524_vm5, %v6608_v46  ;;  %vm649_vm7 = vmand %vm391_vm4, %vm521_vm14  ;;  %vm505_vm4 = vcmp.lt.s32.totalorder %v246_v57, %v4712_v30  ;;  %vm376_vm5 = vcmp.ge.s32.totalorder %v247_v58, %v4710_v29  ;;  %v224_v57 = vadd.s32 96, %v4707_v28 }
 0x1b1   :  { %vm650_vm8 = vmand %vm392_vm6, %vm522_vm1  ;;  %vm506_vm6 = vcmp.lt.s32.totalorder %v247_v58, %v4712_v30  ;;  %v225_v58 = vadd.s32 104, %v4707_v28 }
 0x1b2   :  { %vm3556_vm12 = vmpackc.low %vm650_vm8, %vm649_vm7  ;;  %vm361_vm8 = vcmp.ge.s32.totalorder %v232_v59, %v4710_v29 }
 0x1b3   :  { %3694 = vmatprep.subr.msk.bf16.mxu1 %vm3556_vm12, %v6608_v46  ;;  %vm601_vm13 = vmand %vm343_vm2, %vm473_vm9  ;;  %vm491_vm2 = vcmp.lt.s32.totalorder %v232_v59, %v4712_v30  ;;  %vm362_vm12 = vcmp.ge.s32.totalorder %v233_v60, %v4710_v29  ;;  %v256_v59 = vadd.s32 352, %v4707_v28 }
 0x1b4   :  { %vm602_vm14 = vmand %vm344_vm10, %vm474_vm11  ;;  %vm492_vm10 = vcmp.lt.s32.totalorder %v233_v60, %v4712_v30  ;;  %v257_v60 = vadd.s32 360, %v4707_v28 }
 0x1b5   :  { %vm3508_vm1 = vmpackc.low %vm602_vm14, %vm601_vm13  ;;  %vm393_vm14 = vcmp.ge.s32.totalorder %v264_v61, %v4710_v29 }
 0x1b6   :  { %3673 = vmatpush3.bf16.msk.msra.mxu0 %vm3508_vm1, %v6608_v46  ;;  %vm633_vm7 = vmand %vm375_vm15, %vm505_vm4  ;;  %vm523_vm15 = vcmp.lt.s32.totalorder %v264_v61, %v4712_v30  ;;  %vm394_vm1 = vcmp.ge.s32.totalorder %v265_v62, %v4710_v29  ;;  %v242_v61 = vadd.s32 240, %v4707_v28 }
 0x1b7   :  { %vm634_vm9 = vmand %vm376_vm5, %vm506_vm6  ;;  %vm524_vm5 = vcmp.lt.s32.totalorder %v265_v62, %v4712_v30  ;;  %v243_v62 = vadd.s32 248, %v4707_v28 }
 0x1b8   :  { %vm3540_vm11 = vmpackc.low %vm634_vm9, %vm633_vm7  ;;  %vm345_vm9 = vcmp.ge.s32.totalorder %v216_v63, %v4710_v29 }
 0x1b9   :  { %3695 = vmatpush3.bf16.msk.msra.mxu1 %vm3540_vm11, %v6608_v46  ;;  %vm619_vm13 = vmand %vm361_vm8, %vm491_vm2  ;;  %vm475_vm8 = vcmp.lt.s32.totalorder %v216_v63, %v4712_v30  ;;  %vm346_vm11 = vcmp.ge.s32.totalorder %v217_v3, %v4710_v29  ;;  %v274_v63 = vadd.s32 496, %v4707_v28 }
 0x1ba   :  { %vm620_vm4 = vmand %vm362_vm12, %vm492_vm10  ;;  %vm476_vm12 = vcmp.lt.s32.totalorder %v217_v3, %v4712_v30  ;;  %v275_v3 = vadd.s32 504, %v4707_v28 }
 0x1bb   :  { %vm3526_vm6 = vmpackc.low %vm620_vm4, %vm619_vm13  ;;  %vm377_vm4 = vcmp.ge.s32.totalorder %v248_v4, %v4710_v29 }
 0x1bc   :  { %3674 = vmatprep.subr.msk.bf16.mxu0 %vm3526_vm6, %v6608_v46  ;;  %vm651_vm7 = vmand %vm393_vm14, %vm523_vm15  ;;  %vm507_vm14 = vcmp.lt.s32.totalorder %v248_v4, %v4712_v30  ;;  %vm378_vm6 = vcmp.ge.s32.totalorder %v249_v5, %v4710_v29  ;;  %v226_v4 = vadd.s32 112, %v4707_v28 }
 0x1bd   :  { %vm652_vm2 = vmand %vm394_vm1, %vm524_vm5  ;;  %vm508_vm1 = vcmp.lt.s32.totalorder %v249_v5, %v4712_v30 }
 0x1be   :  { %vm3558_vm10 = vmpackc.low %vm652_vm2, %vm651_vm7  ;;  %vm363_vm2 = vcmp.ge.s32.totalorder %v234_v6, %v4710_v29 }
 0x1bf   :  { %3696 = vmatprep.subr.msk.bf16.mxu1 %vm3558_vm10, %v6608_v46  ;;  %vm603_vm13 = vmand %vm345_vm9, %vm475_vm8  ;;  %vm493_vm9 = vcmp.lt.s32.totalorder %v234_v6, %v4712_v30  ;;  %vm364_vm10 = vcmp.ge.s32.totalorder %v235_v7, %v4710_v29  ;;  %v227_v6 = vadd.s32 120, %v4707_v28 }
 0x1c0   :  { %vm604_vm15 = vmand %vm346_vm11, %vm476_vm12  ;;  %vm494_vm11 = vcmp.lt.s32.totalorder %v235_v7, %v4712_v30 }
 0x1c1   :  { %vm3510_vm5 = vmpackc.low %vm604_vm15, %vm603_vm13  ;;  %vm395_vm15 = vcmp.ge.s32.totalorder %v266_v9, %v4710_v29 }
 0x1c2   :  { %3675 = vmatpush3.bf16.msk.msra.mxu0 %vm3510_vm5, %v6608_v46  ;;  %vm635_vm7 = vmand %vm377_vm4, %vm507_vm14  ;;  %vm525_vm4 = vcmp.lt.s32.totalorder %v266_v9, %v4712_v30  ;;  %vm396_vm5 = vcmp.ge.s32.totalorder %v267_v10, %v4710_v29  ;;  %v258_v9 = vadd.s32 368, %v4707_v28 }
 0x1c3   :  { %vm636_vm8 = vmand %vm378_vm6, %vm508_vm1  ;;  %vm526_vm6 = vcmp.lt.s32.totalorder %v267_v10, %v4712_v30  ;;  %v211_v10 = vld [vmem:[%s6689_s0] sm:$0xff] }
 0x1c4   :  { %vm3542_vm12 = vmpackc.low %vm636_vm8, %vm635_vm7  ;;  %vm347_vm8 = vcmp.ge.s32.totalorder %v218_v11, %v4710_v29 }
 0x1c5   :  { %3697 = vmatpush3.bf16.msk.msra.mxu1 %vm3542_vm12, %v6608_v46  ;;  %vm621_vm13 = vmand %vm363_vm2, %vm493_vm9  ;;  %vm477_vm2 = vcmp.lt.s32.totalorder %v218_v11, %v4712_v30  ;;  %vm348_vm12 = vcmp.ge.s32.totalorder %v219_v12, %v4710_v29  ;;  %v259_v11 = vadd.s32 376, %v4707_v28 }
 0x1c6   :  { %vm622_vm14 = vmand %vm364_vm10, %vm494_vm11  ;;  %vm478_vm10 = vcmp.lt.s32.totalorder %v219_v12, %v4712_v30 }
 0x1c7   :  { %vm3528_vm1 = vmpackc.low %vm622_vm14, %vm621_vm13  ;;  %vm379_vm14 = vcmp.ge.s32.totalorder %v250_v13, %v4710_v29 }
 0x1c8   :  { %3676 = vmatprep.subr.msk.bf16.mxu0 %vm3528_vm1, %v6608_v46  ;;  %vm653_vm7 = vmand %vm395_vm15, %vm525_vm4  ;;  %vm509_vm15 = vcmp.lt.s32.totalorder %v250_v13, %v4712_v30  ;;  %vm380_vm1 = vcmp.ge.s32.totalorder %v251_v15, %v4710_v29 }
 0x1c9   :  { %vm654_vm9 = vmand %vm396_vm5, %vm526_vm6  ;;  %vm510_vm5 = vcmp.lt.s32.totalorder %v251_v15, %v4712_v30  ;;  %v292_v15 = vadd.s32 640, %v4707_v28 }
 0x1ca   :  { %vm3560_vm11 = vmpackc.low %vm654_vm9, %vm653_vm7  ;;  %vm365_vm9 = vcmp.ge.s32.totalorder %v236_v16, %v4710_v29 }
 0x1cb   :  { %3698 = vmatprep.subr.msk.bf16.mxu1 %vm3560_vm11, %v6608_v46  ;;  %vm605_vm13 = vmand %vm347_vm8, %vm477_vm2  ;;  %vm495_vm8 = vcmp.lt.s32.totalorder %v236_v16, %v4712_v30  ;;  %vm366_vm11 = vcmp.ge.s32.totalorder %v237_v2, %v4710_v29  ;;  %v293_v16 = vadd.s32 648, %v4707_v28 }
 0x1cc   :  { %vm606_vm4 = vmand %vm348_vm12, %vm478_vm10  ;;  %vm496_vm12 = vcmp.lt.s32.totalorder %v237_v2, %v4712_v30  ;;  %v325_v2 = vadd.s32 904, %v4707_v28 }
 0x1cd   :  { %vm3512_vm6 = vmpackc.low %vm606_vm4, %vm605_vm13  ;;  %vm397_vm4 = vcmp.ge.s32.totalorder %v268_v17, %v4710_v29 }
 0x1ce   :  { %3677 = vmatpush3.bf16.msk.msra.mxu0 %vm3512_vm6, %v6608_v46  ;;  %vm637_vm7 = vmand %vm379_vm14, %vm509_vm15  ;;  %vm527_vm14 = vcmp.lt.s32.totalorder %v268_v17, %v4712_v30  ;;  %vm398_vm6 = vcmp.ge.s32.totalorder %v269_v18, %v4710_v29  ;;  %v212_v17 = vld [vmem:[%s6689_s0 + $0x8] sm:$0xff] }
 0x1cf   :  { %vm638_vm2 = vmand %vm380_vm1, %vm510_vm5  ;;  %vm528_vm1 = vcmp.lt.s32.totalorder %v269_v18, %v4712_v30  ;;  %v1278_v18 = vsub.s32 0, %v4707_v28 }
 0x1d0   :  { %vm3544_vm10 = vmpackc.low %vm638_vm2, %vm637_vm7  ;;  %vm349_vm2 = vcmp.ge.s32.totalorder %v220_v27, %v4710_v29 }
 0x1d1   :  { %3699 = vmatpush3.bf16.msk.msra.mxu1 %vm3544_vm10, %v6608_v46  ;;  %vm623_vm13 = vmand %vm365_vm9, %vm495_vm8  ;;  %vm479_vm9 = vcmp.lt.s32.totalorder %v220_v27, %v4712_v30  ;;  %vm350_vm10 = vcmp.ge.s32.totalorder %v221_v35, %v4710_v29  ;;  %v1286_v27 = vsub.s32 2, %v4707_v28 }
 0x1d2   :  { %vm624_vm15 = vmand %vm366_vm11, %vm496_vm12  ;;  %vm480_vm11 = vcmp.lt.s32.totalorder %v221_v35, %v4712_v30  ;;  %v1282_v35 = vsub.s32 1, %v4707_v28 }
 0x1d3   :  { %vm3530_vm5 = vmpackc.low %vm624_vm15, %vm623_vm13  ;;  %vm381_vm15 = vcmp.ge.s32.totalorder %v252_v36, %v4710_v29 }
 0x1d4   :  { %3678 = vmatprep.subr.msk.bf16.mxu0 %vm3530_vm5, %v6608_v46  ;;  %vm655_vm7 = vmand %vm397_vm4, %vm527_vm14  ;;  %vm511_vm4 = vcmp.lt.s32.totalorder %v252_v36, %v4712_v30  ;;  %vm382_vm5 = vcmp.ge.s32.totalorder %v253_v39, %v4710_v29  ;;  %v1290_v36 = vsub.s32 3, %v4707_v28 }
 0x1d5   :  { %vm656_vm8 = vmand %vm398_vm6, %vm528_vm1  ;;  %vm512_vm6 = vcmp.lt.s32.totalorder %v253_v39, %v4712_v30  ;;  %v1274_v39 = vld [vmem:[#allocation13] sm:$0xff] }
 0x1d6   :  { %vm3562_vm12 = vmpackc.low %vm656_vm8, %vm655_vm7  ;;  %vm367_vm8 = vcmp.ge.s32.totalorder %v238_v42, %v4710_v29 }
 0x1d7   :  { %3700 = vmatprep.subr.msk.bf16.mxu1 %vm3562_vm12, %v6608_v46  ;;  %vm607_vm13 = vmand %vm349_vm2, %vm479_vm9  ;;  %vm497_vm2 = vcmp.lt.s32.totalorder %v238_v42, %v4712_v30  ;;  %vm368_vm12 = vcmp.ge.s32.totalorder %v239_v43, %v4710_v29  ;;  %v1294_v42 = vsub.s32 4, %v4707_v28 }
 0x1d8   :  { %vm608_vm14 = vmand %vm350_vm10, %vm480_vm11  ;;  %vm498_vm10 = vcmp.lt.s32.totalorder %v239_v43, %v4712_v30  ;;  %v1302_v43 = vsub.s32 6, %v4707_v28 }
 0x1d9   :  { %vm3514_vm1 = vmpackc.low %vm608_vm14, %vm607_vm13  ;;  %vm399_vm14 = vcmp.ge.s32.totalorder %v270_v44, %v4710_v29 }
 0x1da   :  { %3679 = vmatpush3.bf16.msk.msra.mxu0 %vm3514_vm1, %v6608_v46  ;;  %vm639_vm7 = vmand %vm381_vm15, %vm511_vm4  ;;  %vm529_vm15 = vcmp.lt.s32.totalorder %v270_v44, %v4712_v30  ;;  %vm400_vm1 = vcmp.ge.s32.totalorder %v271_v47, %v4710_v29  ;;  %v1298_v44 = vsub.s32 5, %v4707_v28 }
 0x1db   :  { %vm640_vm9 = vmand %vm382_vm5, %vm512_vm6  ;;  %vm530_vm5 = vcmp.lt.s32.totalorder %v271_v47, %v4712_v30  ;;  %v1306_v47 = vsub.s32 7, %v4707_v28 }
 0x1dc   :  { %vm3546_vm11 = vmpackc.low %vm640_vm9, %vm639_vm7 }
 0x1dd   :  { %3701 = vmatpush3.bf16.msk.msra.mxu1 %vm3546_vm11, %v6608_v46  ;;  %vm625_vm13 = vmand %vm367_vm8, %vm497_vm2  ;;  %vm352_vm11 = vcmp.ge.s32.totalorder %v223_v50, %v4710_v29 }
 0x1de   :  { %vm626_vm4 = vmand %vm368_vm12, %vm498_vm10  ;;  %vm482_vm12 = vcmp.lt.s32.totalorder %v223_v50, %v4712_v30  ;;  %v1287_v50 = vrot.slane %v1274_v39, %v1286_v27  ;;  %v5182_v27 = vadd.s32 944, %v4707_v28 }
 0x1df   :  { %vm3532_vm6 = vmpackc.low %vm626_vm4, %vm625_vm13 }
 0x1e0   :  { %3680 = vmatprep.subr.msk.bf16.mxu0 %vm3532_vm6, %v6608_v46  ;;  %vm657_vm7 = vmand %vm399_vm14, %vm529_vm15  ;;  %vm384_vm15 = vcmp.ge.s32.totalorder %v255_v52, %v4710_v29  ;;  %v1291_v52 = vrot.slane %v1274_v39, %v1290_v36  ;;  %v5194_v36 = vadd.s32 560, %v4707_v28 }
 0x1e1   :  { %vm658_vm2 = vmand %vm400_vm1, %vm530_vm5 }
 0x1e2   :  { %vm3564_vm10 = vmpackc.low %vm658_vm2, %vm657_vm7  ;;  %vm369_vm7 = vcmp.ge.s32.totalorder %v240_v53, %v4710_v29 }
 0x1e3   :  { %3702 = vmatprep.subr.msk.bf16.mxu1 %vm3564_vm10, %v6608_v46  ;;  %vm610_vm14 = vmand %vm352_vm11, %vm482_vm12  ;;  %vm401_vm11 = vcmp.ge.s32.totalorder %v272_v55, %v4710_v29  ;;  %vm531_vm12 = vcmp.lt.s32.totalorder %v272_v55, %v4712_v30  ;;  %v1299_v55 = vrot.slane %v1274_v39, %v1298_v44  ;;  %v337_v44 = vadd.s32 1000, %v4707_v28 }
 0x1e4   :  { %vm642_vm5 = vmand %vm384_vm15, %vm514_vm0  ;;  %vm500_vm0 = vcmp.lt.s32.totalorder %v241_v54, %v4712_v30  ;;  %vm353_vm15 = vcmp.ge.s32.totalorder %v224_v57, %v4710_v29 }
 0x26f   :  { %v4690_v19 = vpop.f32.mrb[4].mxu1  ;;  %v4692_v20 = vpop.f32.mrb[4].mxu0 }
 0x270   :  { %v4694_v21 = vpop.f32.mrb[5].mxu1  ;;  %v4696_v22 = vpop.f32.mrb[5].mxu0 }
 0x271   :  { %v4698_v23 = vpop.f32.mrb[6].mxu1  ;;  %v4700_v24 = vpop.f32.mrb[6].mxu0 }
 0x272   :  { %v4702_v25 = vpop.f32.mrb[7].mxu1  ;;  %v4704_v26 = vpop.f32.mrb[7].mxu0 }
 0x277   :  { %v4714_v31 = vpop.f32.mrb[8].mxu1  ;;  %v4716_v32 = vpop.f32.mrb[8].mxu0 }
 0x278   :  { %v4718_v33 = vpop.f32.mrb[9].mxu1  ;;  %v4720_v34 = vpop.f32.mrb[9].mxu0 }
 0x279   :  { %v4724_v37 = vpop.f32.mrb[10].mxu1  ;;  %v4726_v38 = vpop.f32.mrb[10].mxu0 }
 0x27a   :  { %v4729_v40 = vpop.f32.mrb[11].mxu1  ;;  %v4731_v41 = vpop.f32.mrb[11].mxu0 }
 0x27f   :  { %v4744_v45 = vpop.f32.mrb[12].mxu1 }
 0x280   :  { %1553 = vrot.lane.b32.xlu1 %v4744_v45, %s4411_s10  ;;  %v3843_v48 = vpop.f32.mrb[13].mxu1 }
 0x281   :  { %v4756_v49 = vpop.f32.mrb[14].mxu1  ;;  %v222_v48 = vadd.s32 80, %v4707_v28 }
 0x282   :  { %v3844_v51 = vpop.f32.mrb[15].mxu1 }
 0x283   :  { %v254_v51 = vadd.s32 336, %v4707_v28  ;;  %vm351_vm9 = vcmp.ge.s32.totalorder %v222_v48, %v4710_v29  ;;  %vm481_vm8 = vcmp.lt.s32.totalorder %v222_v48, %v4712_v30  ;;  %v1279_v48 = vrot.slane %v1274_v39, %v1278_v18 }
 0x284   :  { %1555 = vrot.lane.b32.xlu1 %v4756_v49, %s4411_s10  ;;  %vm609_vm13 = vmand %vm351_vm9, %vm481_vm8  ;;  %vm370_vm9 = vcmp.ge.s32.totalorder %v241_v54, %v4710_v29  ;;  %v1303_v54 = vrot.slane %v1274_v39, %v1302_v43  ;;  %v5173_v18 = vadd.s32 696, %v4707_v28  ;;  %v5229_v43 = vadd.s32 824, %v4707_v28 }
 0x285   :  { %vm383_vm4 = vcmp.ge.s32.totalorder %v254_v51, %v4710_v29  ;;  %vm513_vm6 = vcmp.lt.s32.totalorder %v254_v51, %v4712_v30  ;;  %vm3516_vm3 = vmpackc.low %vm610_vm14, %vm609_vm13  ;;  %vm402_vm13 = vcmp.ge.s32.totalorder %v273_v56, %v4710_v29  ;;  %v1283_v51 = vrot.slane %v1274_v39, %v1282_v35 }
 0x286   :  { %3681 = vmatpush3.bf16.msk.msra.mxu0 %vm3516_vm3, %v6608_v46  ;;  %vm641_vm1 = vmand %vm383_vm4, %vm513_vm6  ;;  %vm499_vm3 = vcmp.lt.s32.totalorder %v240_v53, %v4712_v30  ;;  %vm532_vm4 = vcmp.lt.s32.totalorder %v273_v56, %v4712_v30  ;;  %v1295_v53 = vrot.slane %v1274_v39, %v1294_v42  ;;  %v1307_v56 = vrot.slane %v1274_v39, %v1306_v47 }
 0x287   :  { %vm3548_vm2 = vmpackc.low %vm642_vm5, %vm641_vm1  ;;  %vm483_vm1 = vcmp.lt.s32.totalorder %v224_v57, %v4712_v30  ;;  %v5010_v57 = vadd.f32 %v4690_v19, %v1279_v48  ;;  %v5031_v19 = vadd.f32 %v4704_v26, %v1291_v52  ;;  %v5191_v35 = vadd.s32 952, %v4707_v28 }
 0x288   :  { %3703 = vmatpush3.bf16.msk.msra.mxu1 %vm3548_vm2, %v6608_v46  ;;  %vm627_vm8 = vmand %vm369_vm7, %vm499_vm3  ;;  %vm354_vm2 = vcmp.ge.s32.totalorder %v225_v58, %v4710_v29  ;;  %vm484_vm7 = vcmp.lt.s32.totalorder %v225_v58, %v4712_v30  ;;  %v5013_v58 = vadd.f32 %v4692_v20, %v1287_v50  ;;  %v5034_v20 = vadd.f32 %v4714_v31, %v1295_v53 }
 0x289   :  { %vm628_vm10 = vmand %vm370_vm9, %vm500_vm0  ;;  %vm385_vm0 = vcmp.ge.s32.totalorder %v256_v59, %v4710_v29  ;;  %v5052_v26 = vadd.f32 %v4720_v34, %v1307_v56  ;;  %v5055_v31 = vadd.s32 776, %v4707_v28  ;;  %v5073_v34 = vadd.f32 %v4729_v40, %v1299_v55 }
 0x28a   :  { %vm3534_vm6 = vmpackc.low %vm628_vm10, %vm627_vm8  ;;  %vm515_vm8 = vcmp.lt.s32.totalorder %v256_v59, %v4712_v30  ;;  %vm516_vm10 = vcmp.lt.s32.totalorder %v257_v60, %v4712_v30  ;;  %v5016_v59 = vadd.f32 %v4694_v21, %v1283_v51  ;;  %v5037_v21 = vadd.s32 512, %v4707_v28 }
 0x28b   :  { %3682 = vmatprep.subr.msk.bf16.mxu0 %vm3534_vm6, %v6608_v46  ;;  %vm659_vm14 = vmand %vm401_vm11, %vm531_vm12  ;;  %vm386_vm12 = vcmp.ge.s32.totalorder %v257_v60, %v4710_v29  ;;  %vm371_vm6 = vcmp.ge.s32.totalorder %v242_v61, %v4710_v29  ;;  %v5019_v60 = vadd.f32 %v4696_v22, %v1291_v52  ;;  %v5040_v22 = vadd.s32 520, %v4707_v28 }
 0x28c   :  { %vm660_vm5 = vmand %vm402_vm13, %vm532_vm4  ;;  %v5095_v40 = vadd.s32 536, %v4707_v28  ;;  %v5211_v39 = vadd.s32 568, %v4707_v28  ;;  %v5226_v42 = vadd.s32 816, %v4707_v28  ;;  %v6699_v52 = vmov 0 }
 0x28d   :  { %vm3566_vm9 = vmpackc.low %vm660_vm5, %vm659_vm14  ;;  %vm501_vm14 = vcmp.lt.s32.totalorder %v242_v61, %v4712_v30  ;;  %vm502_vm5 = vcmp.lt.s32.totalorder %v243_v62, %v4712_v30  ;;  %v5022_v61 = vadd.f32 %v4698_v23, %v1279_v48  ;;  %v5043_v23 = vadd.s32 768, %v4707_v28 }
 0x28e   :  { %3704 = vmatprep.subr.msk.bf16.mxu1 %vm3566_vm9, %v6608_v46  ;;  %vm611_vm3 = vmand %vm353_vm15, %vm483_vm1  ;;  %vm372_vm1 = vcmp.ge.s32.totalorder %v243_v62, %v4710_v29  ;;  %vm403_vm9 = vcmp.ge.s32.totalorder %v274_v63, %v4710_v29  ;;  %v5025_v62 = vadd.f32 %v4700_v24, %v1287_v50  ;;  %v5046_v24 = vadd.f32 %v4716_v32, %v1303_v54 }
 0x28f   :  { %vm612_vm11 = vmand %vm354_vm2, %vm484_vm7  ;;  %v5067_v32 = vadd.s32 912, %v4707_v28  ;;  %v6697_v48 = vmov 0  ;;  %v5266_v50 = vadd.s32 704, %v4707_v28  ;;  %v6884_v47 = vmov 0 }
 0x290   :  { %vm3518_vm13 = vmpackc.low %vm612_vm11, %vm611_vm3  ;;  %vm533_vm3 = vcmp.lt.s32.totalorder %v274_v63, %v4712_v30  ;;  %vm404_vm11 = vcmp.ge.s32.totalorder %v275_v3, %v4710_v29  ;;  %v5028_v63 = vadd.f32 %v4702_v25, %v1283_v51  ;;  %v5049_v25 = vadd.f32 %v4718_v33, %v1299_v55 }
 0x291   :  { %3683 = vmatpush3.bf16.msk.msra.mxu0 %vm3518_vm13, %v6608_v46  ;;  %vm643_vm4 = vmand %vm385_vm0, %vm515_vm8  ;;  %vm6688_vm0 = vcmask 261120   ;;  %v5070_v33 = vadd.f32 %v4726_v38, %v1303_v54  ;;  %v5092_v38 = vadd.s32 528, %v4707_v28  ;;  %v5269_v51 = vadd.s32 712, %v4707_v28 }
 0x292   :  { %vm644_vm15 = vmand %vm386_vm12, %vm516_vm10  ;;  %vm534_vm12 = vcmp.lt.s32.totalorder %v275_v3, %v4712_v30  ;;  %v5058_v3 = vadd.f32 %v4724_v37, %v1295_v53  ;;  %v5079_v37 = vadd.s32 920, %v4707_v28  ;;  %v5288_v53 = vadd.s32 960, %v4707_v28 }
 0x293   :  { %vm3550_vm2 = vmpackc.low %vm644_vm15, %vm643_vm4  ;;  %vm355_vm4 = vcmp.ge.s32.totalorder %v226_v4, %v4710_v29  ;;  %vm356_vm15 = vcmp.ge.s32.totalorder %v227_v6, %v4710_v29  ;;  %v6702_v54 = vmov 0  ;;  %v6707_v55 = vmov 0 }
 0x294   :  { %3705 = vmatpush3.bf16.msk.msra.mxu1 %vm3550_vm2, %v6608_v46  ;;  %vm629_vm7 = vmand %vm371_vm6, %vm501_vm14  ;;  %vm485_vm6 = vcmp.lt.s32.totalorder %v226_v4, %v4712_v30  ;;  %v5061_v4 = vadd.s32 656, %v4707_v28 }
 0x295   :  { %vm630_vm8 = vmand %vm372_vm1, %vm502_vm5  ;;  %vm486_vm1 = vcmp.lt.s32.totalorder %v227_v6, %v4712_v30  ;;  %v5076_v6 = vadd.f32 %v4731_v41, %v1307_v56  ;;  %v5098_v41 = vadd.s32 784, %v4707_v28  ;;  %v6712_v56 = vmov 0 }
 0x296   :  { %vm3536_vm10 = vmpackc.low %vm630_vm8, %vm629_vm7  ;;  %vm388_vm8 = vcmp.ge.s32.totalorder %v259_v11, %v4710_v29 }
 0x297   :  { %3684 = vmatprep.subr.msk.bf16.mxu0 %vm3536_vm10, %v6608_v46  ;;  %vm4960_vm13 = vmand %vm403_vm9, %vm533_vm3  ;;  %vm387_vm9 = vcmp.ge.s32.totalorder %v258_v9, %v4710_v29  ;;  %vm517_vm3 = vcmp.lt.s32.totalorder %v258_v9, %v4712_v30  ;;  %v5101_v9 = vadd.s32 792, %v4707_v28 }
 0x298   :  { %vm662_vm14 = vmand %vm404_vm11, %vm534_vm12  ;;  %vm518_vm11 = vcmp.lt.s32.totalorder %v259_v11, %v4712_v30  ;;  %v5126_v11 = vadd.s32 928, %v4707_v28 }
 0x299   :  { %vm6692_vm5 = vmmov %vm6688_vm0 }
 0x29a   :  { %vm3568_vm2 = vmpackc.low %vm662_vm14, %vm4960_vm13  ;;  %vm421_vm13 = vcmp.ge.s32.totalorder %v292_v15, %v4710_v29  ;;  %vm422_vm14 = vcmp.ge.s32.totalorder %v293_v16, %v4710_v29 }
 0x29b   :  { %vm613_vm7 = vmand %vm355_vm4, %vm485_vm6  ;;  %3706 = vmatprep.subr.msk.bf16.mxu1 %vm3568_vm2, %v6608_v46  ;;  %vm551_vm4 = vcmp.lt.s32.totalorder %v292_v15, %v4712_v30  ;;  %v5154_v15 = vadd.s32 544, %v4707_v28 }
 0x29c   :  { %vm645_vm10 = vmand %vm387_vm9, %vm517_vm3  ;;  %vm454_vm3 = vcmp.ge.s32.totalorder %v325_v2, %v4710_v29 }
 0x29d   :  { %vm646_vm6 = vmand %vm388_vm8, %vm518_vm11 }
 0x2f2   :  { %v1554_v5 = vpop.permute.xlu1 %1553 }
 0x2f3   :  { %v4949_v7 = vsel %vm6688_vm0, %v4744_v45, %v1554_v5  ;;  %vm614_vm0 = vmand %vm356_vm15, %vm486_vm1  ;;  %vm552_vm15 = vcmp.lt.s32.totalorder %v293_v16, %v4712_v30  ;;  %v5064_v5 = vadd.s32 664, %v4707_v28  ;;  %v5113_v45 = vadd.s32 680, %v4707_v28 }
 0x2f4   :  { %1563 = vrot.lane.b32.xlu0 %v4949_v7, %s4397_s30  ;;  %vm3520_vm12 = vmpackc.low %vm614_vm0, %vm613_vm7  ;;  %vm584_vm0 = vcmp.lt.s32.totalorder %v325_v2, %v4712_v30  ;;  %v5157_v16 = vadd.s32 552, %v4707_v28  ;;  %v5163_v2 = vadd.s32 808, %v4707_v28 }
 0x2f5   :  { %3685 = vmatpush3.bf16.msk.msra.mxu0 %vm3520_vm12, %v6608_v46  ;;  %vm3552_vm1 = vmpackc.low %vm646_vm6, %vm645_vm10  ;;  %vm405_vm10 = vcmp.ge.s32.totalorder %v5037_v21, %v4710_v29 }
 0x2f6   :  { %v1556_v12 = vpop.permute.xlu1 %1555  ;;  %3707 = vmatpush3.bf16.msk.msra.mxu1 %vm3552_vm1, %v6608_v46  ;;  %vm680_vm9 = vmand %vm422_vm14, %vm552_vm15  ;;  %vm536_vm14 = vcmp.lt.s32.totalorder %v5040_v22, %v4712_v30  ;;  %vm437_vm15 = vcmp.ge.s32.totalorder %v5043_v23, %v4710_v29  ;;  %vm438_vm1 = vcmp.ge.s32.totalorder %v5055_v31, %v4710_v29 }
 0x2f7   :  { %v4971_v13 = vsel %vm6692_vm5, %v4756_v49, %v1556_v12  ;;  %v324_v49 = vadd.s32 896, %v4707_v28  ;;  %vm679_vm5 = vmand %vm421_vm13, %vm551_vm4  ;;  %vm406_vm13 = vcmp.ge.s32.totalorder %v5040_v22, %v4710_v29  ;;  %vm535_vm4 = vcmp.lt.s32.totalorder %v5037_v21, %v4712_v30 }
 0x2f8   :  { %1762 = vperm.xlu0 %4093, %v211_v10   ;;  %1565 = vrot.lane.b32.xlu1 %v4971_v13, %s4397_s30  ;;  %vm3586_vm12 = vmpackc.low %vm680_vm9, %vm679_vm5  ;;  %vm567_vm5 = vcmp.lt.s32.totalorder %v5043_v23, %v4712_v30  ;;  %v5110_v10 = vadd.s32 672, %v4707_v28  ;;  %v5135_v12 = vadd.s32 936, %v4707_v28  ;;  %v5325_v21 = vadd.s32 968, %v4707_v28 }
 0x2f9   :  { %vm453_vm2 = vcmp.ge.s32.totalorder %v324_v49, %v4710_v29  ;;  %vm583_vm7 = vcmp.lt.s32.totalorder %v324_v49, %v4712_v30  ;;  %3714 = vmatprep.subr.msk.bf16.mxu0 %vm3586_vm12, %v6608_v46  ;;  %vm712_vm11 = vmand %vm454_vm3, %vm584_vm0  ;;  %vm553_vm3 = vcmp.lt.s32.totalorder %v5061_v4, %v4712_v30  ;;  %v5160_v49 = vadd.s32 800, %v4707_v28 }
 0x2fa   :  { %vm711_vm8 = vmand %vm453_vm2, %vm583_vm7  ;;  %vm568_vm2 = vcmp.lt.s32.totalorder %v5055_v31, %v4712_v30  ;;  %vm6711_vm7 = vcmp.ge.s32.totalorder %v5067_v32, %v4710_v29  ;;  %v5328_v22 = vadd.s32 576, %v4707_v28  ;;  %v6717_v23 = vmov 0 }
 0x2fb   :  { %vm3618_vm6 = vmpackc.low %vm712_vm11, %vm711_vm8  ;;  %v5347_v31 = vadd.s32 584, %v4707_v28  ;;  %vm6720_vm12 = vcmp.lt.s32.totalorder %v5092_v38, %v4712_v30  ;;  %vm6725_vm9 = vcmp.ge.s32.totalorder %v5095_v40, %v4710_v29  ;;  %vm6728_vm8 = vcmp.lt.s32.totalorder %v5098_v41, %v4712_v30 }
 0x2fc   :  { %3736 = vmatprep.subr.msk.bf16.mxu1 %vm3618_vm6, %v6608_v46  ;;  %1767 = vperm.xlu1 %4094, %v212_v17   ;;  %v5170_v17 = vadd.s32 688, %v4707_v28  ;;  %vm5237_vm6 = vmand %vm405_vm10, %vm535_vm4  ;;  %vm6705_vm4 = vcmp.lt.s32.totalorder %v5064_v5, %v4712_v30  ;;  %vm6729_vm11 = vcmp.ge.s32.totalorder %v5098_v41, %v4710_v29  ;;  %v5422_v41 = vadd.s32 832, %v4707_v28 }
 0x2fd   :  { %vm5247_vm0 = vmand %vm406_vm13, %vm536_vm14  ;;  %vm6710_vm14 = vcmp.lt.s32.totalorder %v5067_v32, %v4712_v30  ;;  %v6730_v32 = vmov 0  ;;  %v5465_v46 = vadd.s32 984, %v4707_v28 }
 0x2fe   :  { %vm5257_vm10 = vmand %vm437_vm15, %vm567_vm5  ;;  %vm6706_vm15 = vcmp.ge.s32.totalorder %v5064_v5, %v4710_v29  ;;  %v6726_v5 = vmov 0 }
 0x2ff   :  { %v6698_v48 = vsel %vm5257_vm10, 4294967295, %v6697_v48  ;;  %vm5277_vm13 = vmand %vm438_vm1, %vm568_vm2  ;;  %vm6701_vm1 = vcmp.ge.s32.totalorder %v5061_v4, %v4710_v29  ;;  %v6722_v4 = vmov 0  ;;  %vm6788_vm10 = vcmp.ge.s32.totalorder %v5194_v36, %v4710_v29 }
 0x300   :  { %v6700_v52 = vsel %vm5277_vm13, 4294967295, %v6699_v52  ;;  %vm5296_vm2 = vmand %vm6701_vm1, %vm553_vm3 }
 0x301   :  { %v6703_v54 = vsel %vm5296_vm2, 4294967295, %v6702_v54  ;;  %vm5306_vm5 = vmand %vm6706_vm15, %vm6705_vm4  ;;  %vm6715_vm4 = vcmp.lt.s32.totalorder %v5079_v37, %v4712_v30  ;;  %vm6724_vm15 = vcmp.lt.s32.totalorder %v5095_v40, %v4712_v30  ;;  %v6742_v40 = vmov 0 }
 0x302   :  { %6704 = vst [vmem:[#allocation29_spill] sm:$0xff] %v6703_v54  ;;  %v6708_v55 = vsel %vm5306_vm5, 4294967295, %v6707_v55  ;;  %vm5316_vm3 = vmand %vm6711_vm7, %vm6710_vm14  ;;  %vm6716_vm7 = vcmp.ge.s32.totalorder %v5079_v37, %v4710_v29  ;;  %v6734_v37 = vmov 0  ;;  %vm6840_vm5 = vcmp.ge.s32.totalorder %v5422_v41, %v4710_v29 }
 0x303   :  { %6709 = vst [vmem:[#allocation30_spill] sm:$0xff] %v6708_v55  ;;  %v6713_v56 = vsel %vm5316_vm3, 4294967295, %v6712_v56  ;;  %vm5336_vm14 = vmand %vm6716_vm7, %vm6715_vm4  ;;  %vm6721_vm4 = vcmp.ge.s32.totalorder %v5092_v38, %v4710_v29  ;;  %v6738_v38 = vmov 0  ;;  %vm6839_vm3 = vcmp.lt.s32.totalorder %v5422_v41, %v4712_v30 }
 0x304   :  { %6714 = vst [vmem:[#allocation31_spill] sm:$0xff] %v6713_v56  ;;  %v6718_v23 = vsel %vm5336_vm14, 4294967295, %v6717_v23  ;;  %vm5355_vm7 = vmand %vm6721_vm4, %vm6720_vm12  ;;  %vm6732_vm4 = vcmp.lt.s32.totalorder %v5101_v9, %v4712_v30  ;;  %v5670_v56 = vadd.s32 856, %v4707_v28  ;;  %vm6831_vm14 = vcmp.lt.s32.totalorder %v5328_v22, %v4712_v30 }
 0x305   :  { %6719 = vst [vmem:[#allocation32_spill] sm:$0xff] %v6718_v23  ;;  %v6723_v4 = vsel %vm5355_vm7, 4294967295, %v6722_v4  ;;  %vm5365_vm1 = vmand %vm6725_vm9, %vm6724_vm15  ;;  %vm6733_vm7 = vcmp.ge.s32.totalorder %v5101_v9, %v4710_v29  ;;  %vm6740_vm15 = vcmp.lt.s32.totalorder %v5113_v45, %v4712_v30  ;;  %v5425_v9 = vadd.s32 840, %v4707_v28 }
 0x306   :  { %v6727_v5 = vsel %vm5365_vm1, 4294967295, %v6726_v5  ;;  %vm5375_vm12 = vmand %vm6729_vm11, %vm6728_vm8  ;;  %vm6741_vm1 = vcmp.ge.s32.totalorder %v5113_v45, %v4710_v29  ;;  %v5442_v45 = vadd.s32 720, %v4707_v28  ;;  %vm6748_vm11 = vcmp.lt.s32.totalorder %v5135_v12, %v4712_v30 }
 0x307   :  { %v6731_v32 = vsel %vm5375_vm12, 4294967295, %v6730_v32  ;;  %vm5385_vm9 = vmand %vm6733_vm7, %vm6732_vm4  ;;  %vm6736_vm12 = vcmp.lt.s32.totalorder %v5110_v10, %v4712_v30  ;;  %vm6737_vm7 = vcmp.ge.s32.totalorder %v5110_v10, %v4710_v29  ;;  %v6746_v10 = vmov 0 }
 0x308   :  { %v6735_v37 = vsel %vm5385_vm9, 4294967295, %v6734_v37  ;;  %vm5403_vm4 = vmand %vm6737_vm7, %vm6736_vm12  ;;  %vm6744_vm12 = vcmp.lt.s32.totalorder %v5126_v11, %v4712_v30  ;;  %vm6756_vm7 = vcmp.lt.s32.totalorder %v5157_v16, %v4712_v30  ;;  %vm6757_vm9 = vcmp.ge.s32.totalorder %v5157_v16, %v4710_v29 }
 0x309   :  { %v6739_v38 = vsel %vm5403_vm4, 4294967295, %v6738_v38  ;;  %vm5413_vm8 = vmand %vm6741_vm1, %vm6740_vm15  ;;  %vm6745_vm1 = vcmp.ge.s32.totalorder %v5126_v11, %v4710_v29  ;;  %v6750_v11 = vmov 0  ;;  %vm6761_vm4 = vcmp.ge.s32.totalorder %v5160_v49, %v4710_v29 }
 0x30a   :  { %v6743_v40 = vsel %vm5413_vm8, 4294967295, %v6742_v40  ;;  %vm5433_vm15 = vmand %vm6745_vm1, %vm6744_vm12  ;;  %vm6749_vm12 = vcmp.ge.s32.totalorder %v5135_v12, %v4710_v29  ;;  %v6754_v12 = vmov 0  ;;  %vm6760_vm8 = vcmp.lt.s32.totalorder %v5160_v49, %v4712_v30 }
 0x30b   :  { %v6747_v10 = vsel %vm5433_vm15, 4294967295, %v6746_v10  ;;  %vm5453_vm1 = vmand %vm6749_vm12, %vm6748_vm11  ;;  %vm6752_vm15 = vcmp.lt.s32.totalorder %v5154_v15, %v4712_v30  ;;  %vm6753_vm11 = vcmp.ge.s32.totalorder %v5154_v15, %v4710_v29  ;;  %v6762_v15 = vmov 0 }
 0x30c   :  { %v6751_v11 = vsel %vm5453_vm1, 4294967295, %v6750_v11  ;;  %vm5473_vm12 = vmand %vm6753_vm11, %vm6752_vm15  ;;  %vm6764_vm11 = vcmp.lt.s32.totalorder %v5163_v2, %v4712_v30  ;;  %v6766_v16 = vmov 0  ;;  %v5514_v49 = vadd.s32 592, %v4707_v28 }
 0x30d   :  { %v6755_v12 = vsel %vm5473_vm12, 4294967295, %v6754_v12  ;;  %vm5483_vm1 = vmand %vm6757_vm9, %vm6756_vm7  ;;  %vm6765_vm12 = vcmp.ge.s32.totalorder %v5163_v2, %v4710_v29  ;;  %v6770_v2 = vmov 0  ;;  %vm6773_vm7 = vcmp.lt.s32.totalorder %v5173_v18, %v4712_v30 }
 0x30e   :  { %v6759_v14 = vsel %vm5483_vm1, 4294967295, %v6758_v14  ;;  %vm5493_vm15 = vmand %vm6761_vm4, %vm6760_vm8  ;;  %vm6768_vm4 = vcmp.lt.s32.totalorder %v5170_v17, %v4712_v30  ;;  %vm6774_vm1 = vcmp.ge.s32.totalorder %v5173_v18, %v4710_v29  ;;  %v6780_v18 = vmov 0 }
 0x30f   :  { %v6763_v15 = vsel %vm5493_vm15, 4294967295, %v6762_v15  ;;  %vm5503_vm9 = vmand %vm6765_vm12, %vm6764_vm11  ;;  %vm6769_vm12 = vcmp.ge.s32.totalorder %v5170_v17, %v4710_v29  ;;  %v5543_v17 = vadd.s32 600, %v4707_v28  ;;  %vm6795_vm15 = vcmp.lt.s32.totalorder %v5226_v42, %v4712_v30 }
 0x310   :  { %v6767_v16 = vsel %vm5503_vm9, 4294967295, %v6766_v16  ;;  %vm5522_vm11 = vmand %vm6769_vm12, %vm6768_vm4  ;;  %vm6778_vm12 = vcmp.lt.s32.totalorder %v5182_v27, %v4712_v30  ;;  %vm6783_vm9 = vcmp.lt.s32.totalorder %v5191_v35, %v4712_v30  ;;  %vm6784_vm4 = vcmp.ge.s32.totalorder %v5191_v35, %v4710_v29 }
 0x311   :  { %v6771_v2 = vsel %vm5522_vm11, 4294967295, %v6770_v2  ;;  %vm5532_vm8 = vmand %vm6774_vm1, %vm6773_vm7  ;;  %6777 = vst [vmem:[#allocation34_spill] sm:$0xff] %v5543_v17  ;;  %vm6779_vm1 = vcmp.ge.s32.totalorder %v5182_v27, %v4710_v29  ;;  %vm6782_vm11 = vcmask 523264   ;;  %v6785_v27 = vmov 0 }
 0x312   :  { %6772 = vst [vmem:[#allocation33_spill] sm:$0xff] %v6771_v2  ;;  %v6776_v8 = vsel %vm5532_vm8, 4294967295, %v6775_v8  ;;  %vm5551_vm7 = vmand %vm6779_vm1, %vm6778_vm12  ;;  %vm6787_vm1 = vcmp.lt.s32.totalorder %v5194_v36, %v4712_v30  ;;  %v6793_v35 = vmov 0  ;;  %v6797_v36 = vmov 0 }
 0x313   :  { %v6781_v18 = vsel %vm5551_vm7, 4294967295, %v6780_v18  ;;  %vm5579_vm8 = vmand %vm6784_vm4, %vm6783_vm9  ;;  %vm6791_vm9 = vcmp.lt.s32.totalorder %v5211_v39, %v4712_v30  ;;  %vm6792_vm4 = vcmp.ge.s32.totalorder %v5211_v39, %v4710_v29  ;;  %v6801_v39 = vmov 0 }
 0x314   :  { %v6786_v27 = vsel %vm5579_vm8, 4294967295, %v6785_v27  ;;  %vm5595_vm13 = vmand %vm6788_vm10, %vm6787_vm1  ;;  %vm6799_vm1 = vcmp.lt.s32.totalorder %v5229_v43, %v4712_v30  ;;  %vm6868_vm7 = vcmp.ge.s32.totalorder %v5465_v46, %v4710_v29 }
 0x315   :  { %vm5605_vm12 = vmand %vm6792_vm4, %vm6791_vm9 }
 0x316   :  { %v6794_v35 = vsel %vm5605_vm12, 4294967295, %v6793_v35  ;;  %vm6803_vm12 = vcmp.lt.s32.totalorder %v5266_v50, %v4712_v30 }
 0x366   :  { %v1564_v2 = vpop.permute.xlu0 %1563 }
 0x367   :  { %v1570_v17 = vsel %vm6782_vm11, %v4949_v7, %v1564_v2  ;;  %v6789_v7 = vmov 0  ;;  %vm6796_vm11 = vcmp.ge.s32.totalorder %v5226_v42, %v4710_v29  ;;  %v5667_v2 = vadd.s32 848, %v4707_v28 }
 0x368   :  { %v6790_v7 = vsel %vm5595_vm13, 4294967295, %v6789_v7  ;;  %vm5615_vm10 = vmand %vm6796_vm11, %vm6795_vm15  ;;  %vm6800_vm13 = vcmp.ge.s32.totalorder %v5229_v43, %v4710_v29  ;;  %v1573_v42 = vmul.f32 %v1570_v17, %v5016_v59  ;;  %vm6804_vm15 = vcmp.ge.s32.totalorder %v5266_v50, %v4710_v29 }
 0x369   :  { %v6798_v36 = vsel %vm5615_vm10, 4294967295, %v6797_v36  ;;  %vm5625_vm9 = vmand %vm6800_vm13, %vm6799_vm1  ;;  %v6805_v43 = vmov 0  ;;  %vm6808_vm11 = vcmp.lt.s32.totalorder %v5269_v51, %v4712_v30  ;;  %vm6809_vm13 = vcmp.ge.s32.totalorder %v5269_v51, %v4710_v29 }
 0x36a   :  { %v6802_v39 = vsel %vm5625_vm9, 4294967295, %v6801_v39  ;;  %vm5652_vm4 = vmand %vm6804_vm15, %vm6803_vm12  ;;  %v6810_v59 = vmov 0  ;;  %v5673_v50 = vadd.s32 736, %v4707_v28  ;;  %v1575_v23 = vmul.f32 %v1570_v17, %v5019_v60 }
 0x36b   :  { %v6806_v43 = vsel %vm5652_vm4, 4294967295, %v6805_v43  ;;  %vm5662_vm2 = vmand %vm6809_vm13, %vm6808_vm11  ;;  %v1572_v54 = vmul.f32 %v1570_v17, %v5010_v57  ;;  %v1574_v51 = vmul.f32 %v1570_v17, %v5013_v58  ;;  %v1577_v55 = vmul.f32 %v1570_v17, %v5049_v25 }
 0x36c   :  { %6807 = vst [vmem:[#allocation35_spill] sm:$0xff] %v6806_v43  ;;  %v6811_v59 = vsel %vm5662_vm2, 4294967295, %v6810_v59  ;;  %6813 = vst [vmem:[#allocation37_spill] sm:$0xff] %v5673_v50  ;;  %v1566_v43 = vpop.permute.xlu1 %1565  ;;  %vm6814_vm12 = vcmp.lt.s32.totalorder %v5288_v53, %v4712_v30  ;;  %vm6815_vm15 = vcmp.ge.s32.totalorder %v5288_v53, %v4710_v29  ;;  %vm6818_vm13 = vcmask 523264  }
 0x36d   :  { %6812 = vst [vmem:[#allocation36_spill] sm:$0xff] %v6811_v59  ;;  %vm5685_vm11 = vmand %vm6815_vm15, %vm6814_vm12  ;;  %v6816_v59 = vmov 0  ;;  %v1571_v50 = vsel %vm6818_vm13, %v4971_v13, %v1566_v43  ;;  %v1579_v60 = vmul.f32 %v1570_v17, %v5052_v26  ;;  %vm6823_vm12 = vcmp.lt.s32.totalorder %v5325_v21, %v4712_v30 }
 0x36e   :  { %v6817_v59 = vsel %vm5685_vm11, 4294967295, %v6816_v59  ;;  %vm6824_vm15 = vcmp.ge.s32.totalorder %v5325_v21, %v4710_v29  ;;  %v6825_v13 = vmov 0  ;;  %v5711_v57 = vmul.f32 %v1570_v17, %v5034_v20 }
 0x36f   :  { %vm5706_vm11 = vmand %vm6824_vm15, %vm6823_vm12  ;;  %v5714_v58 = vmul.f32 %v1570_v17, %v5046_v24  ;;  %v1581_v25 = vmul.f32 %v1571_v50, %v5028_v63  ;;  %v1583_v26 = vmul.f32 %v1571_v50, %v5031_v19  ;;  %v1580_v53 = vmul.f32 %v1571_v50, %v5022_v61 }
 0x370   :  { %v6826_v13 = vsel %vm5706_vm11, 4294967295, %v6825_v13  ;;  %v1582_v43 = vmul.f32 %v1571_v50, %v5025_v62  ;;  %vm6832_vm1 = vcmp.ge.s32.totalorder %v5328_v22, %v4710_v29  ;;  %v6833_v61 = vmov 0 }
 0x371   :  { %vm5734_vm2 = vmand %vm6832_vm1, %vm6831_vm14  ;;  %vm6835_vm11 = vcmp.lt.s32.totalorder %v5347_v31, %v4712_v30  ;;  %vm6836_vm15 = vcmp.ge.s32.totalorder %v5347_v31, %v4710_v29  ;;  %v6837_v62 = vmov 0  ;;  %v6841_v63 = vmov 0 }
 0x372   :  { %v6834_v61 = vsel %vm5734_vm2, 4294967295, %v6833_v61  ;;  %vm5744_vm13 = vmand %vm6836_vm15, %vm6835_vm11  ;;  %v1585_v19 = vmul.f32 %v1571_v50, %v5073_v34  ;;  %v1587_v20 = vmul.f32 %v1571_v50, %v5076_v6  ;;  %vm6843_vm1 = vcmp.lt.s32.totalorder %v5425_v9, %v4712_v30 }
 0x373   :  { %v6838_v62 = vsel %vm5744_vm13, 4294967295, %v6837_v62  ;;  %vm5754_vm14 = vmand %vm6840_vm5, %vm6839_vm3  ;;  %vm6844_vm11 = vcmp.ge.s32.totalorder %v5425_v9, %v4710_v29  ;;  %v6845_v24 = vmov 0  ;;  %v5771_v21 = vmul.f32 %v1571_v50, %v5058_v3 }
 0x374   :  { %v6842_v63 = vsel %vm5754_vm14, 4294967295, %v6841_v63  ;;  %vm5766_vm15 = vmand %vm6844_vm11, %vm6843_vm1  ;;  %v5774_v22 = vmul.f32 %v1571_v50, %v5070_v33  ;;  %v1589_v31 = vpack.c.bf16 %v1581_v25, %v1573_v42  ;;  %v1591_v34 = vpack.c.bf16 %v1583_v26, %v1575_v23  ;;  %v6859_v23 = vld [vmem:[#allocation33_spill] sm:$0xff]  ;;  %v6892_v25 = vld [vmem:[#allocation32_spill] sm:$0xff] }
 0x375   :  { %v6846_v24 = vsel %vm5766_vm15, 4294967295, %v6845_v24  ;;  %v1588_v41 = vpack.c.bf16 %v1580_v53, %v1572_v54  ;;  %v1590_v6 = vpack.c.bf16 %v1582_v43, %v1574_v51  ;;  %vm6847_vm5 = vcmp.lt.s32.totalorder %v5442_v45, %v4712_v30  ;;  %vm6872_vm13 = vmpackc.low %vm5247_vm0, %vm5237_vm6  ;;  %v6894_v26 = vld [vmem:[#allocation31_spill] sm:$0xff]  ;;  %v6899_v43 = vld [vmem:[#allocation36_spill] sm:$0xff] }
 0x376   :  { %vm6848_vm3 = vcmp.ge.s32.totalorder %v5442_v45, %v4710_v29  ;;  %v6849_v9 = vmov 0  ;;  %v1593_v17 = vpack.c.bf16 %v1585_v19, %v1577_v55  ;;  %v1595_v3 = vpack.c.bf16 %v1587_v20, %v1579_v60  ;;  %1628 = vmatprep.mubr.bf16.mxu0 %v1589_v31  ;;  %1669 = vmatprep.mubr.bf16.mxu1 %v1591_v34  ;;  %v6866_v45 = vld [vmem:[#allocation34_spill] sm:$0xff]  ;;  %v6889_v60 = vld [vmem:[#allocation29_spill] sm:$0xff]  ;;  %v6897_v53 = vld [vmem:[#allocation35_spill] sm:$0xff] }
 0x377   :  { %vm5782_vm1 = vmand %vm6848_vm3, %vm6847_vm5  ;;  %vm6855_vm12 = vcmp.lt.s32.totalorder %v5445_v0, %v4712_v30  ;;  %vm6856_vm5 = vcmp.ge.s32.totalorder %v5445_v0, %v4710_v29  ;;  %v6857_v33 = vmov 0  ;;  %v1592_v54 = vpack.c.bf16 %v5771_v21, %v5711_v57  ;;  %1629 = vmatmul.mubr.bf16.vlgmr.msra.gmra.mrb[12].mxu0 %v1588_v41  ;;  %1670 = vmatmul.mubr.bf16.vlgmr.msra.gmra.mrb[16].mxu1 %v1590_v6  ;;  %v1494_v57 = vld [vmem:[%s6580_s13 + $0x10] sm:$0xff] }
 0x378   :  { %v6850_v9 = vsel %vm5782_vm1, 4294967295, %v6849_v9  ;;  %vm5800_vm3 = vmand %vm6856_vm5, %vm6855_vm12  ;;  %v1594_v55 = vpack.c.bf16 %v5774_v22, %v5714_v58  ;;  %vm6862_vm5 = vcmp.lt.s32.totalorder %v5462_v1, %v4712_v30  ;;  %vm6863_vm2 = vcmp.ge.s32.totalorder %v5462_v1, %v4710_v29  ;;  %1710 = vmatprep.mubr.bf16.mxu0 %v1593_v17  ;;  %1751 = vmatprep.mubr.bf16.mxu1 %v1595_v3 }
 0x379   :  { %v6858_v33 = vsel %vm5800_vm3, 4294967295, %v6857_v33  ;;  %vm5822_vm11 = vmand %vm6863_vm2, %vm6862_vm5  ;;  %v6864_v0 = vmov 0  ;;  %v305_v42 = vadd.s32 744, %v4707_v28  ;;  %vm6867_vm12 = vcmp.lt.s32.totalorder %v5465_v46, %v4712_v30 }
 0x37a   :  { %v6865_v0 = vsel %vm5822_vm11, 4294967295, %v6864_v0  ;;  %vm5837_vm2 = vmand %vm6868_vm7, %vm6867_vm12  ;;  %v6869_v1 = vmov 0  ;;  %v336_v50 = vadd.s32 992, %v4707_v28  ;;  %v6871_v51 = vmov 1.0|1.0  }
 0x37b   :  { %v6870_v1 = vsel %vm5837_vm2, 4294967295, %v6869_v1  ;;  %3715 = vmatpush3.bf16.msk.msra.mxu0 %vm6872_vm13, %v6871_v51  ;;  %vm6873_vm7 = vnez %v6700_v52  ;;  %vm6874_vm12 = vnez %v6698_v48  ;;  %vm6876_vm5 = vcmp.lt.s32.totalorder %v5514_v49, %v4712_v30  ;;  %v6886_v48 = vld [vmem:[#allocation37_spill] sm:$0xff] }
 0x37c   :  { %vm6875_vm8 = vmpackc.low %vm6873_vm7, %vm6874_vm12  ;;  %vm6877_vm15 = vcmp.ge.s32.totalorder %v5514_v49, %v4710_v29  ;;  %v6878_v46 = vmov 0  ;;  %vm6883_vm12 = vcmp.ge.s32.totalorder %v6866_v45, %v4710_v29  ;;  %v288_v52 = vadd.s32 608, %v4707_v28  ;;  %v6887_v49 = vld [vmem:[#allocation30_spill] sm:$0xff] }
 0x37d   :  { %3737 = vmatpush3.bf16.msk.msra.mxu1 %vm6875_vm8, %v6871_v51  ;;  %vm5864_vm4 = vmand %vm6877_vm15, %vm6876_vm5  ;;  %vm6882_vm5 = vcmp.lt.s32.totalorder %v6866_v45, %v4712_v30  ;;  %vm6888_vm15 = vnez %v6887_v49  ;;  %vm6890_vm10 = vnez %v6889_v60  ;;  %v6905_v19 = vmov 0 }
 0x37e   :  { %v6879_v46 = vsel %vm5864_vm4, 4294967295, %v6878_v46  ;;  %vm5887_vm0 = vmand %vm6883_vm12, %vm6882_vm5  ;;  %vm6893_vm5 = vnez %v6892_v25  ;;  %vm6895_vm12 = vnez %v6894_v26  ;;  %v289_v20 = vadd.s32 616, %v4707_v28 }
 0x37f   :  { %v6885_v47 = vsel %vm5887_vm0, 4294967295, %v6884_v47  ;;  %vm6891_vm9 = vmpackc.low %vm6888_vm15, %vm6890_vm10  ;;  %vm6903_vm10 = vcmp.lt.s32.totalorder %v5667_v2, %v4712_v30  ;;  %vm6908_vm14 = vcmp.ge.s32.totalorder %v5670_v56, %v4710_v29  ;;  %v6909_v31 = vmov 0 }
 0x380   :  { %3716 = vmatprep.subr.msk.bf16.mxu0 %vm6891_vm9, %v6871_v51  ;;  %vm6896_vm8 = vmpackc.low %vm6893_vm5, %vm6895_vm12  ;;  %vm6904_vm9 = vcmp.ge.s32.totalorder %v5667_v2, %v4710_v29  ;;  %vm6907_vm12 = vcmp.lt.s32.totalorder %v5670_v56, %v4712_v30  ;;  %v320_v2 = vadd.s32 864, %v4707_v28  ;;  %vm6912_vm5 = vnez %v6723_v4 }
 0x381   :  { %3738 = vmatprep.subr.msk.bf16.mxu1 %vm6896_vm8, %v6871_v51  ;;  %vm5922_vm15 = vmand %vm6904_vm9, %vm6903_vm10  ;;  %vm6911_vm8 = vnez %v6727_v5  ;;  %vm6914_vm4 = vnez %v6735_v37  ;;  %vm6917_vm10 = vcmp.lt.s32.totalorder %v6886_v48, %v4712_v30  ;;  %vm6918_vm9 = vcmp.ge.s32.totalorder %v6886_v48, %v4710_v29 }
 0x382   :  { %v6906_v19 = vsel %vm5922_vm15, 4294967295, %v6905_v19  ;;  %vm5935_vm13 = vmand %vm6908_vm14, %vm6907_vm12  ;;  %vm6915_vm14 = vnez %v6731_v32  ;;  %v6919_v56 = vmov 0  ;;  %v321_v4 = vadd.s32 872, %v4707_v28 }
 0x383   :  { %v6910_v31 = vsel %vm5935_vm13, 4294967295, %v6909_v31  ;;  %vm6913_vm0 = vmpackc.low %vm6911_vm8, %vm6912_vm5  ;;  %vm6922_vm5 = vnez %v6739_v38  ;;  %v6933_v5 = vmov 0  ;;  %v306_v32 = vadd.s32 752, %v4707_v28 }
 0x384   :  { %3717 = vmatpush3.bf16.msk.msra.mxu0 %vm6913_vm0, %v6871_v51  ;;  %vm6916_vm12 = vmpackc.low %vm6914_vm4, %vm6915_vm14  ;;  %vm6921_vm4 = vnez %v6743_v40  ;;  %v6937_v37 = vmov 0  ;;  %v307_v38 = vadd.s32 760, %v4707_v28  ;;  %vm6940_vm1 = vcmp.ge.s32.totalorder %v337_v44, %v4710_v29 }
 0x385   :  { %3739 = vmatpush3.bf16.msk.msra.mxu1 %vm6916_vm12, %v6871_v51  ;;  %vm5960_vm6 = vmand %vm6918_vm9, %vm6917_vm10  ;;  %vm6924_vm12 = vnez %v6751_v11  ;;  %vm6925_vm10 = vnez %v6747_v10  ;;  %v6941_v40 = vmov 0  ;;  %v338_v10 = vadd.s32 1008, %v4707_v28 }
 0x386   :  { %v6920_v56 = vsel %vm5960_vm6, 4294967295, %v6919_v56  ;;  %vm6923_vm14 = vmpackc.low %vm6921_vm4, %vm6922_vm5  ;;  %vm6931_vm4 = vcmp.lt.s32.totalorder %v305_v42, %v4712_v30  ;;  %vm6932_vm5 = vcmp.ge.s32.totalorder %v305_v42, %v4710_v29  ;;  %vm6946_vm11 = vnez %v6767_v16 }
 0x387   :  { %3718 = vmatprep.subr.msk.bf16.mxu0 %vm6923_vm14, %v6871_v51  ;;  %vm6926_vm9 = vmpackc.low %vm6924_vm12, %vm6925_vm10  ;;  %vm547_vm10 = vcmp.lt.s32.totalorder %v288_v52, %v4712_v30  ;;  %vm6944_vm12 = vnez %v6755_v12  ;;  %vm6949_vm15 = vcmp.ge.s32.totalorder %v288_v52, %v4710_v29  ;;  %v6950_v11 = vmov 0 }
 0x388   :  { %3740 = vmatprep.subr.msk.bf16.mxu1 %vm6926_vm9, %v6871_v51  ;;  %vm5991_vm14 = vmand %vm6932_vm5, %vm6931_vm4  ;;  %vm6935_vm4 = vcmp.lt.s32.totalorder %v336_v50, %v4712_v30  ;;  %vm6936_vm5 = vcmp.ge.s32.totalorder %v336_v50, %v4710_v29  ;;  %vm6939_vm9 = vcmp.lt.s32.totalorder %v337_v44, %v4712_v30  ;;  %vm580_vm13 = vcmp.lt.s32.totalorder %v321_v4, %v4712_v30 }
 0x389   :  { %v6934_v5 = vsel %vm5991_vm14, 4294967295, %v6933_v5  ;;  %vm6010_vm7 = vmand %vm6936_vm5, %vm6935_vm4  ;;  %vm6943_vm5 = vnez %v6759_v14  ;;  %v339_v14 = vadd.s32 1016, %v4707_v28  ;;  %vm6967_vm8 = vcmp.lt.s32.totalorder %v320_v2, %v4712_v30 }
 0x38a   :  { %v6938_v37 = vsel %vm6010_vm7, 4294967295, %v6937_v37  ;;  %vm6021_vm3 = vmand %vm6940_vm1, %vm6939_vm9  ;;  %vm6947_vm1 = vnez %v6763_v15  ;;  %v6969_v12 = vmov 0  ;;  %vm436_vm0 = vcmp.ge.s32.totalorder %v307_v38, %v4710_v29 }
 0x38b   :  { %v6942_v40 = vsel %vm6021_vm3, 4294967295, %v6941_v40  ;;  %vm6945_vm6 = vmpackc.low %vm6943_vm5, %vm6944_vm12  ;;  %vm6953_vm12 = vnez %v6859_v23  ;;  %v6972_v15 = vmov 0  ;;  %vm597_vm7 = vcmp.lt.s32.totalorder %v338_v10, %v4712_v30 }
 0x38c   :  { %3719 = vmatpush3.bf16.msk.msra.mxu0 %vm6945_vm6, %v6871_v51  ;;  %vm6948_vm9 = vmpackc.low %vm6946_vm11, %vm6947_vm1  ;;  %vm6952_vm6 = vnez %v6776_v8  ;;  %vm6955_vm11 = vnez %v6786_v27  ;;  %v6964_v8 = vmov 0  ;;  %vm566_vm1 = vcmp.lt.s32.totalorder %v307_v38, %v4712_v30 }
 0x38d   :  { %3741 = vmatpush3.bf16.msk.msra.mxu1 %vm6948_vm9, %v6871_v51  ;;  %vm6042_vm2 = vmand %vm6949_vm15, %vm547_vm10  ;;  %vm6956_vm15 = vnez %v6781_v18  ;;  %vm6971_vm9 = vcmp.ge.s32.totalorder %v321_v4, %v4710_v29  ;;  %vm6978_vm14 = vnez %v6798_v36  ;;  %v6980_v16 = vmov 0 }
 0x38e   :  { %v6951_v11 = vsel %vm6042_vm2, 4294967295, %v6950_v11  ;;  %vm6954_vm5 = vmpackc.low %vm6952_vm6, %vm6953_vm12  ;;  %vm6962_vm6 = vcmp.lt.s32.totalorder %v289_v20, %v4712_v30  ;;  %vm6963_vm12 = vcmp.ge.s32.totalorder %v289_v20, %v4710_v29  ;;  %vm467_vm2 = vcmp.ge.s32.totalorder %v338_v10, %v4710_v29  ;;  %v1768_v20 = vpop.permute.xlu1 %1767 }
 0x38f   :  { %3720 = vmatprep.subr.msk.bf16.mxu0 %vm6954_vm5, %v6871_v51  ;;  %vm6957_vm10 = vmpackc.low %vm6955_vm11, %vm6956_vm15  ;;  %vm435_vm11 = vcmp.ge.s32.totalorder %v306_v32, %v4710_v29  ;;  %vm565_vm15 = vcmp.lt.s32.totalorder %v306_v32, %v4712_v30  ;;  %v290_v18 = vadd.s32 624, %v4707_v28  ;;  %v6989_v27 = vmov 0  ;;  %v1496_v32 = vld [vmem:[%s6581_s14] sm:$0xff] }
 0x390   :  { %3742 = vmatprep.subr.msk.bf16.mxu1 %vm6957_vm10, %v6871_v51  ;;  %vm6073_vm5 = vmand %vm6963_vm12, %vm6962_vm6  ;;  %vm6968_vm6 = vcmp.ge.s32.totalorder %v320_v2, %v4710_v29  ;;  %vm6977_vm10 = vnez %v6802_v39  ;;  %v322_v36 = vadd.s32 880, %v4707_v28  ;;  %v6993_v39 = vmov 0  ;;  %v1763_v2 = vpop.permute.xlu0 %1762 }
 0x391   :  { %v6965_v8 = vsel %vm6073_vm5, 4294967295, %v6964_v8  ;;  %vm6091_vm12 = vmand %vm6968_vm6, %vm6967_vm8  ;;  %vm6974_vm8 = vnez %v6794_v35  ;;  %vm6975_vm6 = vnez %v6790_v7  ;;  %v291_v7 = vadd.s32 632, %v4707_v28 }
 0x392   :  { %v6970_v12 = vsel %vm6091_vm12, 4294967295, %v6969_v12  ;;  %vm6099_vm4 = vmand %vm6971_vm9, %vm580_vm13  ;;  %vm598_vm12 = vcmp.lt.s32.totalorder %v339_v14, %v4712_v30  ;;  %v6991_v35 = vmov 0 }
 0x393   :  { %v6973_v15 = vsel %vm6099_vm4, 4294967295, %v6972_v15  ;;  %vm6976_vm3 = vmpackc.low %vm6974_vm8, %vm6975_vm6  ;;  %vm468_vm4 = vcmp.ge.s32.totalorder %v339_v14, %v4710_v29  ;;  %vm6983_vm8 = vnez %v6897_v53  ;;  %v3366_v53 = vld [vmem:[%s7040_s25] ss:$0 sm:$0xff]  ;;  %v1499_v14 = vld [vmem:[%s6581_s14 + $0x18] sm:$0xff] }
 0x394   :  { %3721 = vmatpush3.bf16.msk.msra.mxu0 %vm6976_vm3, %v6871_v51  ;;  %vm6979_vm13 = vmpackc.low %vm6977_vm10, %vm6978_vm14  ;;  %vm6982_vm3 = vnez %v6899_v43  ;;  %vm6985_vm14 = vnez %v6826_v13  ;;  %vm550_vm10 = vcmp.lt.s32.totalorder %v291_v7, %v4712_v30  ;;  %v7010_v13 = vmov 0 }
 0x395   :  { %3743 = vmatpush3.bf16.msk.msra.mxu1 %vm6979_vm13, %v6871_v51  ;;  %vm6117_vm9 = vmand %vm435_vm11, %vm565_vm15  ;;  %vm6986_vm11 = vnez %v6817_v59  ;;  %v323_v59 = vadd.s32 888, %v4707_v28  ;;  %vm549_vm13 = vcmp.lt.s32.totalorder %v290_v18, %v4712_v30 }
 0x396   :  { %v6981_v16 = vsel %vm6117_vm9, 4294967295, %v6980_v16  ;;  %vm6984_vm6 = vmpackc.low %vm6982_vm3, %vm6983_vm8 }
 0x397   :  { %3722 = vmatprep.subr.msk.bf16.mxu0 %vm6984_vm6, %v6871_v51  ;;  %vm6987_vm15 = vmpackc.low %vm6985_vm14, %vm6986_vm11  ;;  %vm7013_vm11 = vnez %v6879_v46 }
 0x398   :  { %3744 = vmatprep.subr.msk.bf16.mxu1 %vm6987_vm15, %v6871_v51  ;;  %vm6140_vm9 = vmand %vm436_vm0, %vm566_vm1  ;;  %vm6995_vm0 = vnez %v6838_v62  ;;  %vm6996_vm1 = vnez %v6834_v61  ;;  %vm419_vm15 = vcmp.ge.s32.totalorder %v290_v18, %v4710_v29  ;;  %v1492_v61 = vld [vmem:[%s6580_s13] sm:$0xff]  ;;  %v1493_v62 = vld [vmem:[%s6580_s13 + $0x8] sm:$0xff] }
 0x399   :  { %v6990_v27 = vsel %vm6140_vm9, 4294967295, %v6989_v27  ;;  %vm6145_vm3 = vmand %vm467_vm2, %vm597_vm7  ;;  %vm6998_vm2 = vnez %v6846_v24  ;;  %vm6999_vm7 = vnez %v6842_v63  ;;  %v4006_v58 = vpack.c.bf16 %v1493_v62, %v1492_v61  ;;  %v1495_v63 = vld [vmem:[%s6580_s13 + $0x18] sm:$0xff] }
 0x39a   :  { %v6992_v35 = vsel %vm6145_vm3, 4294967295, %v6991_v35  ;;  %vm6150_vm8 = vmand %vm468_vm4, %vm598_vm12  ;;  %vm420_vm12 = vcmp.ge.s32.totalorder %v291_v7, %v4710_v29  ;;  %vm7012_vm4 = vnez %v6885_v47  ;;  %vm7016_vm3 = vnez %v6906_v19  ;;  %v2028_v7 = vld [vmem:[%s6584_s17 + $0x18] sm:$0xff] }
 0x39b   :  { %v6994_v39 = vsel %vm6150_vm8, 4294967295, %v6993_v39  ;;  %vm6997_vm6 = vmpackc.low %vm6995_vm0, %vm6996_vm1  ;;  %vm7003_vm0 = vnez %v6858_v33  ;;  %vm7004_vm1 = vnez %v6850_v9  ;;  %vm7018_vm8 = vnez %v6934_v5 }
 0x39c   :  { %3723 = vmatpush3.bf16.msk.msra.mxu0 %vm6997_vm6, %v6871_v51  ;;  %vm7000_vm14 = vmpackc.low %vm6998_vm2, %vm6999_vm7  ;;  %vm7006_vm2 = vnez %v6870_v1  ;;  %vm7007_vm7 = vnez %v6865_v0  ;;  %v4009_v24 = vpack.c.bf16 %v1495_v63, %v1494_v57  ;;  %v2031_v57 = vld [vmem:[%s6585_s18 + $0x10] sm:$0xff] }
 0x39d   :  { %3745 = vmatpush3.bf16.msk.msra.mxu1 %vm7000_vm14, %v6871_v51  ;;  %vm7005_vm6 = vmpackc.low %vm7003_vm0, %vm7004_vm1  ;;  %vm451_vm1 = vcmp.ge.s32.totalorder %v322_v36, %v4710_v29  ;;  %vm7015_vm0 = vnez %v6910_v31 }
 0x39e   :  { %3724 = vmatprep.subr.msk.bf16.mxu0 %vm7005_vm6, %v6871_v51  ;;  %vm7008_vm14 = vmpackc.low %vm7006_vm2, %vm7007_vm7  ;;  %vm581_vm6 = vcmp.lt.s32.totalorder %v322_v36, %v4712_v30  ;;  %vm452_vm7 = vcmp.ge.s32.totalorder %v323_v59, %v4710_v29  ;;  %v7037_v29 = vmov 0.0   ;;  %v2029_v36 = vld [vmem:[%s6585_s18] sm:$0xff] }
 0x39f   :  { %3746 = vmatprep.subr.msk.bf16.mxu1 %vm7008_vm14, %v6871_v51  ;;  %vm6197_vm2 = vmand %vm419_vm15, %vm549_vm13  ;;  %vm582_vm14 = vcmp.lt.s32.totalorder %v323_v59, %v4712_v30  ;;  %v7038_v30 = vmov 0.0|0.0  }
 0x3a0   :  { %v7011_v13 = vsel %vm6197_vm2, 4294967295, %v7010_v13  ;;  %vm7014_vm9 = vmpackc.low %vm7012_vm4, %vm7013_vm11  ;;  %vm7019_vm2 = vnez %v6920_v56  ;;  %vm7021_vm4 = vnez %v6942_v40 }
 0x3a1   :  { %3725 = vmatpush3.bf16.msk.msra.mxu0 %vm7014_vm9, %v6871_v51  ;;  %vm7017_vm13 = vmpackc.low %vm7015_vm0, %vm7016_vm3  ;;  %vm7022_vm9 = vnez %v6938_v37  ;;  %v1497_v37 = vld [vmem:[%s6581_s14 + $0x8] sm:$0xff] }
 0x3a2   :  { %3747 = vmatpush3.bf16.msk.msra.mxu1 %vm7017_vm13, %v6871_v51  ;;  %vm678_vm15 = vmand %vm420_vm12, %vm550_vm10  ;;  %vm7024_vm13 = vnez %v6965_v8  ;;  %vm7025_vm10 = vnez %v6951_v11  ;;  %v4012_v10 = vpack.c.bf16 %v1497_v37, %v1496_v32  ;;  %v1498_v11 = vld [vmem:[%s6581_s14 + $0x10] sm:$0xff] }
 0x3a3   :  { %vm7020_vm5 = vmpackc.low %vm7018_vm8, %vm7019_vm2  ;;  %vm7027_vm8 = vnez %v6973_v15  ;;  %v4015_v8 = vpack.c.bf16 %v1499_v14, %v1498_v11  ;;  %v2025_v15 = vld [vmem:[%s6584_s17] sm:$0xff] }
 0x3a4   :  { %3726 = vmatprep.subr.msk.bf16.mxu0 %vm7020_vm5, %v6871_v51  ;;  %vm7023_vm11 = vmpackc.low %vm7021_vm4, %vm7022_vm9  ;;  %vm7028_vm5 = vnez %v6970_v12  ;;  %vm7030_vm4 = vnez %v7011_v13  ;;  %v7042_v12 = vld [vmem:[#allocation27_spill] sm:$0xff] }
 0x3a5   :  { %3748 = vmatprep.subr.msk.bf16.mxu1 %vm7023_vm11, %v6871_v51  ;;  %vm709_vm0 = vmand %vm451_vm1, %vm581_vm6  ;;  %vm7031_vm1 = vnez %v6990_v27  ;;  %vm7032_vm6 = vnez %v6981_v16  ;;  %vm7035_vm11 = vnez %v6992_v35  ;;  %v2026_v16 = vld [vmem:[%s6584_s17 + $0x8] sm:$0xff]  ;;  %v2027_v27 = vld [vmem:[%s6584_s17 + $0x10] sm:$0xff] }
 0x3a6   :  { %vm710_vm3 = vmand %vm452_vm7, %vm582_vm14  ;;  %vm7034_vm14 = vnez %v6994_v39  ;;  %v6314_v18 = vpack.c.bf16 %v2026_v16, %v2025_v15  ;;  %v6324_v35 = vpack.c.bf16 %v2028_v7, %v2027_v27  ;;  %v2030_v39 = vld [vmem:[%s6585_s18 + $0x8] sm:$0xff]  ;;  %v7046_v7 = vld [vmem:[#allocation28_spill] sm:$0xff] }
 0x3a7   :  { %vm7026_vm12 = vmpackc.low %vm7024_vm13, %vm7025_vm10  ;;  %v6337_v13 = vpack.c.bf16 %v2030_v39, %v2029_v36 }
 0x3a8   :  { %3727 = vmatpush3.bf16.msk.msra.mxu0 %vm7026_vm12, %v6871_v51  ;;  %vm7029_vm2 = vmpackc.low %vm7027_vm8, %vm7028_vm5  ;;  %vm7043_vm12 = vcmask 261120  }
 0x3a9   :  { %3749 = vmatpush3.bf16.msk.msra.mxu1 %vm7029_vm2, %v6871_v51  ;;  %vm3584_vm9 = vmpackc.low %vm678_vm15, %vm7030_vm4  ;;  %vm7039_vm15 = vmmov 0   ;;  %vm2290_vm2 = vcmask 1041408   ;;  %vm2286_vm4 = vcmask 15360  }
 0x3aa   :  { %vm7033_vm7 = vmpackc.low %vm7031_vm1, %vm7032_vm6 }
 0x3ab   :  { %3728 = vmatprep.subr.msk.bf16.mxu0 %vm7033_vm7, %v6871_v51  ;;  %vm7036_vm13 = vmpackc.low %vm7034_vm14, %vm7035_vm11  ;;  %vm7049_vm14 = vcmask 64512  }
 0x3ac   :  { %3750 = vmatprep.subr.msk.bf16.mxu1 %vm7036_vm13, %v6871_v51  ;;  %vm3616_vm10 = vmpackc.low %vm710_vm3, %vm709_vm0  ;;  %3729 = vmatpush3.bf16.msk.msra.mxu0 %vm3584_vm9, %v6871_v51  ;;  %vm207_vm0 = vcmp.eq.s32.totalorder %v4707_v28, %v3366_v53  ;;  %vm7041_vm3 = vcmask 130048  }
 0x3ad   :  { %3751 = vmatpush3.bf16.msk.msra.mxu1 %vm3616_vm10, %v6871_v51  ;;  %3845 = vmatprep.subr.bf16.mxu0 %v7037_v29  ;;  %v3367_v5 = vsel %vm207_vm0, 1.0, %v7037_v29  ;;  %vm7044_vm8 = vmmov %vm7043_vm12 }
 0x3ae   :  { %4005 = vmatprep.subr.bf16.mxu1 %v7038_v30  ;;  %v210_v40 = vpack.c.bf16 %v3367_v5, %v3367_v5  ;;  %v3635_v5 = vld [vmem:[%s6582_s15] ss:$0 sm:$0xff]  ;;  %s4412_s15 = smov 96   ;;  %vm7047_vm9 = vmmov %vm7044_vm8 }
 0x3af   :  { %1711 = vmatmul.mubr.bf16.vlgmr.msra.gmra.mrb[16].mxu0 %v1592_v54  ;;  %vm7048_vm1 = vmmov %vm7044_vm8 }
 0x3b0   :  { %1752 = vmatmul.mubr.bf16.vlgmr.msra.gmra.mrb[20].mxu1 %v1594_v55  ;;  %3847 = vmatprep.mubr.msk.bf16.mxu0 %vm7039_vm15, %v7037_v29  ;;  %vm7050_vm11 = vmmov %vm7048_vm1 }
 0x3b1   :  { %3859 = vmatprep.mubr.msk.f32.mxu1 %vm7039_vm15, %v7037_v29  ;;  %4007 = vmatpush3.bf16.msra.mxu1 %v4006_v58  ;;  %v2032_v58 = vld [vmem:[%s6585_s18 + $0x18] sm:$0xff]  ;;  %vm7051_vm13 = vmmov %vm7048_vm1 }
 0x3b2   :  { %4008 = vmatprep.subr.bf16.mxu1 %v7038_v30  ;;  %vm7052_vm10 = vmmov %vm7048_vm1 }
 0x3b3   :  { %vm7053_vm0 = vmmov %vm7048_vm1 }
 0x3b5   :  { %4010 = vmatpush3.bf16.msra.mxu1 %v4009_v24 }
 0x3b6   :  { %4017 = vmatprep.subr.bf16.mxu1 %v7038_v30 }
 0x44a   :  { %v3686_v21 = vpop.f32.mrb[12].mxu0  ;;  %v3708_v22 = vpop.f32.mrb[16].mxu1 }
 0x44b   :  { %v3687_v34 = vpop.f32.mrb[13].mxu0  ;;  %v3709_v41 = vpop.f32.mrb[17].mxu1 }
 0x44c   :  { %v3688_v6 = vadd.f32 %v3687_v34, %v3686_v21  ;;  %v3710_v9 = vadd.f32 %v3709_v41, %v3708_v22  ;;  %v3689_v17 = vpop.f32.mrb[14].mxu0  ;;  %v3711_v3 = vpop.f32.mrb[18].mxu1  ;;  %v6347_v21 = vpack.c.bf16 %v2032_v58, %v2031_v57  ;;  %v2033_v22 = vld [vmem:[#allocation16] sm:$0xff]  ;;  %v2034_v34 = vld [vmem:[#allocation16 + $0x8] sm:$0xff] }
 0x44d   :  { %v3690_v33 = vpop.f32.mrb[15].mxu0  ;;  %v3712_v54 = vpop.f32.mrb[19].mxu1 }
 0x44e   :  { %v1672_v55 = vadd.f32 %v3710_v9, %v3688_v6  ;;  %v3691_v23 = vadd.f32 %v3690_v33, %v3689_v17  ;;  %v3713_v0 = vadd.f32 %v3712_v54, %v3711_v3  ;;  %v6353_v6 = vpack.c.bf16 %v2034_v34, %v2033_v22  ;;  %v2035_v17 = vld [vmem:[#allocation16 + $0x10] sm:$0xff]  ;;  %v2036_v3 = vld [vmem:[#allocation16 + $0x18] sm:$0xff] }
 0x44f   :  { %v6358_v33 = vpack.c.bf16 %v2036_v3, %v2035_v17 }
 0x450   :  { %v1675_v45 = vadd.f32 %v3713_v0, %v3691_v23 }
 0x482   :  { %v3730_v42 = vpop.f32.mrb[16].mxu0 }
 0x483   :  { %v3752_v1 = vpop.f32.mrb[20].mxu1  ;;  %v3731_v50 = vpop.f32.mrb[17].mxu0 }
 0x484   :  { %v3753_v51 = vpop.f32.mrb[21].mxu1  ;;  %v3732_v46 = vadd.f32 %v3731_v50, %v3730_v42  ;;  %v3733_v47 = vpop.f32.mrb[18].mxu0  ;;  %v6375_v50 = vld [vmem:[%s6587_s20] ss:$0 sm:$0xff] }
 0x485   :  { %v3754_v44 = vadd.f32 %v3753_v51, %v3752_v1  ;;  %v3755_v48 = vpop.f32.mrb[22].mxu1  ;;  %v3734_v52 = vpop.f32.mrb[19].mxu0 }
 0x486   :  { %v3756_v49 = vpop.f32.mrb[23].mxu1  ;;  %v1713_v60 = vadd.f32 %v3732_v46, %v1672_v55  ;;  %v3735_v25 = vadd.f32 %v3734_v52, %v3733_v47 }
 0x487   :  { %v3757_v26 = vadd.f32 %v3756_v49, %v3755_v48 }
 0x488   :  { %v1754_v43 = vadd.f32 %v3754_v44, %v1713_v60  ;;  %v1716_v19 = vadd.f32 %v3735_v25, %v1675_v45 }
 0x48a   :  { %v1757_v31 = vadd.f32 %v3757_v26, %v1716_v19  ;;  %v1770_v56 = vmul.f32 %v1763_v2, %v1754_v43  ;;  %v2009_v43 = vld [vmem:[%s7045_s16] sm:$0xff]  ;;  %v3637_v19 = vld [vmem:[#allocation14] ss:$0 sm:$0xff] }
 0x48c   :  { %v1771_v4 = vmul.f32 %v1768_v20, %v1757_v31 }
 0x48e   :  { %v1772_v38 = vpack.c.bf16 %v1771_v4, %v1770_v56 }
 0x490   :  { %3846 = vmatpush3.bf16.msra.mxu0 %v1772_v38 }
 0x491   :  { %4011 = vmatprep.subr.bf16.mxu0 %v7038_v30 }
 0x493   :  { %3848 = vmatmul.mubr.msk.bf16.vlgmr.msra.gmra.mrb[20].mxu0 %vm7041_vm3, %v210_v40  ;;  %vm7054_vm3 = vmmov %vm7049_vm14 }
 0x494   :  { %4013 = vmatpush3.bf16.msra.mxu0 %v4012_v10  ;;  %3870 = vmatprep.mubr.msk.f32.mxu0 %vm7039_vm15, %v7037_v29 }
 0x495   :  { %4014 = vmatprep.subr.bf16.mxu0 %v7038_v30 }
 0x498   :  { %4016 = vmatpush3.bf16.msra.mxu0 %v4015_v8 }
 0x499   :  { %4023 = vmatprep.subr.bf16.mxu0 %v7038_v30 }
 0x49b   :  { %3871 = vmatmul.mubr.msk.f32.vlgmr.msra.gmra.mrb[2].mxu0 %vm7043_vm12, %v7042_v12  ;;  %vm7055_vm12 = vmmov %vm7053_vm0 }
 0x49c   :  { %3892 = vmatprep.mubr.msk.f32.mxu0 %vm7039_vm15, %v7037_v29  ;;  %4025 = vmatpush3.bf16.msra.mxu0 %v6314_v18 }
 0x49d   :  { %4026 = vmatprep.subr.bf16.mxu0 %v7038_v30 }
 0x4a0   :  { %4028 = vmatpush3.bf16.msra.mxu0 %v6324_v35 }
 0x4a1   :  { %3906 = vmatprep.subr.mxu0 %v7037_v29 }
 0x4a3   :  { %3893 = vmatmul.mubr.f32.vlgmr.msra.gmra.mrb[24].mxu0 %v7037_v29 }
 0x4a4   :  { %3908 = vmatprep.mubr.msk.f32.mxu0 %vm7039_vm15, %v7037_v29 }
 0x566   :  { %v1810_v59 = vpop.f32.mrb[20].mxu0 }
 0x567   :  { %v1816_v61 = vmax.f32 %v1810_v59, 0.0  ;;  %v3849_v62 = vpop.f32.mrb[21].mxu0 }
 0x568   :  { %v1813_v63 = vpop.f32.mrb[22].mxu0 }
 0x569   :  { %v3850_v24 = vpop.f32.mrb[23].mxu0  ;;  %3860 = vmatmul.mubr.msk.f32.vlgmr.msra.gmra.mrb[2].mxu1 %vm7044_vm8, %v1816_v61  ;;  %vm7056_vm8 = vmmov %vm7053_vm0 }
 0x56a   :  { %4019 = vmatpush3.bf16.msra.mxu1 %v6337_v13  ;;  %3881 = vmatprep.mubr.msk.f32.mxu1 %vm7039_vm15, %v7037_v29 }
 0x56b   :  { %4020 = vmatprep.subr.bf16.mxu1 %v7038_v30 }
 0x56e   :  { %4022 = vmatpush3.bf16.msra.mxu1 %v6347_v21  ;;  %v1971_v41 = vpop.f32.mrb[2].mxu0 }
 0x56f   :  { %v3872_v9 = vpop.f32.mrb[3].mxu0  ;;  %4029 = vmatprep.subr.bf16.mxu1 %v7038_v30  ;;  %v1972_v20 = vadd.f32 %v3637_v19, %v1971_v41 }
 0x571   :  { %3882 = vmatmul.mubr.f32.vlgmr.msra.gmra.mrb[24].mxu1 %v7037_v29 }
 0x572   :  { %4031 = vmatpush3.bf16.msra.mxu1 %v6353_v6  ;;  %3903 = vmatprep.mubr.msk.f32.mxu1 %vm7039_vm15, %v7037_v29 }
 0x573   :  { %4032 = vmatprep.subr.bf16.mxu1 %v7038_v30 }
 0x576   :  { %4034 = vmatpush3.bf16.msra.mxu1 %v6358_v33  ;;  %v2177_v54 = vpop.f32.mrb[24].mxu0 }
 0x577   :  { %4035 = vmatprep.subr.bf16.mxu1 %v7038_v30  ;;  %v3894_v55 = vpop.f32.mrb[25].mxu0 }
 0x579   :  { %3904 = vmatmul.mubr.f32.vlgmr.msra.gmra.mrb[26].mxu1 %v7037_v29 }
 0x57a   :  { %4037 = vmatpush3.bf16.msra.mxu1 %v6337_v13  ;;  %3924 = vmatprep.mubr.msk.f32.mxu1 %vm7039_vm15, %v7037_v29 }
 0x57b   :  { %4038 = vmatprep.subr.bf16.mxu1 %v7038_v30 }
 0x57e   :  { %4040 = vmatpush3.bf16.msra.mxu1 %v6347_v21 }
 0x57f   :  { %4047 = vmatprep.subr.bf16.mxu1 %v7038_v30 }
 0x63c   :  { %v1892_v23 = vpop.f32.mrb[2].mxu1 }
 0x63d   :  { %v3861_v0 = vpop.f32.mrb[3].mxu1  ;;  %v1893_v32 = vadd.f32 %v3635_v5, %v1892_v23 }
 0x63f   :  { %v1975_v37 = vadd.f32 %v1972_v20, %v1893_v32 }
 0x641   :  { %v3639_v38 = vmul.f32 -1.442695, %v1975_v37 }
 0x644   :  { %v2107_v45 = vpop.f32.mrb[24].mxu1 }
 0x645   :  { %v3883_v42 = vpop.f32.mrb[25].mxu1  ;;  %v2178_v1 = vadd.f32 %v2177_v54, %v2107_v45 }
 0x64c   :  { %v2247_v51 = vpop.f32.mrb[26].mxu1 }
 0x64d   :  { %v2251_v46 = vadd.f32 %v2247_v51, %v2178_v1  ;;  %v3905_v44 = vpop.f32.mrb[27].mxu1 }
 0x64f   :  { %v2258_v47 = vadd.f32 %v6375_v50, %v2251_v46 }
 0x651   :  { %4095 = vtanh.f32 %v2258_v47  ;;  %v3644_v52 = vmul.f32 -1.442695, %v2258_v47 }
 0x653   :  { %4097 = vpow2.f32 %v3644_v52 }
 0x65b   :  { %v4096_v48 = vpop.eup %4095 }
 0x65c   :  { %2268 = vrot.lane.b32.xlu0 %v4096_v48, %s4397_s30 }
 0x65d   :  { %v4098_v49 = vpop.eup %4097 }
 0x65e   :  { %v2262_v60 = vadd.f32 1.0, %v4098_v49 }
 0x660   :  { %4099 = vrcp.f32 %v2262_v60 }
 0x66a   :  { %v4100_v25 = vpop.eup %4099 }
 0x66b   :  { %v2266_v31 = vmul.f32 0.0, %v4100_v25 }
 0x6ce   :  { %v2269_v26 = vpop.permute.xlu0 %2268 }
 0x6cf   :  { %v2271_v53 = vmul.f32 %v4100_v25, %v2269_v26 }
 0x6d1   :  { %2273 = vrot.lane.b32.xlu1 %v2271_v53, %s4411_s10 }
 0x6d5   :  { %2011 = vperm.xlu1 %4094, %v2009_v43  }
 0x6d9   :  { %1983 = vrot.lane.b32.xlu1 %v1972_v20, %s4397_s30 }
 0x743   :  { %v2274_v2 = vpop.permute.xlu1 %2273 }
 0x744   :  { %v6384_v56 = vadd.f32 %v2274_v2, %v2266_v31 }
 0x746   :  { %4101 = vtanh.f32 %v6384_v56 }
 0x747   :  { %4103 = vpow2.f32 %v3639_v38 }
 0x750   :  { %v4102_v4 = vpop.eup %4101 }
 0x751   :  { %2279 = vrot.lane.b32.xlu0 %v4102_v4, %s4397_s30  ;;  %v4104_v40 = vpop.eup %4103 }
 0x752   :  { %v1979_v10 = vadd.f32 1.0, %v4104_v40 }
 0x754   :  { %4105 = vrcp.f32 %v1979_v10  ;;  %v2012_v11 = vpop.permute.xlu1 %2011  ;;  %v3641_v10 = vld [vmem:[#allocation5] ss:$0 sm:$0xff] }
 0x755   :  { %vm2013_vm5 = vcmp.eq.s32.totalorder %v7046_v7, %v2012_v11  ;;  %vm2021_vm7 = vcmp.eq.s32.totalorder %v4707_v28, %v3641_v10 }
 0x756   :  { %v6399_v39 = vsel %vm2013_vm5, 1.0, %v7037_v29  ;;  %v6433_v11 = vsel %vm2021_vm7, 1.0, %v7037_v29  ;;  %vm7057_vm5 = vmmov %vm7053_vm0 }
 0x757   :  { %vm2024_vm6 = vcmp.gt.f32.partialorder %v6399_v39, 0.0 }
 0x758   :  { %v1984_v15 = vpop.permute.xlu1 %1983 }
 0x75e   :  { %v4106_v16 = vpop.eup %4105 }
 0x75f   :  { %v1986_v27 = vmul.f32 %v4106_v16, %v1984_v15  ;;  %v1993_v57 = vsub.f32 1.0, %v4106_v16 }
 0x7c3   :  { %v2280_v14 = vpop.permute.xlu0 %2279 }
 0x7c4   :  { %v2282_v8 = vmul.f32 %v4100_v25, %v2280_v14 }
 0x7c6   :  { %2284 = vrot.lane.b32.xlu0 %v2282_v8, %s4411_s10 }
 0x7ca   :  { %1988 = vrot.lane.b32.xlu0 %v1986_v27, %s4397_s30 }
 0x7ce   :  { %1999 = vrot.lane.b32.xlu0 %v7042_v12, %s4411_s10 }
 0x838   :  { %v6396_v36 = vpop.permute.xlu0 %2284 }
 0x839   :  { %3907 = vmatpush3.msk.msra.mxu0 %vm2290_vm2, %v6396_v36 }
 0x83a   :  { %3909 = vmatmul.mubr.msk.f32.vlgmr.msra.gmra.mrb[26].mxu0 %vm2286_vm4, %v6399_v39  ;;  %3911 = vmatprep.subr.mxu0 %v7037_v29 }
 0x83b   :  { %3913 = vmatprep.mubr.msk.f32.mxu0 %vm7039_vm15, %v7037_v29 }
 0x83c   :  { %v1989_v12 = vpop.permute.xlu0 %1988 }
 0x83d   :  { %v1991_v59 = vadd.f32 %v1989_v12, %v1893_v32 }
 0x83f   :  { %4107 = vtanh.f32 %v1991_v59 }
 0x840   :  { %v2000_v62 = vpop.permute.xlu0 %1999 }
 0x841   :  { %v2002_v63 = vmul.f32 %v4106_v16, %v2000_v62 }
 0x849   :  { %v4108_v61 = vpop.eup %4107 }
 0x84a   :  { %1995 = vrot.lane.b32.xlu1 %v4108_v61, %s4412_s15 }
 0x8bc   :  { %v1996_v58 = vpop.permute.xlu1 %1995 }
 0x8bd   :  { %v1998_v24 = vmul.f32 %v1996_v58, %v1993_v57 }
 0x8bf   :  { %v6409_v22 = vadd.f32 %v2002_v63, %v1998_v24 }
 0x8c1   :  { %2005 = vrot.lane.b32.xlu1 %v6409_v22, %s4412_s15 }
 0x90d   :  { %v2359_v34 = vpop.f32.mrb[26].mxu0 }
 0x90e   :  { %v3910_v41 = vpop.f32.mrb[27].mxu0 }
 0x933   :  { %v6413_v9 = vpop.permute.xlu1 %2005 }
 0x934   :  { %2008 = vst.msk [vmem:[#allocation17] sm:$0xff] %vm7047_vm9, %v6413_v9  ;;  %v2363_v17 = vmul.f32 %v2359_v34, %v6413_v9  ;;  %vm3323_vm9 = vcmask 254976  }
 0x936   :  { %v2364_v3 = vsel %vm7048_vm1, %v2363_v17, 0.0  ;;  %vm7058_vm1 = vmmov %vm7053_vm0 }
 0x937   :  { %2365 = vadd.xlane.f32.xlu0 %v2364_v3 }
 0x9c4   :  { %v2366_v54 = vpop.xlane.xlu0 %2365 }
 0x9c5   :  { %v2367_v55 = vsel %vm2024_vm6, %v2366_v54, -1e+30 }
 0x9c6   :  { %v2368_v23 = vsel %vm2286_vm4, %v2367_v55, -inf }
 0x9c7   :  { %v2369_v0 = vrot.slane %v2368_v23, 4 }
 0x9c9   :  { %v2370_v45 = vmax.f32 %v2368_v23, %v2369_v0 }
 0x9cb   :  { %v2371_v42 = vrot.slane %v2370_v45, 2 }
 0x9cd   :  { %v2372_v1 = vmax.f32 %v2370_v45, %v2371_v42 }
 0x9cf   :  { %v2373_v51 = vrot.slane %v2372_v1, 1 }
 0x9d1   :  { %v2374_v46 = vmax.f32 %v2372_v1, %v2373_v51 }
 0x9d3   :  { %v2375_v44 = vmul.f32 %v6399_v39, %v2374_v46 }
 0x9d5   :  { %v2376_v47 = vsel %vm2286_vm4, %v2375_v44, 0.0 }
 0x9d6   :  { %2377 = vadd.xlane.f32.xlu1 %v2376_v47 }
 0xa63   :  { %v2378_v48 = vpop.xlane.xlu1 %2377 }
 0xa64   :  { %v2379_v52 = vsub.f32 %v2366_v54, %v2378_v48 }
 0xa66   :  { %v2380_v49 = vmul.f32 1.442695, %v2379_v52 }
 0xa68   :  { %4109 = vpow2.f32 %v2380_v49 }
 0xa72   :  { %v4110_v60 = vpop.eup %4109 }
 0xa73   :  { %v2382_v25 = vmul.f32 %v4110_v60, %v6399_v39 }
 0xa75   :  { %v2383_v26 = vsel %vm2286_vm4, %v2382_v25, 0.0 }
 0xa76   :  { %v2384_v53 = vrot.slane %v2383_v26, 4 }
 0xa78   :  { %v2385_v43 = vadd.f32 %v2384_v53, %v2383_v26 }
 0xa7a   :  { %v2386_v19 = vrot.slane %v2385_v43, 2 }
 0xa7c   :  { %v2387_v20 = vadd.f32 %v2386_v19, %v2385_v43 }
 0xa7e   :  { %v2388_v31 = vrot.slane %v2387_v20, 1 }
 0xa80   :  { %v2389_v2 = vadd.f32 %v2388_v31, %v2387_v20 }
 0xa82   :  { %v2390_v4 = vmul.f32 %v6399_v39, %v2389_v2 }
 0xa84   :  { %v2391_v5 = vsel %vm2286_vm4, %v2390_v4, 0.0 }
 0xa85   :  { %2392 = vadd.xlane.f32.xlu0 %v2391_v5 }
 0xb12   :  { %v2393_v32 = vpop.xlane.xlu0 %2392 }
 0xb13   :  { %4111 = vrcp.f32 %v2393_v32 }
 0xb1d   :  { %v4112_v37 = vpop.eup %4111 }
 0xb1e   :  { %v2395_v38 = vmul.f32 %v4112_v37, %v4110_v60 }
 0xb20   :  { %v2396_v40 = vmul.f32 %v2395_v38, %v6409_v22 }
 0xb22   :  { %2398 = vrot.lane.b32.xlu0 %v2396_v40, %s4412_s15 }
 0xb94   :  { %v2399_v14 = vpop.permute.xlu0 %2398 }
 0xb95   :  { %3912 = vmatpush3.msra.mxu0 %v2399_v14 }
 0xb96   :  { %3914 = vmatmul.mubr.msk.f32.vlgmr.msra.gmra.mrb[28].mxu0 %vm7049_vm14, %v6433_v11  ;;  %4041 = vmatprep.subr.bf16.mxu0 %v7038_v30 }
 0xb97   :  { %4043 = vmatpush3.bf16.msra.mxu0 %v6314_v18  ;;  %3935 = vmatprep.mubr.msk.f32.mxu0 %vm7039_vm15, %v7037_v29 }
 0xb98   :  { %4044 = vmatprep.subr.bf16.mxu0 %v7038_v30 }
 0xb9b   :  { %4046 = vmatpush3.bf16.msra.mxu0 %v6324_v35 }
 0xb9c   :  { %3949 = vmatprep.subr.mxu0 %v7037_v29 }
 0xb9e   :  { %3936 = vmatmul.mubr.msk.f32.vlgmr.msra.gmra.mrb[30].mxu0 %vm7050_vm11, %v6396_v36 }
 0xb9f   :  { %3951 = vmatprep.mubr.msk.f32.mxu0 %vm7039_vm15, %v7037_v29 }
 0xc69   :  { %v2470_v28 = vpop.f32.mrb[28].mxu0 }
 0xc6a   :  { %3925 = vmatmul.mubr.msk.f32.vlgmr.msra.gmra.mrb[28].mxu1 %vm7051_vm13, %v2470_v28  ;;  %v3915_v8 = vpop.f32.mrb[29].mxu0 }
 0xc6b   :  { %4049 = vmatpush3.bf16.msra.mxu1 %v6353_v6  ;;  %3946 = vmatprep.mubr.msk.f32.mxu1 %vm7039_vm15, %v7037_v29 }
 0xc6c   :  { %4050 = vmatprep.subr.bf16.mxu1 %v7038_v30 }
 0xc6f   :  { %4052 = vmatpush3.bf16.msra.mxu1 %v6358_v33 }
 0xc70   :  { %4053 = vmatprep.subr.bf16.mxu1 %v7038_v30 }
 0xc71   :  { %v2615_v15 = vpop.f32.mrb[30].mxu0 }
 0xc72   :  { %3947 = vmatmul.mubr.msk.f32.vlgmr.msra.gmra.mrb[30].mxu1 %vm7052_vm10, %v6396_v36  ;;  %v3937_v16 = vpop.f32.mrb[31].mxu0 }
 0xc73   :  { %4055 = vmatpush3.bf16.msra.mxu1 %v6337_v13  ;;  %3967 = vmatprep.mubr.msk.f32.mxu1 %vm7039_vm15, %v7037_v29 }
 0xc74   :  { %4056 = vmatprep.subr.bf16.mxu1 %v7038_v30 }
 0xc77   :  { %4058 = vmatpush3.bf16.msra.mxu1 %v6347_v21 }
 0xc78   :  { %4065 = vmatprep.subr.bf16.mxu1 %v7038_v30 }
 0xd3d   :  { %v2543_v27 = vpop.f32.mrb[28].mxu1 }
 0xd3e   :  { %v2616_v7 = vadd.f32 %v2615_v15, %v2543_v27  ;;  %v3926_v12 = vpop.f32.mrb[29].mxu1 }
 0xd45   :  { %v2685_v59 = vpop.f32.mrb[30].mxu1 }
 0xd46   :  { %v2689_v61 = vadd.f32 %v2685_v59, %v2616_v7  ;;  %v3948_v62 = vpop.f32.mrb[31].mxu1 }
 0xd48   :  { %v2690_v36 = vadd.f32 %v6375_v50, %v2689_v61 }
 0xd4a   :  { %4113 = vtanh.f32 %v2690_v36  ;;  %v3651_v13 = vmul.f32 -1.442695, %v2690_v36 }
 0xd4c   :  { %4115 = vpow2.f32 %v3651_v13 }
 0xd54   :  { %v4114_v57 = vpop.eup %4113 }
 0xd55   :  { %2700 = vrot.lane.b32.xlu1 %v4114_v57, %s4397_s30 }
 0xd56   :  { %v4116_v58 = vpop.eup %4115 }
 0xd57   :  { %v2694_v63 = vadd.f32 1.0, %v4116_v58 }
 0xd59   :  { %4117 = vrcp.f32 %v2694_v63 }
 0xd63   :  { %v4118_v21 = vpop.eup %4117 }
 0xd64   :  { %v2698_v41 = vmul.f32 %v4118_v21, %v6384_v56 }
 0xdc7   :  { %v2701_v24 = vpop.permute.xlu1 %2700 }
 0xdc8   :  { %v2703_v34 = vmul.f32 %v4118_v21, %v2701_v24 }
 0xdca   :  { %2705 = vrot.lane.b32.xlu1 %v2703_v34, %s4411_s10 }
 0xe3c   :  { %v2706_v17 = vpop.permute.xlu1 %2705 }
 0xe3d   :  { %v6467_v3 = vadd.f32 %v2706_v17, %v2698_v41 }
 0xe3f   :  { %4119 = vtanh.f32 %v6467_v3 }
 0xe49   :  { %v4120_v54 = vpop.eup %4119 }
 0xe4a   :  { %2711 = vrot.lane.b32.xlu0 %v4120_v54, %s4397_s30 }
 0xebc   :  { %v2712_v55 = vpop.permute.xlu0 %2711 }
 0xebd   :  { %v2714_v23 = vmul.f32 %v4118_v21, %v2712_v55 }
 0xebf   :  { %2716 = vrot.lane.b32.xlu1 %v2714_v23, %s4411_s10 }
 0xf31   :  { %v6472_v0 = vpop.permute.xlu1 %2716 }
 0xf32   :  { %3950 = vmatpush3.msk.msra.mxu0 %vm2290_vm2, %v6472_v0 }
 0xf33   :  { %3952 = vmatmul.mubr.msk.f32.vlgmr.msra.gmra.mrb[32].mxu0 %vm2286_vm4, %v6399_v39  ;;  %3954 = vmatprep.subr.mxu0 %v7037_v29 }
 0xf34   :  { %3956 = vmatprep.mubr.msk.f32.mxu0 %vm7039_vm15, %v7037_v29 }
0x1006   :  { %v2786_v56 = vpop.f32.mrb[32].mxu0 }
0x1007   :  { %v2790_v45 = vmul.f32 %v2786_v56, %v6413_v9  ;;  %v3953_v42 = vpop.f32.mrb[33].mxu0 }
0x1009   :  { %v2791_v1 = vsel %vm7053_vm0, %v2790_v45, 0.0 }
0x100a   :  { %2792 = vadd.xlane.f32.xlu0 %v2791_v1 }
0x1097   :  { %v2793_v51 = vpop.xlane.xlu0 %2792 }
0x1098   :  { %v2794_v46 = vsel %vm2024_vm6, %v2793_v51, -1e+30 }
0x1099   :  { %v2795_v44 = vsel %vm2286_vm4, %v2794_v46, -inf }
0x109a   :  { %v2796_v47 = vrot.slane %v2795_v44, 4 }
0x109c   :  { %v2797_v48 = vmax.f32 %v2795_v44, %v2796_v47 }
0x109e   :  { %v2798_v52 = vrot.slane %v2797_v48, 2 }
0x10a0   :  { %v2799_v49 = vmax.f32 %v2797_v48, %v2798_v52 }
0x10a2   :  { %v2800_v60 = vrot.slane %v2799_v49, 1 }
0x10a4   :  { %v2801_v25 = vmax.f32 %v2799_v49, %v2800_v60 }
0x10a6   :  { %v2802_v26 = vmul.f32 %v6399_v39, %v2801_v25 }
0x10a8   :  { %v2803_v53 = vsel %vm2286_vm4, %v2802_v26, 0.0 }
0x10a9   :  { %2804 = vadd.xlane.f32.xlu1 %v2803_v53 }
0x1136   :  { %v2805_v43 = vpop.xlane.xlu1 %2804 }
0x1137   :  { %v2806_v19 = vsub.f32 %v2793_v51, %v2805_v43 }
0x1139   :  { %v2807_v20 = vmul.f32 1.442695, %v2806_v19 }
0x113b   :  { %4121 = vpow2.f32 %v2807_v20 }
0x1145   :  { %v4122_v31 = vpop.eup %4121 }
0x1146   :  { %v2809_v2 = vmul.f32 %v4122_v31, %v6399_v39 }
0x1148   :  { %v2810_v4 = vsel %vm2286_vm4, %v2809_v2, 0.0 }
0x1149   :  { %v2811_v5 = vrot.slane %v2810_v4, 4 }
0x114b   :  { %v2812_v32 = vadd.f32 %v2811_v5, %v2810_v4 }
0x114d   :  { %v2813_v37 = vrot.slane %v2812_v32, 2 }
0x114f   :  { %v2814_v38 = vadd.f32 %v2813_v37, %v2812_v32 }
0x1151   :  { %v2815_v40 = vrot.slane %v2814_v38, 1 }
0x1153   :  { %v2816_v10 = vadd.f32 %v2815_v40, %v2814_v38 }
0x1155   :  { %v2817_v14 = vmul.f32 %v6399_v39, %v2816_v10 }
0x1157   :  { %v2818_v28 = vsel %vm2286_vm4, %v2817_v14, 0.0 }
0x1158   :  { %2819 = vadd.xlane.f32.xlu0 %v2818_v28 }
0x11e5   :  { %v2820_v8 = vpop.xlane.xlu0 %2819 }
0x11e6   :  { %4123 = vrcp.f32 %v2820_v8 }
0x11f0   :  { %v4124_v15 = vpop.eup %4123 }
0x11f1   :  { %v2822_v16 = vmul.f32 %v4124_v15, %v4122_v31 }
0x11f3   :  { %v2823_v27 = vmul.f32 %v2822_v16, %v6409_v22 }
0x11f5   :  { %2825 = vrot.lane.b32.xlu0 %v2823_v27, %s4412_s15 }
0x1267   :  { %v2826_v7 = vpop.permute.xlu0 %2825 }
0x1268   :  { %3955 = vmatpush3.msra.mxu0 %v2826_v7 }
0x1269   :  { %3957 = vmatmul.mubr.msk.f32.vlgmr.msra.gmra.mrb[34].mxu0 %vm7054_vm3, %v6433_v11  ;;  %4059 = vmatprep.subr.bf16.mxu0 %v7038_v30 }
0x126a   :  { %4061 = vmatpush3.bf16.msra.mxu0 %v6314_v18  ;;  %3978 = vmatprep.mubr.msk.f32.mxu0 %vm7039_vm15, %v7037_v29 }
0x126b   :  { %4062 = vmatprep.subr.bf16.mxu0 %v7038_v30 }
0x126e   :  { %4064 = vmatpush3.bf16.msra.mxu0 %v6324_v35 }
0x126f   :  { %3992 = vmatprep.subr.mxu0 %v7037_v29 }
0x1271   :  { %3979 = vmatmul.mubr.msk.f32.vlgmr.msra.gmra.mrb[36].mxu0 %vm7055_vm12, %v6472_v0 }
0x1272   :  { %3994 = vmatprep.mubr.msk.f32.mxu0 %vm7039_vm15, %v7037_v29 }
0x133c   :  { %v2894_v12 = vpop.f32.mrb[34].mxu0 }
0x133d   :  { %3968 = vmatmul.mubr.msk.f32.vlgmr.msra.gmra.mrb[32].mxu1 %vm7056_vm8, %v2894_v12  ;;  %v3958_v59 = vpop.f32.mrb[35].mxu0 }
0x133e   :  { %4067 = vmatpush3.bf16.msra.mxu1 %v6353_v6  ;;  %3989 = vmatprep.mubr.msk.f32.mxu1 %vm7039_vm15, %v7037_v29 }
0x133f   :  { %4068 = vmatprep.subr.bf16.mxu1 %v7038_v30 }
0x1342   :  { %4070 = vmatpush3.bf16.msra.mxu1 %v6358_v33 }
0x1344   :  { %v3039_v18 = vpop.f32.mrb[36].mxu0 }
0x1345   :  { %3990 = vmatmul.mubr.msk.f32.vlgmr.msra.gmra.mrb[34].mxu1 %vm7057_vm5, %v6472_v0  ;;  %v3980_v35 = vpop.f32.mrb[37].mxu0 }
0x1410   :  { %v2967_v61 = vpop.f32.mrb[32].mxu1 }
0x1411   :  { %v3040_v62 = vadd.f32 %v3039_v18, %v2967_v61  ;;  %v3969_v36 = vpop.f32.mrb[33].mxu1 }
0x1418   :  { %v3109_v57 = vpop.f32.mrb[34].mxu1 }
0x1419   :  { %v3113_v13 = vadd.f32 %v3109_v57, %v3040_v62  ;;  %v3991_v58 = vpop.f32.mrb[35].mxu1 }
0x141b   :  { %v3114_v6 = vadd.f32 %v6375_v50, %v3113_v13 }
0x141d   :  { %4125 = vtanh.f32 %v3114_v6  ;;  %v3658_v30 = vmul.f32 -1.442695, %v3114_v6 }
0x141f   :  { %4127 = vpow2.f32 %v3658_v30 }
0x1427   :  { %v4126_v63 = vpop.eup %4125 }
0x1428   :  { %3124 = vrot.lane.b32.xlu1 %v4126_v63, %s4397_s30 }
0x1429   :  { %v4128_v33 = vpop.eup %4127 }
0x142a   :  { %v3118_v21 = vadd.f32 1.0, %v4128_v33 }
0x142c   :  { %4129 = vrcp.f32 %v3118_v21 }
0x1436   :  { %v4130_v24 = vpop.eup %4129 }
0x1437   :  { %v3122_v17 = vmul.f32 %v4130_v24, %v6467_v3 }
0x149a   :  { %v3125_v34 = vpop.permute.xlu1 %3124 }
0x149b   :  { %v3127_v41 = vmul.f32 %v4130_v24, %v3125_v34 }
0x149d   :  { %3129 = vrot.lane.b32.xlu1 %v3127_v41, %s4411_s10 }
0x150f   :  { %v3130_v54 = vpop.permute.xlu1 %3129 }
0x1510   :  { %v3132_v55 = vadd.f32 %v3130_v54, %v3122_v17 }
0x1512   :  { %4131 = vtanh.f32 %v3132_v55 }
0x151c   :  { %v4132_v50 = vpop.eup %4131 }
0x151d   :  { %3135 = vrot.lane.b32.xlu0 %v4132_v50, %s4397_s30  ;;  %s4413_s30 = smov [#allocation17]  }
0x151e   :  { %s3337_s4 = sshll.u32 %s4413_s30, 4  ;;  %s3338_s4 = int_to_ptr.vmem [resolvable:$true] %s3337_s4 }
0x151f   :  { %s4335_s7 = scalar_lea.vmem %s3338_s4, 128  ;;  %p4340_p3 = scmp.lt.s32.totalorder %s3338_s4, %s3338_s4 }
0x1520   :  { %p4336_p2 = scmp.ne.s32.totalorder %s3338_s4, %s4335_s7  ;;  %p4341_p4 = scmp.lt.s32.totalorder %s4335_s7, %s4335_s7 }
0x1522   :  { %p4342_p5 = por %p4341_p4, %p4340_p3 }
0x1524   :  { %p4343_p6 = pnand %p4342_p5, %p4336_p2 }
0x158f   :  { %v3136_v23 = vpop.permute.xlu0 %3135 }
0x1590   :  { %v3138_v0 = vmul.f32 %v4130_v24, %v3136_v23 }
0x1592   :  { %3140 = vrot.lane.b32.xlu1 %v3138_v0, %s4411_s10 }
0x1604   :  { %v3141_v56 = vpop.permute.xlu1 %3140 }
0x1605   :  { %3324 = vst.msk [vmem:[#allocation18] sm:$0x3] %vm3323_vm9, %v3141_v56  ;;  %3993 = vmatpush3.msk.msra.mxu0 %vm2290_vm2, %v3141_v56 }
0x1606   :  { %3995 = vmatmul.mubr.msk.f32.vlgmr.msra.gmra.mrb[38].mxu0 %vm2286_vm4, %v6399_v39  ;;  %3997 = vmatprep.subr.mxu0 %v7037_v29 }
0x1607   :  { %3999 = vmatprep.mubr.msk.f32.mxu0 %vm7039_vm15, %v7037_v29  ;;  %vm7059_vm15 = vmmov %vm7054_vm3 }
0x16d9   :  { %v3210_v3 = vpop.f32.mrb[38].mxu0 }
0x16da   :  { %v3214_v45 = vmul.f32 %v3210_v3, %v6413_v9  ;;  %v3996_v42 = vpop.f32.mrb[39].mxu0 }
0x16dc   :  { %v3215_v1 = vsel %vm7058_vm1, %v3214_v45, 0.0 }
0x16dd   :  { %3216 = vadd.xlane.f32.xlu0 %v3215_v1 }
0x176a   :  { %v3217_v51 = vpop.xlane.xlu0 %3216 }
0x176b   :  { %v3218_v46 = vsel %vm2024_vm6, %v3217_v51, -1e+30 }
0x176c   :  { %v3219_v44 = vsel %vm2286_vm4, %v3218_v46, -inf }
0x176d   :  { %v3220_v47 = vrot.slane %v3219_v44, 4 }
0x176f   :  { %v3221_v48 = vmax.f32 %v3219_v44, %v3220_v47 }
0x1771   :  { %v3222_v52 = vrot.slane %v3221_v48, 2 }
0x1773   :  { %v3223_v49 = vmax.f32 %v3221_v48, %v3222_v52 }
0x1775   :  { %v3224_v60 = vrot.slane %v3223_v49, 1 }
0x1777   :  { %v3225_v25 = vmax.f32 %v3223_v49, %v3224_v60 }
0x1779   :  { %v3226_v29 = vmul.f32 %v6399_v39, %v3225_v25 }
0x177b   :  { %v3227_v9 = vsel %vm2286_vm4, %v3226_v29, 0.0 }
0x177c   :  { %3228 = vadd.xlane.f32.xlu1 %v3227_v9 }
0x1809   :  { %v3229_v26 = vpop.xlane.xlu1 %3228 }
0x180a   :  { %v3230_v53 = vsub.f32 %v3217_v51, %v3229_v26 }
0x180c   :  { %v3231_v43 = vmul.f32 1.442695, %v3230_v53 }
0x180e   :  { %4133 = vpow2.f32 %v3231_v43 }
0x1818   :  { %v4134_v19 = vpop.eup %4133 }
0x1819   :  { %v3233_v20 = vmul.f32 %v4134_v19, %v6399_v39 }
0x181b   :  { %v3234_v31 = vsel %vm2286_vm4, %v3233_v20, 0.0 }
0x181c   :  { %v3235_v2 = vrot.slane %v3234_v31, 4 }
0x181e   :  { %v3236_v4 = vadd.f32 %v3235_v2, %v3234_v31 }
0x1820   :  { %v3237_v5 = vrot.slane %v3236_v4, 2 }
0x1822   :  { %v3238_v32 = vadd.f32 %v3237_v5, %v3236_v4 }
0x1824   :  { %v3239_v37 = vrot.slane %v3238_v32, 1 }
0x1826   :  { %v3240_v38 = vadd.f32 %v3239_v37, %v3238_v32 }
0x1828   :  { %v3241_v40 = vmul.f32 %v6399_v39, %v3240_v38 }
0x182a   :  { %v3242_v10 = vsel %vm2286_vm4, %v3241_v40, 0.0 }
0x182b   :  { %3243 = vadd.xlane.f32.xlu0 %v3242_v10 }
0x18b8   :  { %v3244_v14 = vpop.xlane.xlu0 %3243 }
0x18b9   :  { %4135 = vrcp.f32 %v3244_v14 }
0x18c3   :  { %v4136_v28 = vpop.eup %4135 }
0x18c4   :  { %v3246_v8 = vmul.f32 %v4136_v28, %v4134_v19 }
0x18c6   :  { %v3247_v15 = vmul.f32 %v3246_v8, %v6409_v22 }
0x18c8   :  { %3249 = vrot.lane.b32.xlu0 %v3247_v15, %s4412_s15 }
0x193a   :  { %v3250_v16 = vpop.permute.xlu0 %3249 }
0x193b   :  { %3998 = vmatpush3.msra.mxu0 %v3250_v16 }
0x193c   :  { %4000 = vmatmul.mubr.msk.f32.vlgmr.msra.gmra.mrb[40].mxu0 %vm7059_vm15, %v6433_v11 }
0x193d   :  { %4346 = shalt.err (!%p4343_p6)
}
0x193e   :  { %s4347_s14 = scalar_lea.hbm %s6588_s21, 128 }
0x193f   :  { %p4348_p7 = scmp.ne.s32.totalorder %s6588_s21, %s4347_s14  ;;  %p4351_p8 = scmp.lt.u32.totalorder %s4347_s14, %s6588_s21 }
0x1941   :  { %p4353_p9 = pnand %p4351_p8, %p4348_p7 }
0x1943   :  { %4356 = shalt.err (!%p4353_p9)
}
0x1944   :  { %3340 = dma.vmem_to_hbm [thread:$0]  %s3338_s4, 128, %s6588_s21, [#allocation4]   ;;  %vm3329_vm2 = vcmask 517376  }
0x1945   :  { %s4414_s19 = smov [#allocation18]  }
0x1946   :  { %s3347_s3 = sshll.u32 %s4414_s19, 4  ;;  %s3348_s3 = int_to_ptr.vmem [resolvable:$true] %s3347_s3 }
0x1947   :  { %s4357_s2 = scalar_lea.vmem %s3348_s3, 32  ;;  %p4362_p11 = scmp.lt.s32.totalorder %s3348_s3, %s3348_s3 }
0x1948   :  { %p4358_p10 = scmp.ne.s32.totalorder %s3348_s3, %s4357_s2  ;;  %p4363_p12 = scmp.lt.s32.totalorder %s4357_s2, %s4357_s2 }
0x194a   :  { %p4364_p13 = por %p4363_p12, %p4362_p11 }
0x194c   :  { %p4365_p0 = pnand %p4364_p13, %p4358_p10 }
0x1a0f   :  { %v3318_v39 = vpop.f32.mrb[40].mxu0 }
0x1a10   :  { %v4001_v22 = vpop.f32.mrb[41].mxu0  ;;  %3326 = vrot.lane.b32.xlu1 %v3318_v39, %s4411_s10 }
0x1a82   :  { %v3327_v11 = vpop.permute.xlu1 %3326 }
0x1a83   :  { %3330 = vst.msk [vmem:[#allocation18] sm:$0x3] %vm3329_vm2, %v3327_v11 }
0x1a84   :  { %4368 = shalt.err (!%p4365_p0)
}
0x1a85   :  { %s4369_s21 = scalar_lea.hbm %s6589_s22, 32 }
0x1a86   :  { %p4370_p1 = scmp.ne.s32.totalorder %s6589_s22, %s4369_s21  ;;  %p4373_p2 = scmp.lt.u32.totalorder %s4369_s21, %s6589_s22 }
0x1a88   :  { %p4375_p3 = pnand %p4373_p2, %p4370_p1 }
0x1a8a   :  { %4378 = shalt.err (!%p4375_p3)
}
0x1a8b   :  { %3350 = dma.vmem_to_hbm [thread:$0]  %s3348_s3, 32, %s6589_s22, [#allocation19]  }
0x1a8c   :  { %4389 = dma.done.wait [#allocation4], 128  }
0x1a8d   :  { %4390 = vsyncadd [#allocation4], 4294967168 }
0x1a8e   :  { %4391 = dma.done.wait [#allocation19], 32  }
0x1a8f   :  { %4392 = vsyncadd [#allocation19], 4294967264 }
0x1a90   :  { %3357 = vsyncpa [#allocation3], 1 }
0x1a91   :  { %3358 = vsyncpa [#allocation6], 1 }
0x1a92   :  { %3359 = vsyncpa [#allocation9], 1 }
0x1a93   :  { %3360 = vsyncpa [#allocation12], 1 }
0x1a94   :  { %3361 = vsyncpa [#allocation15], 1 }
0x1a95   :  { %3362 = vsyncpa [#allocation4], 1 }
0x1a96   :  { %3363 = vsyncpa [#allocation19], 1 }

</bundles_post_ra>
